<compile_context>
chip_gen: v5e
topology: v5e:2x2
jax: 0.10.0
libtpu: 0.0.40
codegen_flags: <defaults>
</compile_context>

<pallas_src>
import functools

import jax
import jax.numpy as jnp
from jax.experimental import pallas as pl
from jax.experimental.pallas import tpu as pltpu

EPS = 1e-5

# Whole-array-in-VMEM spec for tensors, SMEM spec for BN scalar vectors.
_VMEM = pl.BlockSpec(memory_space=pltpu.MemorySpace.VMEM)
_SMEM = pl.BlockSpec(memory_space=pltpu.MemorySpace.SMEM)


# ----------------------------------------------------------------------------
# in-kernel helpers (all f32 elementwise math)
# ----------------------------------------------------------------------------
def _erf(x):
    # Abramowitz & Stegun 7.1.26 (max abs err ~1.5e-7): matches torch exact GELU
    # without relying on a native erf lowering inside Mosaic.
    a1, a2, a3, a4, a5 = (0.254829592, -0.284496736, 1.421413741,
                          -1.453152027, 1.061405429)
    p = 0.3275911
    sign = jnp.where(x >= 0.0, 1.0, -1.0)
    ax = jnp.abs(x)
    t = 1.0 / (1.0 + p * ax)
    poly = ((((a5 * t + a4) * t + a3) * t + a2) * t + a1) * t
    return sign * (1.0 - poly * jnp.exp(-ax * ax))


def _gelu(x):
    return 0.5 * x * (1.0 + _erf(x * 0.7071067811865476))


def _global_bn(x, gamma, beta):
    # BatchNorm2d(1) in train mode == normalize over every element of the tensor.
    mean = jnp.mean(x, keepdims=True)                       # (1, 1)
    var = jnp.mean((x - mean) ** 2, keepdims=True)          # biased variance
    return (x - mean) * jax.lax.rsqrt(var + EPS) * gamma + beta


# ----------------------------------------------------------------------------
# one fused Pallas kernel for the whole ViTBN forward pass
# ----------------------------------------------------------------------------
def _vitbn_kernel(patches_ref, w_patch_ref, b_patch_ref, cls_ref, pos_ref,
                  w_qkv_ref, w_o_ref, b_o_ref,
                  ff_w1_ref, ff_b1_ref, ff_w2_ref, ff_b2_ref,
                  w_head_ref, b_head_ref,
                  patch_g_ref, patch_be_ref,
                  attn_g_ref, attn_be_ref, ff_g_ref, ff_be_ref,
                  final_g_ref, final_be_ref,
                  o_ref,
                  *, batch, n_patches, depth, heads, dim_head, scale, pool):
    f32 = jnp.float32
    cdt = w_patch_ref.dtype                                 # matmul-input dtype (bf16)
    latent = heads * dim_head
    seq = n_patches + 1

    # ---- to_patch_embedding: Batch_Norm(1) -> Linear -> Batch_Norm(1) ----
    p = _global_bn(patches_ref[...].astype(f32), patch_g_ref[0], patch_be_ref[0])
    emb = jnp.dot(p.astype(cdt), w_patch_ref[...],
                  preferred_element_type=f32) + b_patch_ref[...]
    emb = _global_bn(emb, patch_g_ref[1], patch_be_ref[1])  # (b*np, dim)

    # ---- cls token concat + sincos positional embedding (pos_emb='pe1d') ----
    cls = cls_ref[...].astype(f32)                           # (1, dim)
    pos = pos_ref[...].astype(f32)                           # (seq, dim)
    slabs = []
    for bi in range(batch):                                  # static unrolled
        xb = jnp.concatenate(
            [cls, emb[bi * n_patches:(bi + 1) * n_patches, :]], axis=0)
        slabs.append(xb + pos)
    x = jnp.concatenate(slabs, axis=0)                       # (batch*seq, dim), f32

    # ---- transformer blocks (static layer loop, stacked weights) ----
    for li in range(depth):
        # Multihead_Attention (its Batch_Norm(1) is the pre-norm)
        xn = _global_bn(x, attn_g_ref[li], attn_be_ref[li])
        qkv = jnp.dot(xn.astype(cdt), w_qkv_ref[li],
                      preferred_element_type=f32)            # (M, 3*latent), no bias

        per_batch = []
        for bi in range(batch):                              # static unrolled
            r0 = bi * seq
            heads_out = []
            for h in range(heads):
                c0 = h * dim_head
                q = qkv[r0:r0 + seq, c0:c0 + dim_head]
                k = qkv[r0:r0 + seq, latent + c0:latent + c0 + dim_head]
                v = qkv[r0:r0 + seq, 2 * latent + c0:2 * latent + c0 + dim_head]
                s = jax.lax.dot_general(q, k, (((1,), (1,)), ((), ())),
                                        preferred_element_type=f32) * scale
                s = s - jnp.max(s, axis=-1, keepdims=True)
                pr = jnp.exp(s)
                pr = pr * pl.reciprocal(jnp.sum(pr, axis=-1, keepdims=True),
                                        approx=True)
                heads_out.append(jnp.dot(pr, v, preferred_element_type=f32))
            per_batch.append(jnp.concatenate(heads_out, axis=-1))   # (seq, latent)
        attn_out = jnp.concatenate(per_batch, axis=0)                # (M, latent)

        proj = jnp.dot(attn_out.astype(cdt), w_o_ref[li],
                       preferred_element_type=f32) + b_o_ref[li]
        x = x + proj                                          # residual 1 (in-kernel)

        # FeedForward: Lin1 -> Batch_Norm(1) -> GELU -> Lin2
        h1 = jnp.dot(x.astype(cdt), ff_w1_ref[li],
                     preferred_element_type=f32) + ff_b1_ref[li]
        h1 = _gelu(_global_bn(h1, ff_g_ref[li], ff_be_ref[li]))
        h2 = jnp.dot(h1.astype(cdt), ff_w2_ref[li],
                     preferred_element_type=f32) + ff_b2_ref[li]
        x = x + h2                                            # residual 2 (in-kernel)

    # ---- final Transformer Batch_Norm(1) -> pool -> linear head ----
    xn = _global_bn(x, final_g_ref[0], final_be_ref[0])
    if pool == "mean":
        rows = [jnp.mean(xn[i * seq:(i + 1) * seq, :], axis=0, keepdims=True)
                for i in range(batch)]
    else:                                                     # 'cls' token (row 0)
        rows = [xn[i * seq:i * seq + 1, :] for i in range(batch)]
    pooled = jnp.concatenate(rows, axis=0)                    # (batch, dim)
    logits = jnp.dot(pooled.astype(cdt), w_head_ref[...],
                     preferred_element_type=f32) + b_head_ref[...]
    o_ref[...] = logits.astype(o_ref.dtype)


# ----------------------------------------------------------------------------
# wrapper: one pallas_call for the whole network
# ----------------------------------------------------------------------------
def vitbn_forward(params, x_img, *, patch, heads, dim_head, pool="cls"):
    b, c, H, W = x_img.shape
    ph, pw = H // patch, W // patch
    n_patches = ph * pw
    seq = n_patches + 1
    scale = float(dim_head) ** -0.5
    depth = params["w_qkv"].shape[0]
    num_classes = params["w_head"].shape[1]

    # 'b c (h p1) (w p2) -> b (h w) (p1 p2 c)'  (one-time layout op in XLA)
    patches = (x_img.reshape(b, c, ph, patch, pw, patch)
               .transpose(0, 2, 4, 3, 5, 1)
               .reshape(b * n_patches, patch * patch * c))

    kernel = functools.partial(
        _vitbn_kernel, batch=b, n_patches=n_patches, depth=depth, heads=heads,
        dim_head=dim_head, scale=scale, pool=pool)

    return pl.pallas_call(
        kernel,
        in_specs=[_VMEM] * 14 + [_SMEM] * 8,
        out_specs=_VMEM,
        out_shape=jax.ShapeDtypeStruct((b, num_classes), jnp.float32),
    )(patches,
      params["w_patch"], params["b_patch"], params["cls"], params["pos"],
      params["w_qkv"], params["w_o"], params["b_o"],
      params["ff_w1"], params["ff_b1"], params["ff_w2"], params["ff_b2"],
      params["w_head"], params["b_head"],
      params["patch_g"], params["patch_beta"],
      params["attn_g"], params["attn_beta"], params["ff_g"], params["ff_beta"],
      params["final_g"], params["final_beta"])


# ----------------------------------------------------------------------------
# parameter construction (plain JAX, outside the kernel)
# ----------------------------------------------------------------------------
def posemb_sincos_1d(h, dim, temperature=10000.0):
    x = jnp.arange(h, dtype=jnp.float32)
    omega = jnp.arange(1, dim // 2 + 1, dtype=jnp.float32) / (dim // 2)
    omega = 1.0 / (temperature ** omega)
    xo = x[:, None] * omega[None, :]
    return jnp.concatenate([jnp.sin(xo), jnp.cos(xo)], axis=1)   # (h, dim)


def init_params(key, *, patch_dim, dim, depth, heads, dim_head, mlp_dim,
                num_classes, num_patches, wdtype=jnp.bfloat16):
    latent = heads * dim_head
    seq = num_patches + 1
    ks = jax.random.split(key, 12)

    def w(k, shape):
        # matmul weights fed to the MXU as bf16 (f32 accumulation in-kernel)
        return (0.02 * jax.random.normal(k, shape, jnp.float32)).astype(wdtype)

    def bvec(k, shape):
        # biases stay f32, stored as (.., 1, d) rows for in-kernel broadcast
        return 0.02 * jax.random.normal(k, shape, jnp.float32)

    return {
        # to_patch_embedding
        "w_patch": w(ks[0], (patch_dim, dim)),
        "b_patch": bvec(ks[1], (1, dim)),
        # cls token + sincos positional embedding (pos_emb='pe1d')
        "cls": jax.random.normal(ks[2], (1, dim), jnp.float32),
        "pos": posemb_sincos_1d(seq, dim),
        # transformer layers, stacked along depth
        "w_qkv": w(ks[3], (depth, dim, 3 * latent)),          # bias=False
        "w_o": w(ks[4], (depth, latent, dim)),
        "b_o": bvec(ks[5], (depth, 1, dim)),
        "ff_w1": w(ks[6], (depth, dim, mlp_dim)),
        "ff_b1": bvec(ks[7], (depth, 1, mlp_dim)),
        "ff_w2": w(ks[8], (depth, mlp_dim, dim)),
        "ff_b2": bvec(ks[9], (depth, 1, dim)),
        # classifier head
        "w_head": w(ks[10], (dim, num_classes)),
        "b_head": bvec(ks[11], (1, num_classes)),
        # BatchNorm2d(1) affine params (gamma=1, beta=0), SMEM scalars
        "patch_g": jnp.ones((2,), jnp.float32),
        "patch_beta": jnp.zeros((2,), jnp.float32),
        "attn_g": jnp.ones((depth,), jnp.float32),
        "attn_beta": jnp.zeros((depth,), jnp.float32),
        "ff_g": jnp.ones((depth,), jnp.float32),
        "ff_beta": jnp.zeros((depth,), jnp.float32),
        "final_g": jnp.ones((1,), jnp.float32),
        "final_beta": jnp.zeros((1,), jnp.float32),
    }


# ----------------------------------------------------------------------------
if __name__ == "__main__":
    # small ViTBN config (pos_emb='pe1d', pool='cls', dropout=0.0)
    IMAGE_SIZE, PATCH_SIZE, CHANNELS = 16, 4, 3
    DIM, DEPTH, HEADS, DIM_HEAD, MLP_DIM = 32, 2, 2, 16, 64
    NUM_CLASSES = 10
    POOL = "cls"
    BATCH = 2
    # TODO(synk): pos_emb='learn' branch not exercised here (only 'pe1d' path built).

    num_patches = (IMAGE_SIZE // PATCH_SIZE) ** 2
    patch_dim = CHANNELS * PATCH_SIZE * PATCH_SIZE

    root = jax.random.PRNGKey(0)
    k_param, k_x = jax.random.split(root)

    params = init_params(
        k_param, patch_dim=patch_dim, dim=DIM, depth=DEPTH, heads=HEADS,
        dim_head=DIM_HEAD, mlp_dim=MLP_DIM, num_classes=NUM_CLASSES,
        num_patches=num_patches)

    x = jax.random.normal(k_x, (BATCH, CHANNELS, IMAGE_SIZE, IMAGE_SIZE),
                          jnp.float32)

    fwd = jax.jit(functools.partial(
        vitbn_forward, patch=PATCH_SIZE, heads=HEADS, dim_head=DIM_HEAD,
        pool=POOL))

    logits = jax.block_until_ready(fwd(params, x))
    assert logits.shape == (BATCH, NUM_CLASSES)
    assert bool(jnp.all(jnp.isfinite(logits)))
    print("KERNEL_OK")
</pallas_src>

<mosaic_0001>
module attributes {stable_mosaic.version = 11 : i64} {
  func.func @_vitbn_kernel(%arg0: memref<32x48xf32, #tpu.memory_space<vmem>>, %arg1: memref<48x32xbf16, #tpu.memory_space<vmem>>, %arg2: memref<1x32xf32, #tpu.memory_space<vmem>>, %arg3: memref<1x32xf32, #tpu.memory_space<vmem>>, %arg4: memref<17x32xf32, #tpu.memory_space<vmem>>, %arg5: memref<2x32x96xbf16, #tpu.memory_space<vmem>>, %arg6: memref<2x32x32xbf16, #tpu.memory_space<vmem>>, %arg7: memref<2x1x32xf32, #tpu.memory_space<vmem>>, %arg8: memref<2x32x64xbf16, #tpu.memory_space<vmem>>, %arg9: memref<2x1x64xf32, #tpu.memory_space<vmem>>, %arg10: memref<2x64x32xbf16, #tpu.memory_space<vmem>>, %arg11: memref<2x1x32xf32, #tpu.memory_space<vmem>>, %arg12: memref<32x10xbf16, #tpu.memory_space<vmem>>, %arg13: memref<1x10xf32, #tpu.memory_space<vmem>>, %arg14: memref<2xf32, #tpu.memory_space<smem>>, %arg15: memref<2xf32, #tpu.memory_space<smem>>, %arg16: memref<2xf32, #tpu.memory_space<smem>>, %arg17: memref<2xf32, #tpu.memory_space<smem>>, %arg18: memref<2xf32, #tpu.memory_space<smem>>, %arg19: memref<2xf32, #tpu.memory_space<smem>>, %arg20: memref<1xf32, #tpu.memory_space<smem>>, %arg21: memref<1xf32, #tpu.memory_space<smem>>, %arg22: memref<2x10xf32, #tpu.memory_space<vmem>>) attributes {dimension_semantics = [], scalar_prefetch = 0 : i64, scratch_operands = 0 : i64, tpu.core_type = #tpu.core_type<tc>} {
    %c0 = arith.constant 0 : index
    %c0_0 = arith.constant 0 : index
    %0 = vector.load %arg0[%c0, %c0_0] : memref<32x48xf32, #tpu.memory_space<vmem>>, vector<32x48xf32>
    %c0_1 = arith.constant 0 : index
    %1 = memref.load %arg14[%c0_1] : memref<2xf32, #tpu.memory_space<smem>>
    %c0_2 = arith.constant 0 : index
    %2 = memref.load %arg15[%c0_2] : memref<2xf32, #tpu.memory_space<smem>>
    %3 = vector.shape_cast %0 : vector<32x48xf32> to vector<1x32x48xf32>
    %cst = arith.constant dense<0.000000e+00> : vector<1xf32>
    %4 = vector.multi_reduction <add>, %3, %cst [1, 2] : vector<1x32x48xf32> to vector<1xf32>
    %5 = vector.shape_cast %4 : vector<1xf32> to vector<1x1x1xf32>
    %6 = vector.extract %5[0, 0, 0] : f32 from vector<1x1x1xf32>
    %7 = vector.broadcast %6 : f32 to vector<1x1xf32>
    %cst_3 = arith.constant 1.536000e+03 : f32
    %8 = vector.broadcast %cst_3 : f32 to vector<1x1xf32>
    %9 = arith.divf %7, %8 : vector<1x1xf32>
    %10 = vector.broadcast %9 : vector<1x1xf32> to vector<32x48xf32>
    %11 = arith.subf %0, %10 : vector<32x48xf32>
    %12 = arith.mulf %11, %11 : vector<32x48xf32>
    %13 = vector.shape_cast %12 : vector<32x48xf32> to vector<1x32x48xf32>
    %cst_4 = arith.constant dense<0.000000e+00> : vector<1xf32>
    %14 = vector.multi_reduction <add>, %13, %cst_4 [1, 2] : vector<1x32x48xf32> to vector<1xf32>
    %15 = vector.shape_cast %14 : vector<1xf32> to vector<1x1x1xf32>
    %16 = vector.extract %15[0, 0, 0] : f32 from vector<1x1x1xf32>
    %17 = vector.broadcast %16 : f32 to vector<1x1xf32>
    %cst_5 = arith.constant 1.536000e+03 : f32
    %18 = vector.broadcast %cst_5 : f32 to vector<1x1xf32>
    %19 = arith.divf %17, %18 : vector<1x1xf32>
    %20 = vector.broadcast %9 : vector<1x1xf32> to vector<32x48xf32>
    %21 = arith.subf %0, %20 : vector<32x48xf32>
    %cst_6 = arith.constant 9.99999974E-6 : f32
    %22 = vector.broadcast %cst_6 : f32 to vector<1x1xf32>
    %23 = arith.addf %19, %22 : vector<1x1xf32>
    %24 = math.rsqrt %23 : vector<1x1xf32>
    %25 = vector.broadcast %24 : vector<1x1xf32> to vector<32x48xf32>
    %26 = arith.mulf %21, %25 : vector<32x48xf32>
    %27 = vector.broadcast %1 : f32 to vector<32x48xf32>
    %28 = arith.mulf %26, %27 : vector<32x48xf32>
    %29 = vector.broadcast %2 : f32 to vector<32x48xf32>
    %30 = arith.addf %28, %29 : vector<32x48xf32>
    %31 = arith.truncf %30 : vector<32x48xf32> to vector<32x48xbf16>
    %c0_7 = arith.constant 0 : index
    %c0_8 = arith.constant 0 : index
    %32 = vector.load %arg1[%c0_7, %c0_8] : memref<48x32xbf16, #tpu.memory_space<vmem>>, vector<48x32xbf16>
    %cst_9 = arith.constant dense<0.000000e+00> : vector<32x32xf32>
    %33 = tpu.matmul %31, %32, %cst_9 {dimension_numbers = #tpu.dot_dimension_numbers<[1], [0], [0], [1], [0, 0, 1, 1], [], []>} : vector<32x48xbf16>, vector<48x32xbf16>, vector<32x32xf32> -> vector<32x32xf32>
    %c0_10 = arith.constant 0 : index
    %c0_11 = arith.constant 0 : index
    %34 = vector.load %arg2[%c0_10, %c0_11] : memref<1x32xf32, #tpu.memory_space<vmem>>, vector<1x32xf32>
    %35 = vector.broadcast %34 : vector<1x32xf32> to vector<32x32xf32>
    %36 = arith.addf %33, %35 : vector<32x32xf32>
    %c1 = arith.constant 1 : index
    %37 = memref.load %arg14[%c1] : memref<2xf32, #tpu.memory_space<smem>>
    %c1_12 = arith.constant 1 : index
    %38 = memref.load %arg15[%c1_12] : memref<2xf32, #tpu.memory_space<smem>>
    %39 = vector.shape_cast %36 : vector<32x32xf32> to vector<1x32x32xf32>
    %cst_13 = arith.constant dense<0.000000e+00> : vector<1xf32>
    %40 = vector.multi_reduction <add>, %39, %cst_13 [1, 2] : vector<1x32x32xf32> to vector<1xf32>
    %41 = vector.shape_cast %40 : vector<1xf32> to vector<1x1x1xf32>
    %42 = vector.extract %41[0, 0, 0] : f32 from vector<1x1x1xf32>
    %43 = vector.broadcast %42 : f32 to vector<1x1xf32>
    %cst_14 = arith.constant 1.024000e+03 : f32
    %44 = vector.broadcast %cst_14 : f32 to vector<1x1xf32>
    %45 = arith.divf %43, %44 : vector<1x1xf32>
    %46 = vector.broadcast %45 : vector<1x1xf32> to vector<32x32xf32>
    %47 = arith.subf %36, %46 : vector<32x32xf32>
    %48 = arith.mulf %47, %47 : vector<32x32xf32>
    %49 = vector.shape_cast %48 : vector<32x32xf32> to vector<1x32x32xf32>
    %cst_15 = arith.constant dense<0.000000e+00> : vector<1xf32>
    %50 = vector.multi_reduction <add>, %49, %cst_15 [1, 2] : vector<1x32x32xf32> to vector<1xf32>
    %51 = vector.shape_cast %50 : vector<1xf32> to vector<1x1x1xf32>
    %52 = vector.extract %51[0, 0, 0] : f32 from vector<1x1x1xf32>
    %53 = vector.broadcast %52 : f32 to vector<1x1xf32>
    %cst_16 = arith.constant 1.024000e+03 : f32
    %54 = vector.broadcast %cst_16 : f32 to vector<1x1xf32>
    %55 = arith.divf %53, %54 : vector<1x1xf32>
    %56 = vector.broadcast %45 : vector<1x1xf32> to vector<32x32xf32>
    %57 = arith.subf %36, %56 : vector<32x32xf32>
    %cst_17 = arith.constant 9.99999974E-6 : f32
    %58 = vector.broadcast %cst_17 : f32 to vector<1x1xf32>
    %59 = arith.addf %55, %58 : vector<1x1xf32>
    %60 = math.rsqrt %59 : vector<1x1xf32>
    %61 = vector.broadcast %60 : vector<1x1xf32> to vector<32x32xf32>
    %62 = arith.mulf %57, %61 : vector<32x32xf32>
    %63 = vector.broadcast %37 : f32 to vector<32x32xf32>
    %64 = arith.mulf %62, %63 : vector<32x32xf32>
    %65 = vector.broadcast %38 : f32 to vector<32x32xf32>
    %66 = arith.addf %64, %65 : vector<32x32xf32>
    %c0_18 = arith.constant 0 : index
    %c0_19 = arith.constant 0 : index
    %67 = vector.load %arg3[%c0_18, %c0_19] : memref<1x32xf32, #tpu.memory_space<vmem>>, vector<1x32xf32>
    %c0_20 = arith.constant 0 : index
    %c0_21 = arith.constant 0 : index
    %68 = vector.load %arg4[%c0_20, %c0_21] : memref<17x32xf32, #tpu.memory_space<vmem>>, vector<17x32xf32>
    %69 = vector.extract_strided_slice %66 {offsets = [0, 0], sizes = [16, 32], strides = [1, 1]} : vector<32x32xf32> to vector<16x32xf32>
    %70 = tpu.concatenate %67, %69 in 0 : vector<1x32xf32>, vector<16x32xf32> -> vector<17x32xf32>
    %71 = arith.addf %70, %68 : vector<17x32xf32>
    %72 = vector.extract_strided_slice %66 {offsets = [16, 0], sizes = [16, 32], strides = [1, 1]} : vector<32x32xf32> to vector<16x32xf32>
    %73 = tpu.concatenate %67, %72 in 0 : vector<1x32xf32>, vector<16x32xf32> -> vector<17x32xf32>
    %74 = arith.addf %73, %68 : vector<17x32xf32>
    %75 = tpu.concatenate %71, %74 in 0 : vector<17x32xf32>, vector<17x32xf32> -> vector<34x32xf32>
    %c0_22 = arith.constant 0 : index
    %76 = memref.load %arg16[%c0_22] : memref<2xf32, #tpu.memory_space<smem>>
    %c0_23 = arith.constant 0 : index
    %77 = memref.load %arg17[%c0_23] : memref<2xf32, #tpu.memory_space<smem>>
    %78 = vector.shape_cast %75 : vector<34x32xf32> to vector<1x34x32xf32>
    %cst_24 = arith.constant dense<0.000000e+00> : vector<1xf32>
    %79 = vector.multi_reduction <add>, %78, %cst_24 [1, 2] : vector<1x34x32xf32> to vector<1xf32>
    %80 = vector.shape_cast %79 : vector<1xf32> to vector<1x1x1xf32>
    %81 = vector.extract %80[0, 0, 0] : f32 from vector<1x1x1xf32>
    %82 = vector.broadcast %81 : f32 to vector<1x1xf32>
    %cst_25 = arith.constant 1.088000e+03 : f32
    %83 = vector.broadcast %cst_25 : f32 to vector<1x1xf32>
    %84 = arith.divf %82, %83 : vector<1x1xf32>
    %85 = vector.broadcast %84 : vector<1x1xf32> to vector<34x32xf32>
    %86 = arith.subf %75, %85 : vector<34x32xf32>
    %87 = arith.mulf %86, %86 : vector<34x32xf32>
    %88 = vector.shape_cast %87 : vector<34x32xf32> to vector<1x34x32xf32>
    %cst_26 = arith.constant dense<0.000000e+00> : vector<1xf32>
    %89 = vector.multi_reduction <add>, %88, %cst_26 [1, 2] : vector<1x34x32xf32> to vector<1xf32>
    %90 = vector.shape_cast %89 : vector<1xf32> to vector<1x1x1xf32>
    %91 = vector.extract %90[0, 0, 0] : f32 from vector<1x1x1xf32>
    %92 = vector.broadcast %91 : f32 to vector<1x1xf32>
    %cst_27 = arith.constant 1.088000e+03 : f32
    %93 = vector.broadcast %cst_27 : f32 to vector<1x1xf32>
    %94 = arith.divf %92, %93 : vector<1x1xf32>
    %95 = vector.broadcast %84 : vector<1x1xf32> to vector<34x32xf32>
    %96 = arith.subf %75, %95 : vector<34x32xf32>
    %cst_28 = arith.constant 9.99999974E-6 : f32
    %97 = vector.broadcast %cst_28 : f32 to vector<1x1xf32>
    %98 = arith.addf %94, %97 : vector<1x1xf32>
    %99 = math.rsqrt %98 : vector<1x1xf32>
    %100 = vector.broadcast %99 : vector<1x1xf32> to vector<34x32xf32>
    %101 = arith.mulf %96, %100 : vector<34x32xf32>
    %102 = vector.broadcast %76 : f32 to vector<34x32xf32>
    %103 = arith.mulf %101, %102 : vector<34x32xf32>
    %104 = vector.broadcast %77 : f32 to vector<34x32xf32>
    %105 = arith.addf %103, %104 : vector<34x32xf32>
    %106 = arith.truncf %105 : vector<34x32xf32> to vector<34x32xbf16>
    %c0_29 = arith.constant 0 : index
    %c0_30 = arith.constant 0 : index
    %c0_31 = arith.constant 0 : index
    %107 = vector.load %arg5[%c0_29, %c0_30, %c0_31] : memref<2x32x96xbf16, #tpu.memory_space<vmem>>, vector<1x32x96xbf16>
    %108 = vector.shape_cast %107 : vector<1x32x96xbf16> to vector<32x96xbf16>
    %cst_32 = arith.constant dense<0.000000e+00> : vector<34x96xf32>
    %109 = tpu.matmul %106, %108, %cst_32 {dimension_numbers = #tpu.dot_dimension_numbers<[1], [0], [0], [1], [0, 0, 1, 1], [], []>} : vector<34x32xbf16>, vector<32x96xbf16>, vector<34x96xf32> -> vector<34x96xf32>
    %110 = vector.extract_strided_slice %109 {offsets = [0, 0], sizes = [17, 16], strides = [1, 1]} : vector<34x96xf32> to vector<17x16xf32>
    %111 = vector.extract_strided_slice %109 {offsets = [0, 32], sizes = [17, 16], strides = [1, 1]} : vector<34x96xf32> to vector<17x16xf32>
    %112 = vector.extract_strided_slice %109 {offsets = [0, 64], sizes = [17, 16], strides = [1, 1]} : vector<34x96xf32> to vector<17x16xf32>
    %cst_33 = arith.constant dense<0.000000e+00> : vector<17x17xf32>
    %113 = tpu.matmul %110, %111, %cst_33 {dimension_numbers = #tpu.dot_dimension_numbers<[1], [1], [0], [0], [0, 0, 1, 0], [], []>} : vector<17x16xf32>, vector<17x16xf32>, vector<17x17xf32> -> vector<17x17xf32>
    %cst_34 = arith.constant 2.500000e-01 : f32
    %114 = vector.broadcast %cst_34 : f32 to vector<17x17xf32>
    %115 = arith.mulf %113, %114 : vector<17x17xf32>
    %cst_35 = arith.constant dense<0xFF800000> : vector<17xf32>
    %116 = vector.multi_reduction <maximumf>, %115, %cst_35 [1] : vector<17x17xf32> to vector<17xf32>
    %117 = vector.shape_cast %116 : vector<17xf32> to vector<17x1xf32>
    %118 = vector.broadcast %117 : vector<17x1xf32> to vector<17x17xf32>
    %119 = arith.subf %115, %118 : vector<17x17xf32>
    %120 = math.exp %119 : vector<17x17xf32>
    %cst_36 = arith.constant dense<0.000000e+00> : vector<17xf32>
    %121 = vector.multi_reduction <add>, %120, %cst_36 [1] : vector<17x17xf32> to vector<17xf32>
    %122 = vector.shape_cast %121 : vector<17xf32> to vector<17x1xf32>
    %123 = tpu.reciprocal %122 {approx = true} : vector<17x1xf32> -> vector<17x1xf32>
    %124 = vector.broadcast %123 : vector<17x1xf32> to vector<17x17xf32>
    %125 = arith.mulf %120, %124 : vector<17x17xf32>
    %cst_37 = arith.constant dense<0.000000e+00> : vector<17x16xf32>
    %126 = tpu.matmul %125, %112, %cst_37 {dimension_numbers = #tpu.dot_dimension_numbers<[1], [0], [0], [1], [0, 0, 1, 1], [], []>} : vector<17x17xf32>, vector<17x16xf32>, vector<17x16xf32> -> vector<17x16xf32>
    %127 = vector.extract_strided_slice %109 {offsets = [0, 16], sizes = [17, 16], strides = [1, 1]} : vector<34x96xf32> to vector<17x16xf32>
    %128 = vector.extract_strided_slice %109 {offsets = [0, 48], sizes = [17, 16], strides = [1, 1]} : vector<34x96xf32> to vector<17x16xf32>
    %129 = vector.extract_strided_slice %109 {offsets = [0, 80], sizes = [17, 16], strides = [1, 1]} : vector<34x96xf32> to vector<17x16xf32>
    %cst_38 = arith.constant dense<0.000000e+00> : vector<17x17xf32>
    %130 = tpu.matmul %127, %128, %cst_38 {dimension_numbers = #tpu.dot_dimension_numbers<[1], [1], [0], [0], [0, 0, 1, 0], [], []>} : vector<17x16xf32>, vector<17x16xf32>, vector<17x17xf32> -> vector<17x17xf32>
    %cst_39 = arith.constant 2.500000e-01 : f32
    %131 = vector.broadcast %cst_39 : f32 to vector<17x17xf32>
    %132 = arith.mulf %130, %131 : vector<17x17xf32>
    %cst_40 = arith.constant dense<0xFF800000> : vector<17xf32>
    %133 = vector.multi_reduction <maximumf>, %132, %cst_40 [1] : vector<17x17xf32> to vector<17xf32>
    %134 = vector.shape_cast %133 : vector<17xf32> to vector<17x1xf32>
    %135 = vector.broadcast %134 : vector<17x1xf32> to vector<17x17xf32>
    %136 = arith.subf %132, %135 : vector<17x17xf32>
    %137 = math.exp %136 : vector<17x17xf32>
    %cst_41 = arith.constant dense<0.000000e+00> : vector<17xf32>
    %138 = vector.multi_reduction <add>, %137, %cst_41 [1] : vector<17x17xf32> to vector<17xf32>
    %139 = vector.shape_cast %138 : vector<17xf32> to vector<17x1xf32>
    %140 = tpu.reciprocal %139 {approx = true} : vector<17x1xf32> -> vector<17x1xf32>
    %141 = vector.broadcast %140 : vector<17x1xf32> to vector<17x17xf32>
    %142 = arith.mulf %137, %141 : vector<17x17xf32>
    %cst_42 = arith.constant dense<0.000000e+00> : vector<17x16xf32>
    %143 = tpu.matmul %142, %129, %cst_42 {dimension_numbers = #tpu.dot_dimension_numbers<[1], [0], [0], [1], [0, 0, 1, 1], [], []>} : vector<17x17xf32>, vector<17x16xf32>, vector<17x16xf32> -> vector<17x16xf32>
    %144 = tpu.concatenate %126, %143 in 1 : vector<17x16xf32>, vector<17x16xf32> -> vector<17x32xf32>
    %145 = vector.extract_strided_slice %109 {offsets = [17, 0], sizes = [17, 16], strides = [1, 1]} : vector<34x96xf32> to vector<17x16xf32>
    %146 = vector.extract_strided_slice %109 {offsets = [17, 32], sizes = [17, 16], strides = [1, 1]} : vector<34x96xf32> to vector<17x16xf32>
    %147 = vector.extract_strided_slice %109 {offsets = [17, 64], sizes = [17, 16], strides = [1, 1]} : vector<34x96xf32> to vector<17x16xf32>
    %cst_43 = arith.constant dense<0.000000e+00> : vector<17x17xf32>
    %148 = tpu.matmul %145, %146, %cst_43 {dimension_numbers = #tpu.dot_dimension_numbers<[1], [1], [0], [0], [0, 0, 1, 0], [], []>} : vector<17x16xf32>, vector<17x16xf32>, vector<17x17xf32> -> vector<17x17xf32>
    %cst_44 = arith.constant 2.500000e-01 : f32
    %149 = vector.broadcast %cst_44 : f32 to vector<17x17xf32>
    %150 = arith.mulf %148, %149 : vector<17x17xf32>
    %cst_45 = arith.constant dense<0xFF800000> : vector<17xf32>
    %151 = vector.multi_reduction <maximumf>, %150, %cst_45 [1] : vector<17x17xf32> to vector<17xf32>
    %152 = vector.shape_cast %151 : vector<17xf32> to vector<17x1xf32>
    %153 = vector.broadcast %152 : vector<17x1xf32> to vector<17x17xf32>
    %154 = arith.subf %150, %153 : vector<17x17xf32>
    %155 = math.exp %154 : vector<17x17xf32>
    %cst_46 = arith.constant dense<0.000000e+00> : vector<17xf32>
    %156 = vector.multi_reduction <add>, %155, %cst_46 [1] : vector<17x17xf32> to vector<17xf32>
    %157 = vector.shape_cast %156 : vector<17xf32> to vector<17x1xf32>
    %158 = tpu.reciprocal %157 {approx = true} : vector<17x1xf32> -> vector<17x1xf32>
    %159 = vector.broadcast %158 : vector<17x1xf32> to vector<17x17xf32>
    %160 = arith.mulf %155, %159 : vector<17x17xf32>
    %cst_47 = arith.constant dense<0.000000e+00> : vector<17x16xf32>
    %161 = tpu.matmul %160, %147, %cst_47 {dimension_numbers = #tpu.dot_dimension_numbers<[1], [0], [0], [1], [0, 0, 1, 1], [], []>} : vector<17x17xf32>, vector<17x16xf32>, vector<17x16xf32> -> vector<17x16xf32>
    %162 = vector.extract_strided_slice %109 {offsets = [17, 16], sizes = [17, 16], strides = [1, 1]} : vector<34x96xf32> to vector<17x16xf32>
    %163 = vector.extract_strided_slice %109 {offsets = [17, 48], sizes = [17, 16], strides = [1, 1]} : vector<34x96xf32> to vector<17x16xf32>
    %164 = vector.extract_strided_slice %109 {offsets = [17, 80], sizes = [17, 16], strides = [1, 1]} : vector<34x96xf32> to vector<17x16xf32>
    %cst_48 = arith.constant dense<0.000000e+00> : vector<17x17xf32>
    %165 = tpu.matmul %162, %163, %cst_48 {dimension_numbers = #tpu.dot_dimension_numbers<[1], [1], [0], [0], [0, 0, 1, 0], [], []>} : vector<17x16xf32>, vector<17x16xf32>, vector<17x17xf32> -> vector<17x17xf32>
    %cst_49 = arith.constant 2.500000e-01 : f32
    %166 = vector.broadcast %cst_49 : f32 to vector<17x17xf32>
    %167 = arith.mulf %165, %166 : vector<17x17xf32>
    %cst_50 = arith.constant dense<0xFF800000> : vector<17xf32>
    %168 = vector.multi_reduction <maximumf>, %167, %cst_50 [1] : vector<17x17xf32> to vector<17xf32>
    %169 = vector.shape_cast %168 : vector<17xf32> to vector<17x1xf32>
    %170 = vector.broadcast %169 : vector<17x1xf32> to vector<17x17xf32>
    %171 = arith.subf %167, %170 : vector<17x17xf32>
    %172 = math.exp %171 : vector<17x17xf32>
    %cst_51 = arith.constant dense<0.000000e+00> : vector<17xf32>
    %173 = vector.multi_reduction <add>, %172, %cst_51 [1] : vector<17x17xf32> to vector<17xf32>
    %174 = vector.shape_cast %173 : vector<17xf32> to vector<17x1xf32>
    %175 = tpu.reciprocal %174 {approx = true} : vector<17x1xf32> -> vector<17x1xf32>
    %176 = vector.broadcast %175 : vector<17x1xf32> to vector<17x17xf32>
    %177 = arith.mulf %172, %176 : vector<17x17xf32>
    %cst_52 = arith.constant dense<0.000000e+00> : vector<17x16xf32>
    %178 = tpu.matmul %177, %164, %cst_52 {dimension_numbers = #tpu.dot_dimension_numbers<[1], [0], [0], [1], [0, 0, 1, 1], [], []>} : vector<17x17xf32>, vector<17x16xf32>, vector<17x16xf32> -> vector<17x16xf32>
    %179 = tpu.concatenate %161, %178 in 1 : vector<17x16xf32>, vector<17x16xf32> -> vector<17x32xf32>
    %180 = tpu.concatenate %144, %179 in 0 : vector<17x32xf32>, vector<17x32xf32> -> vector<34x32xf32>
    %181 = arith.truncf %180 : vector<34x32xf32> to vector<34x32xbf16>
    %c0_53 = arith.constant 0 : index
    %c0_54 = arith.constant 0 : index
    %c0_55 = arith.constant 0 : index
    %182 = vector.load %arg6[%c0_53, %c0_54, %c0_55] : memref<2x32x32xbf16, #tpu.memory_space<vmem>>, vector<1x32x32xbf16>
    %183 = vector.shape_cast %182 : vector<1x32x32xbf16> to vector<32x32xbf16>
    %cst_56 = arith.constant dense<0.000000e+00> : vector<34x32xf32>
    %184 = tpu.matmul %181, %183, %cst_56 {dimension_numbers = #tpu.dot_dimension_numbers<[1], [0], [0], [1], [0, 0, 1, 1], [], []>} : vector<34x32xbf16>, vector<32x32xbf16>, vector<34x32xf32> -> vector<34x32xf32>
    %c0_57 = arith.constant 0 : index
    %c0_58 = arith.constant 0 : index
    %c0_59 = arith.constant 0 : index
    %185 = vector.load %arg7[%c0_57, %c0_58, %c0_59] : memref<2x1x32xf32, #tpu.memory_space<vmem>>, vector<1x1x32xf32>
    %186 = vector.shape_cast %185 : vector<1x1x32xf32> to vector<1x32xf32>
    %187 = vector.broadcast %186 : vector<1x32xf32> to vector<34x32xf32>
    %188 = arith.addf %184, %187 : vector<34x32xf32>
    %189 = arith.addf %75, %188 : vector<34x32xf32>
    %190 = arith.truncf %189 : vector<34x32xf32> to vector<34x32xbf16>
    %c0_60 = arith.constant 0 : index
    %c0_61 = arith.constant 0 : index
    %c0_62 = arith.constant 0 : index
    %191 = vector.load %arg8[%c0_60, %c0_61, %c0_62] : memref<2x32x64xbf16, #tpu.memory_space<vmem>>, vector<1x32x64xbf16>
    %192 = vector.shape_cast %191 : vector<1x32x64xbf16> to vector<32x64xbf16>
    %cst_63 = arith.constant dense<0.000000e+00> : vector<34x64xf32>
    %193 = tpu.matmul %190, %192, %cst_63 {dimension_numbers = #tpu.dot_dimension_numbers<[1], [0], [0], [1], [0, 0, 1, 1], [], []>} : vector<34x32xbf16>, vector<32x64xbf16>, vector<34x64xf32> -> vector<34x64xf32>
    %c0_64 = arith.constant 0 : index
    %c0_65 = arith.constant 0 : index
    %c0_66 = arith.constant 0 : index
    %194 = vector.load %arg9[%c0_64, %c0_65, %c0_66] : memref<2x1x64xf32, #tpu.memory_space<vmem>>, vector<1x1x64xf32>
    %195 = vector.shape_cast %194 : vector<1x1x64xf32> to vector<1x64xf32>
    %196 = vector.broadcast %195 : vector<1x64xf32> to vector<34x64xf32>
    %197 = arith.addf %193, %196 : vector<34x64xf32>
    %c0_67 = arith.constant 0 : index
    %198 = memref.load %arg18[%c0_67] : memref<2xf32, #tpu.memory_space<smem>>
    %c0_68 = arith.constant 0 : index
    %199 = memref.load %arg19[%c0_68] : memref<2xf32, #tpu.memory_space<smem>>
    %200 = vector.shape_cast %197 : vector<34x64xf32> to vector<1x34x64xf32>
    %cst_69 = arith.constant dense<0.000000e+00> : vector<1xf32>
    %201 = vector.multi_reduction <add>, %200, %cst_69 [1, 2] : vector<1x34x64xf32> to vector<1xf32>
    %202 = vector.shape_cast %201 : vector<1xf32> to vector<1x1x1xf32>
    %203 = vector.extract %202[0, 0, 0] : f32 from vector<1x1x1xf32>
    %204 = vector.broadcast %203 : f32 to vector<1x1xf32>
    %cst_70 = arith.constant 2.176000e+03 : f32
    %205 = vector.broadcast %cst_70 : f32 to vector<1x1xf32>
    %206 = arith.divf %204, %205 : vector<1x1xf32>
    %207 = vector.broadcast %206 : vector<1x1xf32> to vector<34x64xf32>
    %208 = arith.subf %197, %207 : vector<34x64xf32>
    %209 = arith.mulf %208, %208 : vector<34x64xf32>
    %210 = vector.shape_cast %209 : vector<34x64xf32> to vector<1x34x64xf32>
    %cst_71 = arith.constant dense<0.000000e+00> : vector<1xf32>
    %211 = vector.multi_reduction <add>, %210, %cst_71 [1, 2] : vector<1x34x64xf32> to vector<1xf32>
    %212 = vector.shape_cast %211 : vector<1xf32> to vector<1x1x1xf32>
    %213 = vector.extract %212[0, 0, 0] : f32 from vector<1x1x1xf32>
    %214 = vector.broadcast %213 : f32 to vector<1x1xf32>
    %cst_72 = arith.constant 2.176000e+03 : f32
    %215 = vector.broadcast %cst_72 : f32 to vector<1x1xf32>
    %216 = arith.divf %214, %215 : vector<1x1xf32>
    %217 = vector.broadcast %206 : vector<1x1xf32> to vector<34x64xf32>
    %218 = arith.subf %197, %217 : vector<34x64xf32>
    %cst_73 = arith.constant 9.99999974E-6 : f32
    %219 = vector.broadcast %cst_73 : f32 to vector<1x1xf32>
    %220 = arith.addf %216, %219 : vector<1x1xf32>
    %221 = math.rsqrt %220 : vector<1x1xf32>
    %222 = vector.broadcast %221 : vector<1x1xf32> to vector<34x64xf32>
    %223 = arith.mulf %218, %222 : vector<34x64xf32>
    %224 = vector.broadcast %198 : f32 to vector<34x64xf32>
    %225 = arith.mulf %223, %224 : vector<34x64xf32>
    %226 = vector.broadcast %199 : f32 to vector<34x64xf32>
    %227 = arith.addf %225, %226 : vector<34x64xf32>
    %cst_74 = arith.constant 5.000000e-01 : f32
    %228 = vector.broadcast %cst_74 : f32 to vector<34x64xf32>
    %229 = arith.mulf %228, %227 : vector<34x64xf32>
    %cst_75 = arith.constant 0.707106769 : f32
    %230 = vector.broadcast %cst_75 : f32 to vector<34x64xf32>
    %231 = arith.mulf %227, %230 : vector<34x64xf32>
    %cst_76 = arith.constant 0.000000e+00 : f32
    %232 = vector.broadcast %cst_76 : f32 to vector<34x64xf32>
    %233 = arith.cmpf oge, %231, %232 : vector<34x64xf32>
    %cst_77 = arith.constant 1.000000e+00 : f32
    %cst_78 = arith.constant -1.000000e+00 : f32
    %234 = vector.broadcast %cst_77 : f32 to vector<34x64xf32>
    %235 = vector.broadcast %cst_78 : f32 to vector<34x64xf32>
    %236 = arith.select %233, %234, %235 : vector<34x64xi1>, vector<34x64xf32>
    %237 = math.absf %231 : vector<34x64xf32>
    %cst_79 = arith.constant 0.327591091 : f32
    %238 = vector.broadcast %cst_79 : f32 to vector<34x64xf32>
    %239 = arith.mulf %238, %237 : vector<34x64xf32>
    %cst_80 = arith.constant 1.000000e+00 : f32
    %240 = vector.broadcast %cst_80 : f32 to vector<34x64xf32>
    %241 = arith.addf %240, %239 : vector<34x64xf32>
    %cst_81 = arith.constant 1.000000e+00 : f32
    %242 = vector.broadcast %cst_81 : f32 to vector<34x64xf32>
    %243 = arith.divf %242, %241 : vector<34x64xf32>
    %cst_82 = arith.constant 1.06140542 : f32
    %244 = vector.broadcast %cst_82 : f32 to vector<34x64xf32>
    %245 = arith.mulf %244, %243 : vector<34x64xf32>
    %cst_83 = arith.constant -1.45315206 : f32
    %246 = vector.broadcast %cst_83 : f32 to vector<34x64xf32>
    %247 = arith.addf %245, %246 : vector<34x64xf32>
    %248 = arith.mulf %247, %243 : vector<34x64xf32>
    %cst_84 = arith.constant 1.42141378 : f32
    %249 = vector.broadcast %cst_84 : f32 to vector<34x64xf32>
    %250 = arith.addf %248, %249 : vector<34x64xf32>
    %251 = arith.mulf %250, %243 : vector<34x64xf32>
    %cst_85 = arith.constant -0.284496725 : f32
    %252 = vector.broadcast %cst_85 : f32 to vector<34x64xf32>
    %253 = arith.addf %251, %252 : vector<34x64xf32>
    %254 = arith.mulf %253, %243 : vector<34x64xf32>
    %cst_86 = arith.constant 0.254829586 : f32
    %255 = vector.broadcast %cst_86 : f32 to vector<34x64xf32>
    %256 = arith.addf %254, %255 : vector<34x64xf32>
    %257 = arith.mulf %256, %243 : vector<34x64xf32>
    %cst_87 = arith.constant 0.000000e+00 : f32
    %258 = vector.broadcast %cst_87 : f32 to vector<34x64xf32>
    %259 = arith.subf %258, %237 : vector<34x64xf32>
    %260 = arith.mulf %259, %237 : vector<34x64xf32>
    %261 = math.exp %260 : vector<34x64xf32>
    %262 = arith.mulf %257, %261 : vector<34x64xf32>
    %cst_88 = arith.constant 1.000000e+00 : f32
    %263 = vector.broadcast %cst_88 : f32 to vector<34x64xf32>
    %264 = arith.subf %263, %262 : vector<34x64xf32>
    %265 = arith.mulf %236, %264 : vector<34x64xf32>
    %cst_89 = arith.constant 1.000000e+00 : f32
    %266 = vector.broadcast %cst_89 : f32 to vector<34x64xf32>
    %267 = arith.addf %266, %265 : vector<34x64xf32>
    %268 = arith.mulf %229, %267 : vector<34x64xf32>
    %269 = arith.truncf %268 : vector<34x64xf32> to vector<34x64xbf16>
    %c0_90 = arith.constant 0 : index
    %c0_91 = arith.constant 0 : index
    %c0_92 = arith.constant 0 : index
    %270 = vector.load %arg10[%c0_90, %c0_91, %c0_92] : memref<2x64x32xbf16, #tpu.memory_space<vmem>>, vector<1x64x32xbf16>
    %271 = vector.shape_cast %270 : vector<1x64x32xbf16> to vector<64x32xbf16>
    %cst_93 = arith.constant dense<0.000000e+00> : vector<34x32xf32>
    %272 = tpu.matmul %269, %271, %cst_93 {dimension_numbers = #tpu.dot_dimension_numbers<[1], [0], [0], [1], [0, 0, 1, 1], [], []>} : vector<34x64xbf16>, vector<64x32xbf16>, vector<34x32xf32> -> vector<34x32xf32>
    %c0_94 = arith.constant 0 : index
    %c0_95 = arith.constant 0 : index
    %c0_96 = arith.constant 0 : index
    %273 = vector.load %arg11[%c0_94, %c0_95, %c0_96] : memref<2x1x32xf32, #tpu.memory_space<vmem>>, vector<1x1x32xf32>
    %274 = vector.shape_cast %273 : vector<1x1x32xf32> to vector<1x32xf32>
    %275 = vector.broadcast %274 : vector<1x32xf32> to vector<34x32xf32>
    %276 = arith.addf %272, %275 : vector<34x32xf32>
    %277 = arith.addf %189, %276 : vector<34x32xf32>
    %c1_97 = arith.constant 1 : index
    %278 = memref.load %arg16[%c1_97] : memref<2xf32, #tpu.memory_space<smem>>
    %c1_98 = arith.constant 1 : index
    %279 = memref.load %arg17[%c1_98] : memref<2xf32, #tpu.memory_space<smem>>
    %280 = vector.shape_cast %277 : vector<34x32xf32> to vector<1x34x32xf32>
    %cst_99 = arith.constant dense<0.000000e+00> : vector<1xf32>
    %281 = vector.multi_reduction <add>, %280, %cst_99 [1, 2] : vector<1x34x32xf32> to vector<1xf32>
    %282 = vector.shape_cast %281 : vector<1xf32> to vector<1x1x1xf32>
    %283 = vector.extract %282[0, 0, 0] : f32 from vector<1x1x1xf32>
    %284 = vector.broadcast %283 : f32 to vector<1x1xf32>
    %cst_100 = arith.constant 1.088000e+03 : f32
    %285 = vector.broadcast %cst_100 : f32 to vector<1x1xf32>
    %286 = arith.divf %284, %285 : vector<1x1xf32>
    %287 = vector.broadcast %286 : vector<1x1xf32> to vector<34x32xf32>
    %288 = arith.subf %277, %287 : vector<34x32xf32>
    %289 = arith.mulf %288, %288 : vector<34x32xf32>
    %290 = vector.shape_cast %289 : vector<34x32xf32> to vector<1x34x32xf32>
    %cst_101 = arith.constant dense<0.000000e+00> : vector<1xf32>
    %291 = vector.multi_reduction <add>, %290, %cst_101 [1, 2] : vector<1x34x32xf32> to vector<1xf32>
    %292 = vector.shape_cast %291 : vector<1xf32> to vector<1x1x1xf32>
    %293 = vector.extract %292[0, 0, 0] : f32 from vector<1x1x1xf32>
    %294 = vector.broadcast %293 : f32 to vector<1x1xf32>
    %cst_102 = arith.constant 1.088000e+03 : f32
    %295 = vector.broadcast %cst_102 : f32 to vector<1x1xf32>
    %296 = arith.divf %294, %295 : vector<1x1xf32>
    %297 = vector.broadcast %286 : vector<1x1xf32> to vector<34x32xf32>
    %298 = arith.subf %277, %297 : vector<34x32xf32>
    %cst_103 = arith.constant 9.99999974E-6 : f32
    %299 = vector.broadcast %cst_103 : f32 to vector<1x1xf32>
    %300 = arith.addf %296, %299 : vector<1x1xf32>
    %301 = math.rsqrt %300 : vector<1x1xf32>
    %302 = vector.broadcast %301 : vector<1x1xf32> to vector<34x32xf32>
    %303 = arith.mulf %298, %302 : vector<34x32xf32>
    %304 = vector.broadcast %278 : f32 to vector<34x32xf32>
    %305 = arith.mulf %303, %304 : vector<34x32xf32>
    %306 = vector.broadcast %279 : f32 to vector<34x32xf32>
    %307 = arith.addf %305, %306 : vector<34x32xf32>
    %308 = arith.truncf %307 : vector<34x32xf32> to vector<34x32xbf16>
    %c1_104 = arith.constant 1 : index
    %c0_105 = arith.constant 0 : index
    %c0_106 = arith.constant 0 : index
    %309 = vector.load %arg5[%c1_104, %c0_105, %c0_106] : memref<2x32x96xbf16, #tpu.memory_space<vmem>>, vector<1x32x96xbf16>
    %310 = vector.shape_cast %309 : vector<1x32x96xbf16> to vector<32x96xbf16>
    %cst_107 = arith.constant dense<0.000000e+00> : vector<34x96xf32>
    %311 = tpu.matmul %308, %310, %cst_107 {dimension_numbers = #tpu.dot_dimension_numbers<[1], [0], [0], [1], [0, 0, 1, 1], [], []>} : vector<34x32xbf16>, vector<32x96xbf16>, vector<34x96xf32> -> vector<34x96xf32>
    %312 = vector.extract_strided_slice %311 {offsets = [0, 0], sizes = [17, 16], strides = [1, 1]} : vector<34x96xf32> to vector<17x16xf32>
    %313 = vector.extract_strided_slice %311 {offsets = [0, 32], sizes = [17, 16], strides = [1, 1]} : vector<34x96xf32> to vector<17x16xf32>
    %314 = vector.extract_strided_slice %311 {offsets = [0, 64], sizes = [17, 16], strides = [1, 1]} : vector<34x96xf32> to vector<17x16xf32>
    %cst_108 = arith.constant dense<0.000000e+00> : vector<17x17xf32>
    %315 = tpu.matmul %312, %313, %cst_108 {dimension_numbers = #tpu.dot_dimension_numbers<[1], [1], [0], [0], [0, 0, 1, 0], [], []>} : vector<17x16xf32>, vector<17x16xf32>, vector<17x17xf32> -> vector<17x17xf32>
    %cst_109 = arith.constant 2.500000e-01 : f32
    %316 = vector.broadcast %cst_109 : f32 to vector<17x17xf32>
    %317 = arith.mulf %315, %316 : vector<17x17xf32>
    %cst_110 = arith.constant dense<0xFF800000> : vector<17xf32>
    %318 = vector.multi_reduction <maximumf>, %317, %cst_110 [1] : vector<17x17xf32> to vector<17xf32>
    %319 = vector.shape_cast %318 : vector<17xf32> to vector<17x1xf32>
    %320 = vector.broadcast %319 : vector<17x1xf32> to vector<17x17xf32>
    %321 = arith.subf %317, %320 : vector<17x17xf32>
    %322 = math.exp %321 : vector<17x17xf32>
    %cst_111 = arith.constant dense<0.000000e+00> : vector<17xf32>
    %323 = vector.multi_reduction <add>, %322, %cst_111 [1] : vector<17x17xf32> to vector<17xf32>
    %324 = vector.shape_cast %323 : vector<17xf32> to vector<17x1xf32>
    %325 = tpu.reciprocal %324 {approx = true} : vector<17x1xf32> -> vector<17x1xf32>
    %326 = vector.broadcast %325 : vector<17x1xf32> to vector<17x17xf32>
    %327 = arith.mulf %322, %326 : vector<17x17xf32>
    %cst_112 = arith.constant dense<0.000000e+00> : vector<17x16xf32>
    %328 = tpu.matmul %327, %314, %cst_112 {dimension_numbers = #tpu.dot_dimension_numbers<[1], [0], [0], [1], [0, 0, 1, 1], [], []>} : vector<17x17xf32>, vector<17x16xf32>, vector<17x16xf32> -> vector<17x16xf32>
    %329 = vector.extract_strided_slice %311 {offsets = [0, 16], sizes = [17, 16], strides = [1, 1]} : vector<34x96xf32> to vector<17x16xf32>
    %330 = vector.extract_strided_slice %311 {offsets = [0, 48], sizes = [17, 16], strides = [1, 1]} : vector<34x96xf32> to vector<17x16xf32>
    %331 = vector.extract_strided_slice %311 {offsets = [0, 80], sizes = [17, 16], strides = [1, 1]} : vector<34x96xf32> to vector<17x16xf32>
    %cst_113 = arith.constant dense<0.000000e+00> : vector<17x17xf32>
    %332 = tpu.matmul %329, %330, %cst_113 {dimension_numbers = #tpu.dot_dimension_numbers<[1], [1], [0], [0], [0, 0, 1, 0], [], []>} : vector<17x16xf32>, vector<17x16xf32>, vector<17x17xf32> -> vector<17x17xf32>
    %cst_114 = arith.constant 2.500000e-01 : f32
    %333 = vector.broadcast %cst_114 : f32 to vector<17x17xf32>
    %334 = arith.mulf %332, %333 : vector<17x17xf32>
    %cst_115 = arith.constant dense<0xFF800000> : vector<17xf32>
    %335 = vector.multi_reduction <maximumf>, %334, %cst_115 [1] : vector<17x17xf32> to vector<17xf32>
    %336 = vector.shape_cast %335 : vector<17xf32> to vector<17x1xf32>
    %337 = vector.broadcast %336 : vector<17x1xf32> to vector<17x17xf32>
    %338 = arith.subf %334, %337 : vector<17x17xf32>
    %339 = math.exp %338 : vector<17x17xf32>
    %cst_116 = arith.constant dense<0.000000e+00> : vector<17xf32>
    %340 = vector.multi_reduction <add>, %339, %cst_116 [1] : vector<17x17xf32> to vector<17xf32>
    %341 = vector.shape_cast %340 : vector<17xf32> to vector<17x1xf32>
    %342 = tpu.reciprocal %341 {approx = true} : vector<17x1xf32> -> vector<17x1xf32>
    %343 = vector.broadcast %342 : vector<17x1xf32> to vector<17x17xf32>
    %344 = arith.mulf %339, %343 : vector<17x17xf32>
    %cst_117 = arith.constant dense<0.000000e+00> : vector<17x16xf32>
    %345 = tpu.matmul %344, %331, %cst_117 {dimension_numbers = #tpu.dot_dimension_numbers<[1], [0], [0], [1], [0, 0, 1, 1], [], []>} : vector<17x17xf32>, vector<17x16xf32>, vector<17x16xf32> -> vector<17x16xf32>
    %346 = tpu.concatenate %328, %345 in 1 : vector<17x16xf32>, vector<17x16xf32> -> vector<17x32xf32>
    %347 = vector.extract_strided_slice %311 {offsets = [17, 0], sizes = [17, 16], strides = [1, 1]} : vector<34x96xf32> to vector<17x16xf32>
    %348 = vector.extract_strided_slice %311 {offsets = [17, 32], sizes = [17, 16], strides = [1, 1]} : vector<34x96xf32> to vector<17x16xf32>
    %349 = vector.extract_strided_slice %311 {offsets = [17, 64], sizes = [17, 16], strides = [1, 1]} : vector<34x96xf32> to vector<17x16xf32>
    %cst_118 = arith.constant dense<0.000000e+00> : vector<17x17xf32>
    %350 = tpu.matmul %347, %348, %cst_118 {dimension_numbers = #tpu.dot_dimension_numbers<[1], [1], [0], [0], [0, 0, 1, 0], [], []>} : vector<17x16xf32>, vector<17x16xf32>, vector<17x17xf32> -> vector<17x17xf32>
    %cst_119 = arith.constant 2.500000e-01 : f32
    %351 = vector.broadcast %cst_119 : f32 to vector<17x17xf32>
    %352 = arith.mulf %350, %351 : vector<17x17xf32>
    %cst_120 = arith.constant dense<0xFF800000> : vector<17xf32>
    %353 = vector.multi_reduction <maximumf>, %352, %cst_120 [1] : vector<17x17xf32> to vector<17xf32>
    %354 = vector.shape_cast %353 : vector<17xf32> to vector<17x1xf32>
    %355 = vector.broadcast %354 : vector<17x1xf32> to vector<17x17xf32>
    %356 = arith.subf %352, %355 : vector<17x17xf32>
    %357 = math.exp %356 : vector<17x17xf32>
    %cst_121 = arith.constant dense<0.000000e+00> : vector<17xf32>
    %358 = vector.multi_reduction <add>, %357, %cst_121 [1] : vector<17x17xf32> to vector<17xf32>
    %359 = vector.shape_cast %358 : vector<17xf32> to vector<17x1xf32>
    %360 = tpu.reciprocal %359 {approx = true} : vector<17x1xf32> -> vector<17x1xf32>
    %361 = vector.broadcast %360 : vector<17x1xf32> to vector<17x17xf32>
    %362 = arith.mulf %357, %361 : vector<17x17xf32>
    %cst_122 = arith.constant dense<0.000000e+00> : vector<17x16xf32>
    %363 = tpu.matmul %362, %349, %cst_122 {dimension_numbers = #tpu.dot_dimension_numbers<[1], [0], [0], [1], [0, 0, 1, 1], [], []>} : vector<17x17xf32>, vector<17x16xf32>, vector<17x16xf32> -> vector<17x16xf32>
    %364 = vector.extract_strided_slice %311 {offsets = [17, 16], sizes = [17, 16], strides = [1, 1]} : vector<34x96xf32> to vector<17x16xf32>
    %365 = vector.extract_strided_slice %311 {offsets = [17, 48], sizes = [17, 16], strides = [1, 1]} : vector<34x96xf32> to vector<17x16xf32>
    %366 = vector.extract_strided_slice %311 {offsets = [17, 80], sizes = [17, 16], strides = [1, 1]} : vector<34x96xf32> to vector<17x16xf32>
    %cst_123 = arith.constant dense<0.000000e+00> : vector<17x17xf32>
    %367 = tpu.matmul %364, %365, %cst_123 {dimension_numbers = #tpu.dot_dimension_numbers<[1], [1], [0], [0], [0, 0, 1, 0], [], []>} : vector<17x16xf32>, vector<17x16xf32>, vector<17x17xf32> -> vector<17x17xf32>
    %cst_124 = arith.constant 2.500000e-01 : f32
    %368 = vector.broadcast %cst_124 : f32 to vector<17x17xf32>
    %369 = arith.mulf %367, %368 : vector<17x17xf32>
    %cst_125 = arith.constant dense<0xFF800000> : vector<17xf32>
    %370 = vector.multi_reduction <maximumf>, %369, %cst_125 [1] : vector<17x17xf32> to vector<17xf32>
    %371 = vector.shape_cast %370 : vector<17xf32> to vector<17x1xf32>
    %372 = vector.broadcast %371 : vector<17x1xf32> to vector<17x17xf32>
    %373 = arith.subf %369, %372 : vector<17x17xf32>
    %374 = math.exp %373 : vector<17x17xf32>
    %cst_126 = arith.constant dense<0.000000e+00> : vector<17xf32>
    %375 = vector.multi_reduction <add>, %374, %cst_126 [1] : vector<17x17xf32> to vector<17xf32>
    %376 = vector.shape_cast %375 : vector<17xf32> to vector<17x1xf32>
    %377 = tpu.reciprocal %376 {approx = true} : vector<17x1xf32> -> vector<17x1xf32>
    %378 = vector.broadcast %377 : vector<17x1xf32> to vector<17x17xf32>
    %379 = arith.mulf %374, %378 : vector<17x17xf32>
    %cst_127 = arith.constant dense<0.000000e+00> : vector<17x16xf32>
    %380 = tpu.matmul %379, %366, %cst_127 {dimension_numbers = #tpu.dot_dimension_numbers<[1], [0], [0], [1], [0, 0, 1, 1], [], []>} : vector<17x17xf32>, vector<17x16xf32>, vector<17x16xf32> -> vector<17x16xf32>
    %381 = tpu.concatenate %363, %380 in 1 : vector<17x16xf32>, vector<17x16xf32> -> vector<17x32xf32>
    %382 = tpu.concatenate %346, %381 in 0 : vector<17x32xf32>, vector<17x32xf32> -> vector<34x32xf32>
    %383 = arith.truncf %382 : vector<34x32xf32> to vector<34x32xbf16>
    %c1_128 = arith.constant 1 : index
    %c0_129 = arith.constant 0 : index
    %c0_130 = arith.constant 0 : index
    %384 = vector.load %arg6[%c1_128, %c0_129, %c0_130] : memref<2x32x32xbf16, #tpu.memory_space<vmem>>, vector<1x32x32xbf16>
    %385 = vector.shape_cast %384 : vector<1x32x32xbf16> to vector<32x32xbf16>
    %cst_131 = arith.constant dense<0.000000e+00> : vector<34x32xf32>
    %386 = tpu.matmul %383, %385, %cst_131 {dimension_numbers = #tpu.dot_dimension_numbers<[1], [0], [0], [1], [0, 0, 1, 1], [], []>} : vector<34x32xbf16>, vector<32x32xbf16>, vector<34x32xf32> -> vector<34x32xf32>
    %c1_132 = arith.constant 1 : index
    %c0_133 = arith.constant 0 : index
    %c0_134 = arith.constant 0 : index
    %387 = vector.load %arg7[%c1_132, %c0_133, %c0_134] : memref<2x1x32xf32, #tpu.memory_space<vmem>>, vector<1x1x32xf32>
    %388 = vector.shape_cast %387 : vector<1x1x32xf32> to vector<1x32xf32>
    %389 = vector.broadcast %388 : vector<1x32xf32> to vector<34x32xf32>
    %390 = arith.addf %386, %389 : vector<34x32xf32>
    %391 = arith.addf %277, %390 : vector<34x32xf32>
    %392 = arith.truncf %391 : vector<34x32xf32> to vector<34x32xbf16>
    %c1_135 = arith.constant 1 : index
    %c0_136 = arith.constant 0 : index
    %c0_137 = arith.constant 0 : index
    %393 = vector.load %arg8[%c1_135, %c0_136, %c0_137] : memref<2x32x64xbf16, #tpu.memory_space<vmem>>, vector<1x32x64xbf16>
    %394 = vector.shape_cast %393 : vector<1x32x64xbf16> to vector<32x64xbf16>
    %cst_138 = arith.constant dense<0.000000e+00> : vector<34x64xf32>
    %395 = tpu.matmul %392, %394, %cst_138 {dimension_numbers = #tpu.dot_dimension_numbers<[1], [0], [0], [1], [0, 0, 1, 1], [], []>} : vector<34x32xbf16>, vector<32x64xbf16>, vector<34x64xf32> -> vector<34x64xf32>
    %c1_139 = arith.constant 1 : index
    %c0_140 = arith.constant 0 : index
    %c0_141 = arith.constant 0 : index
    %396 = vector.load %arg9[%c1_139, %c0_140, %c0_141] : memref<2x1x64xf32, #tpu.memory_space<vmem>>, vector<1x1x64xf32>
    %397 = vector.shape_cast %396 : vector<1x1x64xf32> to vector<1x64xf32>
    %398 = vector.broadcast %397 : vector<1x64xf32> to vector<34x64xf32>
    %399 = arith.addf %395, %398 : vector<34x64xf32>
    %c1_142 = arith.constant 1 : index
    %400 = memref.load %arg18[%c1_142] : memref<2xf32, #tpu.memory_space<smem>>
    %c1_143 = arith.constant 1 : index
    %401 = memref.load %arg19[%c1_143] : memref<2xf32, #tpu.memory_space<smem>>
    %402 = vector.shape_cast %399 : vector<34x64xf32> to vector<1x34x64xf32>
    %cst_144 = arith.constant dense<0.000000e+00> : vector<1xf32>
    %403 = vector.multi_reduction <add>, %402, %cst_144 [1, 2] : vector<1x34x64xf32> to vector<1xf32>
    %404 = vector.shape_cast %403 : vector<1xf32> to vector<1x1x1xf32>
    %405 = vector.extract %404[0, 0, 0] : f32 from vector<1x1x1xf32>
    %406 = vector.broadcast %405 : f32 to vector<1x1xf32>
    %cst_145 = arith.constant 2.176000e+03 : f32
    %407 = vector.broadcast %cst_145 : f32 to vector<1x1xf32>
    %408 = arith.divf %406, %407 : vector<1x1xf32>
    %409 = vector.broadcast %408 : vector<1x1xf32> to vector<34x64xf32>
    %410 = arith.subf %399, %409 : vector<34x64xf32>
    %411 = arith.mulf %410, %410 : vector<34x64xf32>
    %412 = vector.shape_cast %411 : vector<34x64xf32> to vector<1x34x64xf32>
    %cst_146 = arith.constant dense<0.000000e+00> : vector<1xf32>
    %413 = vector.multi_reduction <add>, %412, %cst_146 [1, 2] : vector<1x34x64xf32> to vector<1xf32>
    %414 = vector.shape_cast %413 : vector<1xf32> to vector<1x1x1xf32>
    %415 = vector.extract %414[0, 0, 0] : f32 from vector<1x1x1xf32>
    %416 = vector.broadcast %415 : f32 to vector<1x1xf32>
    %cst_147 = arith.constant 2.176000e+03 : f32
    %417 = vector.broadcast %cst_147 : f32 to vector<1x1xf32>
    %418 = arith.divf %416, %417 : vector<1x1xf32>
    %419 = vector.broadcast %408 : vector<1x1xf32> to vector<34x64xf32>
    %420 = arith.subf %399, %419 : vector<34x64xf32>
    %cst_148 = arith.constant 9.99999974E-6 : f32
    %421 = vector.broadcast %cst_148 : f32 to vector<1x1xf32>
    %422 = arith.addf %418, %421 : vector<1x1xf32>
    %423 = math.rsqrt %422 : vector<1x1xf32>
    %424 = vector.broadcast %423 : vector<1x1xf32> to vector<34x64xf32>
    %425 = arith.mulf %420, %424 : vector<34x64xf32>
    %426 = vector.broadcast %400 : f32 to vector<34x64xf32>
    %427 = arith.mulf %425, %426 : vector<34x64xf32>
    %428 = vector.broadcast %401 : f32 to vector<34x64xf32>
    %429 = arith.addf %427, %428 : vector<34x64xf32>
    %cst_149 = arith.constant 5.000000e-01 : f32
    %430 = vector.broadcast %cst_149 : f32 to vector<34x64xf32>
    %431 = arith.mulf %430, %429 : vector<34x64xf32>
    %cst_150 = arith.constant 0.707106769 : f32
    %432 = vector.broadcast %cst_150 : f32 to vector<34x64xf32>
    %433 = arith.mulf %429, %432 : vector<34x64xf32>
    %cst_151 = arith.constant 0.000000e+00 : f32
    %434 = vector.broadcast %cst_151 : f32 to vector<34x64xf32>
    %435 = arith.cmpf oge, %433, %434 : vector<34x64xf32>
    %cst_152 = arith.constant 1.000000e+00 : f32
    %cst_153 = arith.constant -1.000000e+00 : f32
    %436 = vector.broadcast %cst_152 : f32 to vector<34x64xf32>
    %437 = vector.broadcast %cst_153 : f32 to vector<34x64xf32>
    %438 = arith.select %435, %436, %437 : vector<34x64xi1>, vector<34x64xf32>
    %439 = math.absf %433 : vector<34x64xf32>
    %cst_154 = arith.constant 0.327591091 : f32
    %440 = vector.broadcast %cst_154 : f32 to vector<34x64xf32>
    %441 = arith.mulf %440, %439 : vector<34x64xf32>
    %cst_155 = arith.constant 1.000000e+00 : f32
    %442 = vector.broadcast %cst_155 : f32 to vector<34x64xf32>
    %443 = arith.addf %442, %441 : vector<34x64xf32>
    %cst_156 = arith.constant 1.000000e+00 : f32
    %444 = vector.broadcast %cst_156 : f32 to vector<34x64xf32>
    %445 = arith.divf %444, %443 : vector<34x64xf32>
    %cst_157 = arith.constant 1.06140542 : f32
    %446 = vector.broadcast %cst_157 : f32 to vector<34x64xf32>
    %447 = arith.mulf %446, %445 : vector<34x64xf32>
    %cst_158 = arith.constant -1.45315206 : f32
    %448 = vector.broadcast %cst_158 : f32 to vector<34x64xf32>
    %449 = arith.addf %447, %448 : vector<34x64xf32>
    %450 = arith.mulf %449, %445 : vector<34x64xf32>
    %cst_159 = arith.constant 1.42141378 : f32
    %451 = vector.broadcast %cst_159 : f32 to vector<34x64xf32>
    %452 = arith.addf %450, %451 : vector<34x64xf32>
    %453 = arith.mulf %452, %445 : vector<34x64xf32>
    %cst_160 = arith.constant -0.284496725 : f32
    %454 = vector.broadcast %cst_160 : f32 to vector<34x64xf32>
    %455 = arith.addf %453, %454 : vector<34x64xf32>
    %456 = arith.mulf %455, %445 : vector<34x64xf32>
    %cst_161 = arith.constant 0.254829586 : f32
    %457 = vector.broadcast %cst_161 : f32 to vector<34x64xf32>
    %458 = arith.addf %456, %457 : vector<34x64xf32>
    %459 = arith.mulf %458, %445 : vector<34x64xf32>
    %cst_162 = arith.constant 0.000000e+00 : f32
    %460 = vector.broadcast %cst_162 : f32 to vector<34x64xf32>
    %461 = arith.subf %460, %439 : vector<34x64xf32>
    %462 = arith.mulf %461, %439 : vector<34x64xf32>
    %463 = math.exp %462 : vector<34x64xf32>
    %464 = arith.mulf %459, %463 : vector<34x64xf32>
    %cst_163 = arith.constant 1.000000e+00 : f32
    %465 = vector.broadcast %cst_163 : f32 to vector<34x64xf32>
    %466 = arith.subf %465, %464 : vector<34x64xf32>
    %467 = arith.mulf %438, %466 : vector<34x64xf32>
    %cst_164 = arith.constant 1.000000e+00 : f32
    %468 = vector.broadcast %cst_164 : f32 to vector<34x64xf32>
    %469 = arith.addf %468, %467 : vector<34x64xf32>
    %470 = arith.mulf %431, %469 : vector<34x64xf32>
    %471 = arith.truncf %470 : vector<34x64xf32> to vector<34x64xbf16>
    %c1_165 = arith.constant 1 : index
    %c0_166 = arith.constant 0 : index
    %c0_167 = arith.constant 0 : index
    %472 = vector.load %arg10[%c1_165, %c0_166, %c0_167] : memref<2x64x32xbf16, #tpu.memory_space<vmem>>, vector<1x64x32xbf16>
    %473 = vector.shape_cast %472 : vector<1x64x32xbf16> to vector<64x32xbf16>
    %cst_168 = arith.constant dense<0.000000e+00> : vector<34x32xf32>
    %474 = tpu.matmul %471, %473, %cst_168 {dimension_numbers = #tpu.dot_dimension_numbers<[1], [0], [0], [1], [0, 0, 1, 1], [], []>} : vector<34x64xbf16>, vector<64x32xbf16>, vector<34x32xf32> -> vector<34x32xf32>
    %c1_169 = arith.constant 1 : index
    %c0_170 = arith.constant 0 : index
    %c0_171 = arith.constant 0 : index
    %475 = vector.load %arg11[%c1_169, %c0_170, %c0_171] : memref<2x1x32xf32, #tpu.memory_space<vmem>>, vector<1x1x32xf32>
    %476 = vector.shape_cast %475 : vector<1x1x32xf32> to vector<1x32xf32>
    %477 = vector.broadcast %476 : vector<1x32xf32> to vector<34x32xf32>
    %478 = arith.addf %474, %477 : vector<34x32xf32>
    %479 = arith.addf %391, %478 : vector<34x32xf32>
    %c0_172 = arith.constant 0 : index
    %480 = memref.load %arg20[%c0_172] : memref<1xf32, #tpu.memory_space<smem>>
    %c0_173 = arith.constant 0 : index
    %481 = memref.load %arg21[%c0_173] : memref<1xf32, #tpu.memory_space<smem>>
    %482 = vector.shape_cast %479 : vector<34x32xf32> to vector<1x34x32xf32>
    %cst_174 = arith.constant dense<0.000000e+00> : vector<1xf32>
    %483 = vector.multi_reduction <add>, %482, %cst_174 [1, 2] : vector<1x34x32xf32> to vector<1xf32>
    %484 = vector.shape_cast %483 : vector<1xf32> to vector<1x1x1xf32>
    %485 = vector.extract %484[0, 0, 0] : f32 from vector<1x1x1xf32>
    %486 = vector.broadcast %485 : f32 to vector<1x1xf32>
    %cst_175 = arith.constant 1.088000e+03 : f32
    %487 = vector.broadcast %cst_175 : f32 to vector<1x1xf32>
    %488 = arith.divf %486, %487 : vector<1x1xf32>
    %489 = vector.broadcast %488 : vector<1x1xf32> to vector<34x32xf32>
    %490 = arith.subf %479, %489 : vector<34x32xf32>
    %491 = arith.mulf %490, %490 : vector<34x32xf32>
    %492 = vector.shape_cast %491 : vector<34x32xf32> to vector<1x34x32xf32>
    %cst_176 = arith.constant dense<0.000000e+00> : vector<1xf32>
    %493 = vector.multi_reduction <add>, %492, %cst_176 [1, 2] : vector<1x34x32xf32> to vector<1xf32>
    %494 = vector.shape_cast %493 : vector<1xf32> to vector<1x1x1xf32>
    %495 = vector.extract %494[0, 0, 0] : f32 from vector<1x1x1xf32>
    %496 = vector.broadcast %495 : f32 to vector<1x1xf32>
    %cst_177 = arith.constant 1.088000e+03 : f32
    %497 = vector.broadcast %cst_177 : f32 to vector<1x1xf32>
    %498 = arith.divf %496, %497 : vector<1x1xf32>
    %499 = vector.broadcast %488 : vector<1x1xf32> to vector<34x32xf32>
    %500 = arith.subf %479, %499 : vector<34x32xf32>
    %cst_178 = arith.constant 9.99999974E-6 : f32
    %501 = vector.broadcast %cst_178 : f32 to vector<1x1xf32>
    %502 = arith.addf %498, %501 : vector<1x1xf32>
    %503 = math.rsqrt %502 : vector<1x1xf32>
    %504 = vector.broadcast %503 : vector<1x1xf32> to vector<34x32xf32>
    %505 = arith.mulf %500, %504 : vector<34x32xf32>
    %506 = vector.broadcast %480 : f32 to vector<34x32xf32>
    %507 = arith.mulf %505, %506 : vector<34x32xf32>
    %508 = vector.broadcast %481 : f32 to vector<34x32xf32>
    %509 = arith.addf %507, %508 : vector<34x32xf32>
    %510 = vector.extract_strided_slice %509 {offsets = [0, 0], sizes = [1, 32], strides = [1, 1]} : vector<34x32xf32> to vector<1x32xf32>
    %511 = vector.extract_strided_slice %509 {offsets = [17, 0], sizes = [1, 32], strides = [1, 1]} : vector<34x32xf32> to vector<1x32xf32>
    %512 = tpu.concatenate %510, %511 in 0 : vector<1x32xf32>, vector<1x32xf32> -> vector<2x32xf32>
    %513 = arith.truncf %512 : vector<2x32xf32> to vector<2x32xbf16>
    %c0_179 = arith.constant 0 : index
    %c0_180 = arith.constant 0 : index
    %514 = vector.load %arg12[%c0_179, %c0_180] : memref<32x10xbf16, #tpu.memory_space<vmem>>, vector<32x10xbf16>
    %cst_181 = arith.constant dense<0.000000e+00> : vector<2x10xf32>
    %515 = tpu.matmul %513, %514, %cst_181 {dimension_numbers = #tpu.dot_dimension_numbers<[1], [0], [0], [1], [0, 0, 1, 1], [], []>} : vector<2x32xbf16>, vector<32x10xbf16>, vector<2x10xf32> -> vector<2x10xf32>
    %c0_182 = arith.constant 0 : index
    %c0_183 = arith.constant 0 : index
    %516 = vector.load %arg13[%c0_182, %c0_183] : memref<1x10xf32, #tpu.memory_space<vmem>>, vector<1x10xf32>
    %517 = vector.broadcast %516 : vector<1x10xf32> to vector<2x10xf32>
    %518 = arith.addf %515, %517 : vector<2x10xf32>
    %c0_184 = arith.constant 0 : index
    %c0_185 = arith.constant 0 : index
    %519 = vector.load %arg22[%c0_184, %c0_185] : memref<2x10xf32, #tpu.memory_space<vmem>>, vector<2x10xf32>
    tpu.vector_store %arg22[%c0_184, %c0_185], %518 {strides = array<i32>} : memref<2x10xf32, #tpu.memory_space<vmem>>, vector<2x10xf32>,
    return
  }
}

</mosaic_0001>

<bundles_post_ra>
// kernel: vitbn_forward.1
= control target key start
LH: loop header
LB: loop body
LE: loop exit
PB: predicated region body
PF: predicated region fallthrough
CT: control target
= control target key end

     0   :  { %s4714_s0 = inlined_call_operand.vmem [shape: f32[32,48], index: 0, kind: input, shape index: {}]   ;;  %s4715_s1 = inlined_call_operand.vmem [shape: bf16[48,32], index: 1, kind: input, shape index: {}]   ;;  %s4716_s2 = inlined_call_operand.vmem [shape: f32[1,32], index: 2, kind: input, shape index: {}]   ;;  %s4717_s3 = inlined_call_operand.vmem [shape: f32[1,32], index: 3, kind: input, shape index: {}]   ;;  %s4718_s4 = inlined_call_operand.vmem [shape: f32[17,32], index: 4, kind: input, shape index: {}]   ;;  %s4719_s5 = inlined_call_operand.vmem [shape: bf16[2,32,96], index: 5, kind: input, shape index: {}]   ;;  %s4720_s6 = inlined_call_operand.vmem [shape: bf16[2,32,32], index: 6, kind: input, shape index: {}]   ;;  %s4721_s7 = inlined_call_operand.vmem [shape: f32[2,1,32], index: 7, kind: input, shape index: {}]   ;;  %s4722_s8 = inlined_call_operand.vmem [shape: bf16[2,32,64], index: 8, kind: input, shape index: {}]   ;;  %s4723_s9 = inlined_call_operand.vmem [shape: f32[2,1,64], index: 9, kind: input, shape index: {}]   ;;  %s4724_s10 = inlined_call_operand.vmem [shape: bf16[2,64,32], index: 10, kind: input, shape index: {}]   ;;  %s4725_s11 = inlined_call_operand.vmem [shape: f32[2,1,32], index: 11, kind: input, shape index: {}]   ;;  %s4726_s12 = inlined_call_operand.vmem [shape: bf16[32,10], index: 12, kind: input, shape index: {}]   ;;  %s4727_s13 = inlined_call_operand.vmem [shape: f32[1,10], index: 13, kind: input, shape index: {}]   ;;  %s4728_s14 = inlined_call_operand.vmem [shape: f32[2], index: 14, kind: input, shape index: {}]   ;;  %s4729_s15 = inlined_call_operand.vmem [shape: f32[2], index: 15, kind: input, shape index: {}]   ;;  %s4730_s16 = inlined_call_operand.vmem [shape: f32[2], index: 16, kind: input, shape index: {}]   ;;  %s4731_s17 = inlined_call_operand.vmem [shape: f32[2], index: 17, kind: input, shape index: {}]   ;;  %s4732_s18 = inlined_call_operand.vmem [shape: f32[2], index: 18, kind: input, shape index: {}]   ;;  %s4733_s19 = inlined_call_operand.vmem [shape: f32[2], index: 19, kind: input, shape index: {}]   ;;  %s4734_s20 = inlined_call_operand.<no memory space> [shape: f32[1], index: 20, kind: input, shape index: {}]   ;;  %s4735_s21 = inlined_call_operand.<no memory space> [shape: f32[1], index: 21, kind: input, shape index: {}]   ;;  %s4736_s22 = inlined_call_operand.hbm [shape: f32[2,10], index: 22, kind: output, shape index: {}]  }
   0x1   :  { %4744 = sst [smem:[#allocation21_spill]] %s4714_s0 }
   0x2   :  { %4745 = sst [smem:[#allocation22_spill]] %s4715_s1 }
   0x3   :  { %4746 = sst [smem:[#allocation23_spill]] %s4716_s2 }
   0x4   :  { %4747 = sst [smem:[#allocation24_spill]] %s4717_s3 }
   0x5   :  { %4748 = sst [smem:[#allocation25_spill]] %s4718_s4 }
   0x6   :  { %4749 = sst [smem:[#allocation26_spill]] %s4719_s5 }
   0x7   :  { %4750 = sst [smem:[#allocation27_spill]] %s4720_s6 }
   0x8   :  { %29 = vsyncpa [#allocation6], 0 }
   0x9   :  { %30 = vsyncpa [#allocation8], 0 }
   0xa   :  { %31 = vsyncpa [#allocation11], 0 }
   0xb   :  { %32 = vsyncpa [#allocation14], 0  ;;  %s76_s29 = sshll.u32 %s4729_s15, 4  ;;  %s77_s29 = int_to_ptr.vmem [resolvable:$true] %s76_s29 }
   0xc   :  { %33 = vsyncpa [#allocation5], 0  ;;  %s94_s0 = sshll.u32 %s4731_s17, 4  ;;  %s3540_s23 = smov [#allocation7]   ;;  %s95_s0 = int_to_ptr.vmem [resolvable:$true] %s94_s0 }
   0xd   :  { %79 = dma.vmem_to_smem %s77_s29, 16, %s3540_s23, [#allocation8]  }
   0xe   :  { %s3541_s1 = smov [#allocation10]   ;;  %s67_s6 = sshll.u32 %s4728_s14, 4  ;;  %s68_s6 = int_to_ptr.vmem [resolvable:$true] %s67_s6 }
   0xf   :  { %97 = dma.vmem_to_smem %s95_s0, 16, %s3541_s1, [#allocation11]  }
  0x10   :  { %s85_s15 = sshll.u32 %s4730_s16, 4  ;;  %s3542_s2 = smov [#allocation4]   ;;  %s86_s15 = int_to_ptr.vmem [resolvable:$true] %s85_s15 }
  0x11   :  { %70 = dma.vmem_to_smem %s68_s6, 16, %s3542_s2, [#allocation6]  }
  0x12   :  { %s3543_s27 = smov [#allocation9]   ;;  %s103_s28 = sshll.u32 %s4732_s18, 4  ;;  %s104_s28 = int_to_ptr.vmem [resolvable:$true] %s103_s28 }
  0x13   :  { %88 = dma.vmem_to_smem %s86_s15, 16, %s3543_s27, [#allocation8]  }
  0x14   :  { %s112_s4 = sshll.u32 %s4733_s19, 4  ;;  %s3544_s14 = smov [#allocation12]   ;;  %s113_s4 = int_to_ptr.vmem [resolvable:$true] %s112_s4 }
  0x15   :  { %106 = dma.vmem_to_smem %s104_s28, 16, %s3544_s14, [#allocation11]  }
  0x16   :  { %s3545_s0 = smov [#allocation13]  }
  0x17   :  { %115 = dma.vmem_to_smem %s113_s4, 16, %s3545_s0, [#allocation14]  }
  0x18   :  { %3530 = dma.done.wait [#allocation6], 16  }
  0x19   :  { %3531 = vsyncadd [#allocation6], 4294967280 }
  0x1a   :  { %3532 = dma.done.wait [#allocation8], 32  }
  0x1b   :  { %3533 = vsyncadd [#allocation8], 4294967264 }
  0x1c   :  { %3534 = dma.done.wait [#allocation11], 32  }
  0x1d   :  { %3535 = vsyncadd [#allocation11], 4294967264 }
  0x1e   :  { %3536 = dma.done.wait [#allocation14], 16  }
  0x1f   :  { %3537 = vsyncadd [#allocation14], 4294967280 }
  0x20   :  { %144 = sfence }
  0x21   :  { %s4751_s23 = sld [smem:[#allocation21_spill]]  ;;  %vm152_vm0 = vcmask 392192   ;;  %v3546_v18 = vmov 1536.0   ;;  %vm286_vm5 = vcmask 261120   ;;  %vm369_vm10 = vcmask 1040384   ;;  %s3551_s24 = smov 80  }
  0x22   :  { %3276 = vrcp.f32 %v3546_v18  ;;  %s4752_s27 = sld [smem:[#allocation22_spill]]  ;;  %vm413_vm11 = vcmask 254976   ;;  %s3552_s6 = smov 112  }
  0x23   :  { %s150_s4 = sld [smem:[#allocation4]] }
  0x24   :  { %s151_s14 = sld [smem:[#allocation7]] }
  0x25   :  { %s4753_s18 = sld [smem:[#allocation23_spill]] }
  0x26   :  { %s2909_s19 = sld [smem:[#allocation4 + $0x1]] }
  0x27   :  { %v146_v0 = vld [vmem:[%s4751_s23] sm:$0xff]  ;;  %v147_v1 = vld [vmem:[%s4751_s23 + $0x8] sm:$0xff]  ;;  %v148_v2 = vld [vmem:[%s4751_s23 + $0x10] sm:$0xff]  ;;  %s2910_s5 = sld [smem:[#allocation7 + $0x1]] }
  0x28   :  { %v149_v3 = vld [vmem:[%s4751_s23 + $0x18] sm:$0xff]  ;;  %v153_v4 = vsel %vm152_vm0, %v146_v0, 0.0  ;;  %v154_v5 = vsel %vm152_vm0, %v147_v1, 0.0  ;;  %v156_v6 = vsel %vm152_vm0, %v148_v2, 0.0  ;;  %v3277_v19 = vpop.eup %3276  ;;  %v3133_v49 = vld [vmem:[%s4752_s27 + $0x10] sm:$0xff]  ;;  %v3132_v50 = vld [vmem:[%s4752_s27 + $0x8] sm:$0xff] }
  0x29   :  { %v155_v7 = vadd.f32 %v154_v5, %v153_v4  ;;  %v158_v8 = vsel %vm152_vm0, %v149_v3, 0.0  ;;  %v171_v20 = vmul.f32 1536.0, %v3277_v19  ;;  %vm175_vm1 = vweird.f32 %v3277_v19  ;;  %270 = vmatpush.bf16.msra.mxu0 %v3133_v49  ;;  %v3131_v51 = vld [vmem:[%s4752_s27] sm:$0xff]  ;;  %s4754_s25 = sld [smem:[#allocation24_spill]] }
  0x2a   :  { %v219_v62 = vstv %s150_s4  ;;  %s4755_s2 = sld [smem:[#allocation25_spill]] }
  0x2b   :  { %v157_v9 = vadd.f32 %v156_v6, %v155_v7  ;;  %v172_v21 = vsub.f32 1.0, %v171_v20  ;;  %s4757_s27 = sld [smem:[#allocation27_spill]] }
  0x2c   :  { %s1226_s16 = sld [smem:[#allocation12]] }
  0x2d   :  { %v159_v10 = vadd.f32 %v158_v8, %v157_v9  ;;  %v173_v22 = vmul.f32 %v3277_v19, %v172_v21  ;;  %271 = vmatpush.bf16.msra.mxu0 %v3132_v50  ;;  %s3004_s4 = sld [smem:[#allocation10 + $0x1]] }
  0x2f   :  { %160 = vadd.xlane.f32.xlu0 %v159_v10  ;;  %v174_v23 = vadd.f32 %v3277_v19, %v173_v22 }
  0x31   :  { %v176_v24 = vsel %vm175_vm1, %v3277_v19, %v174_v23  ;;  %272 = vmatpush.bf16.msra.mxu0 %v3131_v51  ;;  %vm594_vm1 = vcmask 138240  }
  0xa2   :  { %v161_v11 = vpop.xlane.xlu0 %160 }
  0xa3   :  { %v162_v12 = vrot.slane %v161_v11, 4 }
  0xa5   :  { %v163_v13 = vadd.f32 %v162_v12, %v161_v11 }
  0xa7   :  { %v164_v14 = vrot.slane %v163_v13, 2 }
  0xa9   :  { %v165_v15 = vadd.f32 %v164_v14, %v163_v13 }
  0xab   :  { %v166_v16 = vrot.slane %v165_v15, 1 }
  0xad   :  { %v167_v17 = vadd.f32 %v166_v16, %v165_v15  ;;  %v3268_v16 = vld [vmem:[%s4753_s18] ss:$0 sm:$0xff] }
  0xaf   :  { %3162 = vpush %v167_v17 }
  0xe0   :  { %s3163_s26 = spop %3162 }
  0xe1   :  { %v169_v25 = vstv %s3163_s26  ;;  %s3554_s26 = smov 16  }
  0xe2   :  { %v177_v26 = vmul.f32 %v176_v24, %v169_v25 }
  0xe4   :  { %v178_v27 = vsub.f32 %v146_v0, %v177_v26  ;;  %v179_v28 = vsub.f32 %v147_v1, %v177_v26  ;;  %v180_v29 = vsub.f32 %v148_v2, %v177_v26  ;;  %v181_v30 = vsub.f32 %v149_v3, %v177_v26 }
  0xe5   :  { %v224_v1 = vstv %s151_s14  ;;  %s4756_s14 = sld [smem:[#allocation26_spill]] }
  0xe6   :  { %v182_v31 = vmul.f32 %v178_v27, %v178_v27  ;;  %v183_v32 = vmul.f32 %v179_v28, %v179_v28  ;;  %v184_v33 = vmul.f32 %v180_v29, %v180_v29  ;;  %v185_v34 = vmul.f32 %v181_v30, %v181_v30 }
  0xe8   :  { %v186_v35 = vsel %vm152_vm0, %v182_v31, 0.0  ;;  %v187_v36 = vsel %vm152_vm0, %v183_v32, 0.0  ;;  %v189_v38 = vsel %vm152_vm0, %v184_v33, 0.0  ;;  %v191_v40 = vsel %vm152_vm0, %v185_v34, 0.0 }
  0xe9   :  { %v188_v37 = vadd.f32 %v187_v36, %v186_v35 }
  0xeb   :  { %v190_v39 = vadd.f32 %v189_v38, %v188_v37  ;;  %v3547_v37 = vmov 1024.0  }
  0xed   :  { %v192_v41 = vadd.f32 %v191_v40, %v190_v39 }
  0xef   :  { %193 = vadd.xlane.f32.xlu0 %v192_v41 }
 0x162   :  { %v194_v42 = vpop.xlane.xlu0 %193 }
 0x163   :  { %v195_v43 = vrot.slane %v194_v42, 4 }
 0x165   :  { %v196_v44 = vadd.f32 %v195_v43, %v194_v42 }
 0x167   :  { %v197_v45 = vrot.slane %v196_v44, 2 }
 0x169   :  { %v198_v46 = vadd.f32 %v197_v45, %v196_v44 }
 0x16b   :  { %v199_v47 = vrot.slane %v198_v46, 1 }
 0x16d   :  { %v200_v48 = vadd.f32 %v199_v47, %v198_v46 }
 0x16f   :  { %3164 = vpush %v200_v48 }
 0x1a0   :  { %s3165_s30 = spop %3164 }
 0x1a1   :  { %v202_v52 = vstv %s3165_s30  ;;  %s3003_s30 = sld [smem:[#allocation9 + $0x1]] }
 0x1a2   :  { %v203_v53 = vmul.f32 %v202_v52, %v176_v24 }
 0x1a4   :  { %v204_v54 = vadd.f32 1e-05, %v203_v53 }
 0x1a6   :  { %3278 = vrsqrt.f32 %v204_v54  ;;  %vm211_vm3 = vweird.f32 %v204_v54 }
 0x1a7   :  { %3280 = vrcp.f32 %v3547_v37 }
 0x1ac   :  { %v3279_v55 = vpop.eup %3278 }
 0x1ad   :  { %v206_v56 = vmul.f32 %v3279_v55, %v204_v54  ;;  %vm212_vm2 = vweird.f32 %v3279_v55  ;;  %v3281_v38 = vpop.eup %3280 }
 0x1ae   :  { %vm213_vm4 = vmor %vm211_vm3, %vm212_vm2  ;;  %v305_v39 = vmul.f32 1024.0, %v3281_v38  ;;  %vm309_vm6 = vweird.f32 %v3281_v38  ;;  %vm4743_vm2 = vcmask 131072   ;;  %vm822_vm3 = vcmask 1046528  }
 0x1af   :  { %v207_v57 = vmul.f32 %v3279_v55, %v206_v56 }
 0x1b0   :  { %v306_v40 = vsub.f32 1.0, %v305_v39 }
 0x1b1   :  { %v208_v58 = vmul.f32 0.5, %v207_v57 }
 0x1b2   :  { %v307_v41 = vmul.f32 %v3281_v38, %v306_v40 }
 0x1b3   :  { %v209_v59 = vsub.f32 1.5, %v208_v58 }
 0x1b4   :  { %v308_v42 = vadd.f32 %v3281_v38, %v307_v41 }
 0x1b5   :  { %v210_v60 = vmul.f32 %v3279_v55, %v209_v59 }
 0x1b6   :  { %v310_v43 = vsel %vm309_vm6, %v3281_v38, %v308_v42  ;;  %vm4742_vm6 = vcmask 517120  }
 0x1b7   :  { %v214_v61 = vsel %vm213_vm4, %v3279_v55, %v210_v60  ;;  %vm1228_vm4 = vcmask 523264  }
 0x1b8   :  { %v215_v63 = vmul.f32 %v214_v61, %v178_v27  ;;  %v216_v0 = vmul.f32 %v214_v61, %v179_v28  ;;  %v217_v7 = vmul.f32 %v214_v61, %v180_v29  ;;  %v218_v8 = vmul.f32 %v214_v61, %v181_v30 }
 0x1ba   :  { %v220_v2 = vmul.f32 %v219_v62, %v215_v63  ;;  %v221_v3 = vmul.f32 %v219_v62, %v216_v0  ;;  %v222_v9 = vmul.f32 %v219_v62, %v217_v7  ;;  %v223_v10 = vmul.f32 %v219_v62, %v218_v8 }
 0x1bc   :  { %v225_v4 = vadd.f32 %v224_v1, %v220_v2  ;;  %v226_v5 = vadd.f32 %v224_v1, %v221_v3  ;;  %v227_v11 = vadd.f32 %v224_v1, %v222_v9  ;;  %v228_v12 = vadd.f32 %v224_v1, %v223_v10 }
 0x1be   :  { %v229_v6 = vpack.c.bf16 %v226_v5, %v225_v4  ;;  %v230_v13 = vpack.c.bf16 %v228_v12, %v227_v11 }
 0x1c0   :  { %2907 = vmatmul.msk.bf16.vlgmr.msra.gmra.mxu0 %vm152_vm0, %v229_v6 }
 0x1d0   :  { %2908 = vmatmul.msk.bf16.gmra.mxu0 %vm152_vm0, %v230_v13  ;;  %vm552_vm0 = vcmask 130048  }
 0x23d   :  { %v274_v14 = vpop.f32.mrf.mxu0 }
 0x23e   :  { %v275_v19 = vadd.f32 %v3268_v16, %v274_v14  ;;  %v353_v14 = vstv %s2909_s19  ;;  %s3549_s19 = smov 96  }
 0x240   :  { %v287_v22 = vsel %vm286_vm5, %v275_v19, 0.0 }
 0x245   :  { %v276_v15 = vpop.f32.mrf.mxu0 }
 0x246   :  { %v277_v18 = vadd.f32 %v3268_v16, %v276_v15 }
 0x248   :  { %v288_v21 = vsel %vm286_vm5, %v277_v18, 0.0 }
 0x249   :  { %v289_v24 = vadd.f32 %v288_v21, %v287_v22 }
 0x24d   :  { %v279_v17 = vpop.f32.mrf.mxu0 }
 0x24e   :  { %v280_v20 = vadd.f32 %v3268_v16, %v279_v17 }
 0x250   :  { %v290_v23 = vsel %vm286_vm5, %v280_v20, 0.0 }
 0x251   :  { %v291_v27 = vadd.f32 %v290_v23, %v289_v24 }
 0x255   :  { %v281_v25 = vpop.f32.mrf.mxu0 }
 0x256   :  { %v282_v26 = vadd.f32 %v3268_v16, %v281_v25 }
 0x258   :  { %v292_v28 = vsel %vm286_vm5, %v282_v26, 0.0 }
 0x259   :  { %v293_v29 = vadd.f32 %v292_v28, %v291_v27  ;;  %v363_v28 = vld [vmem:[%s4754_s25] sm:$0x1]  ;;  %s3553_s25 = smov 48  }
 0x25b   :  { %294 = vadd.xlane.f32.xlu1 %v293_v29  ;;  %v364_v29 = vld [vmem:[%s4755_s2] sm:$0xff] }
 0x2ce   :  { %v295_v30 = vpop.xlane.xlu1 %294 }
 0x2cf   :  { %v296_v31 = vrot.slane %v295_v30, 4 }
 0x2d1   :  { %v297_v32 = vadd.f32 %v296_v31, %v295_v30  ;;  %v365_v30 = vld [vmem:[%s4755_s2 + $0x8] sm:$0xff] }
 0x2d3   :  { %v298_v33 = vrot.slane %v297_v32, 2 }
 0x2d5   :  { %v299_v34 = vadd.f32 %v298_v33, %v297_v32 }
 0x2d7   :  { %v300_v35 = vrot.slane %v299_v34, 1 }
 0x2d9   :  { %v301_v36 = vadd.f32 %v300_v35, %v299_v34  ;;  %v366_v35 = vld [vmem:[%s4755_s2 + $0x10] sm:$0x1] }
 0x2db   :  { %3166 = vpush %v301_v36 }
 0x30c   :  { %s3167_s23 = spop %3166 }
 0x30d   :  { %v303_v44 = vstv %s3167_s23  ;;  %s404_s23 = sld [smem:[#allocation9]] }
 0x30e   :  { %v311_v45 = vmul.f32 %v310_v43, %v303_v44 }
 0x310   :  { %v312_v46 = vsub.f32 %v275_v19, %v311_v45  ;;  %v313_v47 = vsub.f32 %v277_v18, %v311_v45  ;;  %v314_v48 = vsub.f32 %v280_v20, %v311_v45  ;;  %v315_v49 = vsub.f32 %v282_v26, %v311_v45 }
 0x311   :  { %v358_v19 = vstv %s2910_s5  ;;  %s3550_s5 = smov 64  }
 0x312   :  { %v316_v50 = vmul.f32 %v312_v46, %v312_v46  ;;  %v317_v51 = vmul.f32 %v313_v47, %v313_v47  ;;  %v318_v52 = vmul.f32 %v314_v48, %v314_v48  ;;  %v319_v53 = vmul.f32 %v315_v49, %v315_v49 }
 0x314   :  { %v320_v54 = vsel %vm286_vm5, %v316_v50, 0.0  ;;  %v321_v55 = vsel %vm286_vm5, %v317_v51, 0.0  ;;  %v323_v57 = vsel %vm286_vm5, %v318_v52, 0.0  ;;  %v325_v59 = vsel %vm286_vm5, %v319_v53, 0.0 }
 0x315   :  { %v322_v56 = vadd.f32 %v321_v55, %v320_v54 }
 0x317   :  { %v324_v58 = vadd.f32 %v323_v57, %v322_v56 }
 0x319   :  { %v326_v60 = vadd.f32 %v325_v59, %v324_v58 }
 0x31b   :  { %327 = vadd.xlane.f32.xlu1 %v326_v60 }
 0x38e   :  { %v328_v61 = vpop.xlane.xlu1 %327 }
 0x38f   :  { %v329_v62 = vrot.slane %v328_v61, 4 }
 0x391   :  { %v330_v63 = vadd.f32 %v329_v62, %v328_v61 }
 0x393   :  { %v331_v0 = vrot.slane %v330_v63, 2 }
 0x395   :  { %v332_v1 = vadd.f32 %v331_v0, %v330_v63 }
 0x397   :  { %v333_v2 = vrot.slane %v332_v1, 1 }
 0x399   :  { %v334_v3 = vadd.f32 %v333_v2, %v332_v1 }
 0x39b   :  { %3168 = vpush %v334_v3 }
 0x3cc   :  { %s3169_s1 = spop %3168 }
 0x3cd   :  { %v336_v4 = vstv %s3169_s1  ;;  %s405_s1 = sld [smem:[#allocation10]] }
 0x3ce   :  { %v337_v5 = vmul.f32 %v336_v4, %v310_v43  ;;  %v3548_v4 = vmov 1088.0  }
 0x3d0   :  { %v338_v6 = vadd.f32 1e-05, %v337_v5 }
 0x3d2   :  { %3282 = vrsqrt.f32 %v338_v6  ;;  %vm345_vm8 = vweird.f32 %v338_v6 }
 0x3d3   :  { %3284 = vrcp.f32 %v3548_v4 }
 0x3d8   :  { %v3283_v7 = vpop.eup %3282 }
 0x3d9   :  { %v340_v8 = vmul.f32 %v3283_v7, %v338_v6  ;;  %vm346_vm7 = vweird.f32 %v3283_v7  ;;  %v3285_v5 = vpop.eup %3284 }
 0x3da   :  { %vm347_vm9 = vmor %vm345_vm8, %vm346_vm7  ;;  %v427_v6 = vmul.f32 1088.0, %v3285_v5  ;;  %vm431_vm12 = vweird.f32 %v3285_v5 }
 0x3db   :  { %v341_v9 = vmul.f32 %v3283_v7, %v340_v8 }
 0x3dd   :  { %v342_v10 = vmul.f32 0.5, %v341_v9 }
 0x3df   :  { %v343_v11 = vsub.f32 1.5, %v342_v10 }
 0x3e1   :  { %v344_v12 = vmul.f32 %v3283_v7, %v343_v11 }
 0x3e3   :  { %v348_v13 = vsel %vm347_vm9, %v3283_v7, %v344_v12  ;;  %v428_v7 = vsub.f32 1.0, %v427_v6 }
 0x3e4   :  { %v349_v15 = vmul.f32 %v348_v13, %v312_v46  ;;  %v350_v16 = vmul.f32 %v348_v13, %v313_v47  ;;  %v351_v17 = vmul.f32 %v348_v13, %v314_v48  ;;  %v352_v18 = vmul.f32 %v348_v13, %v315_v49 }
 0x3e5   :  { %v429_v8 = vmul.f32 %v3285_v5, %v428_v7 }
 0x3e6   :  { %v354_v20 = vmul.f32 %v353_v14, %v349_v15  ;;  %v356_v21 = vmul.f32 %v353_v14, %v351_v17  ;;  %v355_v22 = vmul.f32 %v353_v14, %v350_v16  ;;  %v357_v23 = vmul.f32 %v353_v14, %v352_v18 }
 0x3e7   :  { %v430_v9 = vadd.f32 %v3285_v5, %v429_v8 }
 0x3e8   :  { %v359_v24 = vadd.f32 %v358_v19, %v354_v20  ;;  %v360_v25 = vadd.f32 %v358_v19, %v355_v22  ;;  %v361_v26 = vadd.f32 %v358_v19, %v356_v21  ;;  %v362_v27 = vadd.f32 %v358_v19, %v357_v23 }
 0x3e9   :  { %v3772_v10 = vsel %vm431_vm12, %v3285_v5, %v430_v9 }
 0x3ea   :  { %v370_v31 = vrot.slane %v359_v24, 7  ;;  %v371_v32 = vrot.slane %v360_v25, 7  ;;  %v382_v33 = vrot.slane %v361_v26, 7  ;;  %v383_v34 = vrot.slane %v362_v27, 7 }
 0x3ec   :  { %v372_v36 = vsel %vm369_vm10, %v370_v31, %v371_v32  ;;  %v376_v37 = vsel %vm369_vm10, %v363_v28, %v370_v31  ;;  %v384_v38 = vsel %vm369_vm10, %v382_v33, %v383_v34  ;;  %v388_v41 = vsel %vm369_vm10, %v363_v28, %v382_v33 }
 0x3ed   :  { %v3748_v39 = vadd.f32 %v376_v37, %v364_v29  ;;  %v3750_v40 = vadd.f32 %v372_v36, %v365_v30  ;;  %v390_v42 = vadd.f32 %v384_v38, %v365_v30  ;;  %v389_v43 = vadd.f32 %v388_v41, %v364_v29  ;;  %v3135_v41 = vld [vmem:[%s4756_s14 + $0x8] sm:$0xff] }
 0x3ee   :  { %v391_v44 = vadd.f32 %v383_v34, %v366_v35  ;;  %v379_v48 = vadd.f32 %v371_v32, %v366_v35  ;;  %526 = vmatpush.bf16.msra.mxu1 %v3135_v41 }
 0x3ef   :  { %v396_v45 = vrot.slane %v390_v42, 7  ;;  %v406_v46 = vsel %vm286_vm5, %v3748_v39, 0.0  ;;  %v407_v47 = vsel %vm286_vm5, %v3750_v40, 0.0  ;;  %v395_v49 = vrot.slane %v389_v43, 7  ;;  %v3134_v42 = vld [vmem:[%s4756_s14] sm:$0xff] }
 0x3f0   :  { %v398_v50 = vrot.slane %v391_v44, 7  ;;  %v408_v51 = vadd.f32 %v407_v47, %v406_v46 }
 0x3f1   :  { %v3758_v52 = vsel %vm369_vm10, %v395_v49, %v396_v45  ;;  %v3761_v53 = vsel %vm369_vm10, %v379_v48, %v395_v49 }
 0x3f2   :  { %v409_v54 = vsel %vm286_vm5, %v3761_v53, 0.0  ;;  %v3766_v55 = vsel %vm369_vm10, %v396_v45, %v398_v50  ;;  %v411_v57 = vsel %vm286_vm5, %v3758_v52, 0.0  ;;  %527 = vmatpush.bf16.msra.mxu1 %v3134_v42 }
 0x3f3   :  { %v410_v56 = vadd.f32 %v409_v54, %v408_v51  ;;  %v414_v59 = vsel %vm413_vm11, %v3766_v55, 0.0 }
 0x3f5   :  { %v412_v58 = vadd.f32 %v411_v57, %v410_v56  ;;  %v480_v56 = vstv %s404_s23  ;;  %s2882_s23 = sshll.u32 %s4736_s22, 4  ;;  %s2883_s23 = int_to_ptr.hbm [resolvable:$true] %s2882_s23 }
 0x3f7   :  { %v415_v60 = vadd.f32 %v414_v59, %v412_v58  ;;  %v486_v59 = vstv %s405_s1 }
 0x3f9   :  { %416 = vadd.xlane.f32.xlu2 %v415_v60 }
 0x46c   :  { %v417_v61 = vpop.xlane.xlu2 %416 }
 0x46d   :  { %v418_v62 = vrot.slane %v417_v61, 4 }
 0x46f   :  { %v419_v63 = vadd.f32 %v418_v62, %v417_v61 }
 0x471   :  { %v420_v0 = vrot.slane %v419_v63, 2 }
 0x473   :  { %v421_v1 = vadd.f32 %v420_v0, %v419_v63 }
 0x475   :  { %v422_v2 = vrot.slane %v421_v1, 1 }
 0x477   :  { %v423_v3 = vadd.f32 %v422_v2, %v421_v1 }
 0x479   :  { %3170 = vpush %v423_v3 }
 0x4aa   :  { %s3171_s29 = spop %3170 }
 0x4ab   :  { %v425_v11 = vstv %s3171_s29 }
 0x4ac   :  { %v433_v12 = vmul.f32 %v3772_v10, %v425_v11 }
 0x4ae   :  { %v434_v13 = vsub.f32 %v3748_v39, %v433_v12  ;;  %v435_v14 = vsub.f32 %v3750_v40, %v433_v12  ;;  %v436_v15 = vsub.f32 %v3761_v53, %v433_v12  ;;  %v437_v16 = vsub.f32 %v3758_v52, %v433_v12 }
 0x4af   :  { %v3780_v17 = vsub.f32 %v3766_v55, %v433_v12 }
 0x4b0   :  { %v439_v18 = vmul.f32 %v434_v13, %v434_v13  ;;  %v440_v19 = vmul.f32 %v435_v14, %v435_v14  ;;  %v441_v20 = vmul.f32 %v436_v15, %v436_v15  ;;  %v442_v21 = vmul.f32 %v437_v16, %v437_v16 }
 0x4b1   :  { %v443_v25 = vmul.f32 %v3780_v17, %v3780_v17 }
 0x4b2   :  { %v444_v22 = vsel %vm286_vm5, %v439_v18, 0.0  ;;  %v445_v23 = vsel %vm286_vm5, %v440_v19, 0.0  ;;  %v447_v26 = vsel %vm286_vm5, %v441_v20, 0.0  ;;  %v449_v28 = vsel %vm286_vm5, %v442_v21, 0.0 }
 0x4b3   :  { %v446_v24 = vadd.f32 %v445_v23, %v444_v22  ;;  %v451_v30 = vsel %vm413_vm11, %v443_v25, 0.0 }
 0x4b5   :  { %v448_v27 = vadd.f32 %v447_v26, %v446_v24 }
 0x4b7   :  { %v450_v29 = vadd.f32 %v449_v28, %v448_v27 }
 0x4b9   :  { %v452_v31 = vadd.f32 %v451_v30, %v450_v29 }
 0x4bb   :  { %453 = vadd.xlane.f32.xlu2 %v452_v31 }
 0x52e   :  { %v454_v32 = vpop.xlane.xlu2 %453 }
 0x52f   :  { %v455_v33 = vrot.slane %v454_v32, 4 }
 0x531   :  { %v456_v34 = vadd.f32 %v455_v33, %v454_v32 }
 0x533   :  { %v457_v35 = vrot.slane %v456_v34, 2 }
 0x535   :  { %v458_v36 = vadd.f32 %v457_v35, %v456_v34 }
 0x537   :  { %v459_v37 = vrot.slane %v458_v36, 1 }
 0x539   :  { %v460_v38 = vadd.f32 %v459_v37, %v458_v36 }
 0x53b   :  { %3172 = vpush %v460_v38 }
 0x56c   :  { %s3173_s18 = spop %3172 }
 0x56d   :  { %v462_v43 = vstv %s3173_s18  ;;  %s1227_s18 = sld [smem:[#allocation13]] }
 0x56e   :  { %v463_v44 = vmul.f32 %v462_v43, %v3772_v10 }
 0x570   :  { %v464_v45 = vadd.f32 1e-05, %v463_v44 }
 0x572   :  { %3286 = vrsqrt.f32 %v464_v45  ;;  %vm471_vm14 = vweird.f32 %v464_v45 }
 0x578   :  { %v3287_v46 = vpop.eup %3286 }
 0x579   :  { %v466_v47 = vmul.f32 %v3287_v46, %v464_v45  ;;  %vm472_vm13 = vweird.f32 %v3287_v46 }
 0x57a   :  { %vm473_vm15 = vmor %vm471_vm14, %vm472_vm13 }
 0x57b   :  { %v467_v48 = vmul.f32 %v3287_v46, %v466_v47 }
 0x57d   :  { %v468_v49 = vmul.f32 0.5, %v467_v48 }
 0x57f   :  { %v469_v50 = vsub.f32 1.5, %v468_v49 }
 0x581   :  { %v470_v51 = vmul.f32 %v3287_v46, %v469_v50 }
 0x583   :  { %v474_v54 = vsel %vm473_vm15, %v3287_v46, %v470_v51 }
 0x584   :  { %v475_v57 = vmul.f32 %v474_v54, %v434_v13  ;;  %v476_v58 = vmul.f32 %v474_v54, %v435_v14  ;;  %v477_v1 = vmul.f32 %v474_v54, %v436_v15  ;;  %v478_v2 = vmul.f32 %v474_v54, %v437_v16 }
 0x585   :  { %v479_v8 = vmul.f32 %v474_v54, %v3780_v17 }
 0x586   :  { %v481_v60 = vmul.f32 %v480_v56, %v475_v57  ;;  %v482_v61 = vmul.f32 %v480_v56, %v476_v58  ;;  %v483_v3 = vmul.f32 %v480_v56, %v477_v1  ;;  %v484_v4 = vmul.f32 %v480_v56, %v478_v2 }
 0x587   :  { %v485_v9 = vmul.f32 %v480_v56, %v479_v8 }
 0x588   :  { %v487_v62 = vadd.f32 %v486_v59, %v481_v60  ;;  %v488_v63 = vadd.f32 %v486_v59, %v482_v61  ;;  %v489_v5 = vadd.f32 %v486_v59, %v483_v3  ;;  %v490_v6 = vadd.f32 %v486_v59, %v484_v4 }
 0x589   :  { %v491_v11 = vadd.f32 %v486_v59, %v485_v9 }
 0x58a   :  { %v492_v0 = vpack.c.bf16 %v488_v63, %v487_v62  ;;  %v493_v7 = vpack.c.bf16 %v490_v6, %v489_v5 }
 0x58b   :  { %v494_v12 = vpack.c.bf16 %v491_v11, %v491_v11 }
 0x58c   :  { %2919 = vmatmul.msk.bf16.vlgmr.msra.gmra.mxu1 %vm286_vm5, %v492_v0 }
 0x59c   :  { %2920 = vmatmul.msk.bf16.gmra.mxu1 %vm286_vm5, %v493_v7 }
 0x5ac   :  { %2921 = vmatmul.msk.bf16.gmra.mxu1 %vm286_vm5, %v494_v12 }
 0x609   :  { %v529_v13 = vpop.f32.mrf.mxu1 }
 0x60a   :  { %546 = vrot.lane.b32.xlu2 %v529_v13, %s3549_s19 }
 0x611   :  { %v531_v14 = vpop.f32.mrf.mxu1 }
 0x612   :  { %548 = vrot.lane.b32.xlu1 %v531_v14, %s3549_s19  ;;  %v3820_v29 = vpack.i.bf16 %v529_v13, %v531_v14 }
 0x619   :  { %v3802_v15 = vpop.f32.mrf.mxu1 }
 0x61a   :  { %550 = vrot.lane.b32.xlu0 %v3802_v15, %s3549_s19  ;;  %v823_v32 = vrot.slane %v3802_v15, 1 }
 0x621   :  { %v3806_v16 = vpop.f32.mrf.mxu1 }
 0x622   :  { %v824_v31 = vrot.slane %v3806_v16, 1 }
 0x624   :  { %v3838_v33 = vsel %vm822_vm3, %v823_v32, %v824_v31 }
 0x629   :  { %v539_v17 = vpop.f32.mrf.mxu1 }
 0x62a   :  { %v3829_v30 = vrot.slane %v539_v17, 1 }
 0x631   :  { %v541_v18 = vpop.f32.mrf.mxu1 }
 0x664   :  { %v547_v21 = vpop.permute.xlu2 %546 }
 0x684   :  { %v549_v20 = vpop.permute.xlu1 %548 }
 0x68c   :  { %v551_v19 = vpop.permute.xlu0 %550 }
 0x68d   :  { %2922 = vmatpush.xpose.msk.msra.mxu2 %vm552_vm0, %v551_v19 }
 0x691   :  { %2923 = vmatpush.xpose.msk.msra.mxu2 %vm552_vm0, %v549_v20 }
 0x695   :  { %2924 = vmatpush.xpose.msk.msra.mxu2 %vm552_vm0, %v547_v21 }
 0x698   :  { %2925 = vmatmul.msk.f32.vlgmr.msra.gmra.mxu2 %vm552_vm0, %v529_v13 }
 0x6a0   :  { %2926 = vmatmul.msk.f32.gmra.mxu2 %vm552_vm0, %v531_v14 }
 0x6a8   :  { %2927 = vmatmul.msk.f32.gmra.mxu2 %vm552_vm0, %v3802_v15 }
 0x71b   :  { %v582_v22 = vpop.f32.mrf.mxu2 }
 0x71c   :  { %v591_v57 = vmul.f32 0.25, %v582_v22 }
 0x71e   :  { %v595_v58 = vsel %vm594_vm1, %v591_v57, -inf }
 0x723   :  { %v585_v23 = vpop.f32.mrf.mxu2 }
 0x724   :  { %v592_v24 = vmul.f32 0.25, %v585_v23  ;;  %v3876_v23 = vsel %vm822_vm3, %v824_v31, %v3829_v30 }
 0x726   :  { %v598_v25 = vsel %vm594_vm1, %v592_v24, -inf }
 0x727   :  { %599 = vmax.xlane.f32.xlu0 %v598_v25 }
 0x72b   :  { %v588_v26 = vpop.f32.mrf.mxu2 }
 0x72c   :  { %v593_v27 = vmul.f32 0.25, %v588_v26 }
 0x72e   :  { %v602_v28 = vsel %vm4743_vm2, %v593_v27, -inf }
 0x72f   :  { %603 = vmax.xlane.f32.xlu2 %v602_v28 }
 0x73b   :  { %633 = vrot.lane.b32.xlu0 %v3802_v15, %s3550_s5 }
 0x743   :  { %682 = vrot.lane.b32.xlu0 %v531_v14, %s3551_s24 }
 0x747   :  { %3209 = vrot.lane.b32.xlu2 %v3820_v29, %s3550_s5 }
 0x74b   :  { %674 = vrot.lane.b32.xlu0 %v529_v13, %s3552_s6 }
 0x74f   :  { %680 = vrot.lane.b32.xlu2 %v529_v13, %s3551_s24 }
 0x753   :  { %678 = vrot.lane.b32.xlu0 %v3802_v15, %s3552_s6 }
 0x757   :  { %676 = vrot.lane.b32.xlu2 %v531_v14, %s3552_s6 }
 0x75b   :  { %963 = vrot.lane.b32.xlu0 %v3829_v30, %s3551_s24 }
 0x763   :  { %959 = vrot.lane.b32.xlu0 %v3838_v33, %s3551_s24 }
 0x79a   :  { %v600_v34 = vpop.xlane.xlu0 %599 }
 0x79b   :  { %v606_v35 = vsub.f32 %v592_v24, %v600_v34 }
 0x79d   :  { %v610_v36 = vmul.f32 1.442695, %v606_v35 }
 0x79f   :  { %3288 = vpow2.f32 %v610_v36 }
 0x7a2   :  { %v604_v37 = vpop.xlane.xlu2 %603 }
 0x7a3   :  { %v607_v38 = vsub.f32 %v593_v27, %v604_v37 }
 0x7a5   :  { %v3289_v41 = vpop.eup %3288  ;;  %v612_v42 = vmul.f32 1.442695, %v607_v38 }
 0x7a6   :  { %v617_v43 = vsel %vm594_vm1, %v3289_v41, 0.0 }
 0x7a7   :  { %3290 = vpow2.f32 %v612_v42  ;;  %618 = vadd.xlane.f32.xlu1 %v617_v43 }
 0x7aa   :  { %v3210_v44 = vpop.permute.xlu2 %3209 }
 0x7ab   :  { %v3211_v48 = vunpack.i.l.bf16 %v3210_v44  ;;  %v3212_v49 = vunpack.i.h.bf16 %v3210_v44 }
 0x7ad   :  { %v3291_v45 = vpop.eup %3290  ;;  %v634_v46 = vpop.permute.xlu0 %633 }
 0x7ae   :  { %2928 = vmatpush.msk.msrb.mxu2 %vm369_vm10, %v634_v46  ;;  %3156 = vmatpush.msk.msra.mxu3 %vm369_vm10, %v634_v46  ;;  %v620_v47 = vsel %vm4743_vm2, %v3291_v45, 0.0 }
 0x7af   :  { %621 = vadd.xlane.f32.xlu1 %v620_v47 }
 0x7b0   :  { %662 = vmatpush.msrb.mxu2 %v3211_v48  ;;  %3157 = vmatpush.msra.mxu3 %v3211_v48 }
 0x7b2   :  { %663 = vmatpush.msrb.mxu2 %v3212_v49  ;;  %3158 = vmatpush.msra.mxu3 %v3212_v49  ;;  %v681_v2 = vpop.permute.xlu2 %680 }
 0x7b5   :  { %v683_v50 = vpop.permute.xlu0 %682 }
 0x7ba   :  { %v677_v3 = vpop.permute.xlu2 %676 }
 0x7bd   :  { %v675_v51 = vpop.permute.xlu0 %674 }
 0x7c5   :  { %v679_v54 = vpop.permute.xlu0 %678 }
 0x7c8   :  { %684 = vrot.lane.b32.xlu1 %v3802_v15, %s3551_s24 }
 0x7cd   :  { %v3848_v56 = vpop.permute.xlu0 %963 }
 0x7ce   :  { %2952 = vmatpush.xpose.msk.msrb.mxu1 %vm552_vm0, %v3848_v56 }
 0x7d5   :  { %v960_v27 = vpop.permute.xlu0 %959 }
 0x7f2   :  { %596 = vmax.xlane.f32.xlu1 %v595_v58 }
 0x80b   :  { %764 = vrot.lane.b32.xlu1 %v3802_v15, %s3553_s25 }
 0x81a   :  { %v619_v59 = vpop.xlane.xlu1 %618 }
 0x81b   :  { %3292 = vrcp.f32 %v619_v59 }
 0x821   :  { %v3293_v60 = vpop.eup %3292 }
 0x822   :  { %v622_v61 = vpop.xlane.xlu1 %621  ;;  %v627_v62 = vmul.f32 %v3293_v60, %v3289_v41 }
 0x823   :  { %3294 = vrcp.f32 %v622_v61 }
 0x824   :  { %2930 = vmatmul.msk.f32.vlgmr.msra.gmra.mxu3 %vm594_vm1, %v627_v62 }
 0x829   :  { %v3295_v63 = vpop.eup %3294 }
 0x82a   :  { %v628_v0 = vmul.f32 %v3295_v63, %v3291_v45 }
 0x82c   :  { %2931 = vmatmul.msk.f32.gmra.mxu3 %vm594_vm1, %v628_v0 }
 0x83a   :  { %v685_v1 = vpop.permute.xlu1 %684 }
 0x83b   :  { %2932 = vmatpush.xpose.msk.msrb.mxu3 %vm552_vm0, %v685_v1 }
 0x83f   :  { %2933 = vmatpush.xpose.msk.msrb.mxu3 %vm552_vm0, %v683_v50 }
 0x843   :  { %2934 = vmatpush.xpose.msk.msrb.mxu3 %vm552_vm0, %v681_v2 }
 0x846   :  { %2935 = vmatmul.msk.f32.vlgmr.msrb.gmra.mxu3 %vm552_vm0, %v675_v51 }
 0x84e   :  { %2936 = vmatmul.msk.f32.gmra.mxu3 %vm552_vm0, %v677_v3 }
 0x856   :  { %2937 = vmatmul.msk.f32.gmra.mxu3 %vm552_vm0, %v679_v54 }
 0x865   :  { %v597_v4 = vpop.xlane.xlu1 %596 }
 0x866   :  { %v605_v5 = vsub.f32 %v591_v57, %v597_v4 }
 0x868   :  { %v608_v6 = vmul.f32 1.442695, %v605_v5 }
 0x86a   :  { %3296 = vpow2.f32 %v608_v6 }
 0x870   :  { %v3297_v7 = vpop.eup %3296 }
 0x871   :  { %v614_v8 = vsel %vm594_vm1, %v3297_v7, 0.0 }
 0x872   :  { %615 = vadd.xlane.f32.xlu2 %v614_v8 }
 0x87d   :  { %v765_v9 = vpop.permute.xlu1 %764 }
 0x87e   :  { %2938 = vmatpush.msk.msra.mxu2 %vm369_vm10, %v765_v9 }
 0x8a7   :  { %v3865_v11 = vpop.f32.mrf.mxu3 }
 0x8af   :  { %v3867_v12 = vpop.f32.mrf.mxu3 }
 0x8c9   :  { %v715_v13 = vpop.f32.mrf.mxu3 }
 0x8ca   :  { %v724_v14 = vmul.f32 0.25, %v715_v13 }
 0x8cc   :  { %v727_v15 = vsel %vm594_vm1, %v724_v14, -inf }
 0x8cd   :  { %728 = vmax.xlane.f32.xlu2 %v727_v15 }
 0x8d1   :  { %v718_v17 = vpop.f32.mrf.mxu3 }
 0x8d2   :  { %v725_v18 = vmul.f32 0.25, %v718_v17 }
 0x8d4   :  { %v730_v19 = vsel %vm594_vm1, %v725_v18, -inf }
 0x8d5   :  { %731 = vmax.xlane.f32.xlu0 %v730_v19 }
 0x8d9   :  { %v721_v20 = vpop.f32.mrf.mxu3 }
 0x8da   :  { %v726_v21 = vmul.f32 0.25, %v721_v20 }
 0x8dc   :  { %v733_v22 = vsel %vm4743_vm2, %v726_v21, -inf }
 0x8dd   :  { %734 = vmax.xlane.f32.xlu1 %v733_v22 }
 0x8e5   :  { %v616_v24 = vpop.xlane.xlu2 %615  ;;  %961 = vrot.lane.b32.xlu2 %v3876_v23, %s3551_s24 }
 0x8e6   :  { %3298 = vrcp.f32 %v616_v24 }
 0x8e9   :  { %3214 = vrot.lane.b32.xlu0 %v3820_v29, %s3553_s25 }
 0x8ec   :  { %v3299_v25 = vpop.eup %3298 }
 0x8ed   :  { %v626_v26 = vmul.f32 %v3299_v25, %v3297_v7  ;;  %v3218_v7 = vpack.i.bf16 %v3838_v33, %v3876_v23 }
 0x8ef   :  { %2929 = vmatmul.msk.f32.vlgmr.msrb.gmra.mxu2 %vm594_vm1, %v626_v26 }
 0x8f6   :  { %953 = vrot.lane.b32.xlu1 %v3838_v33, %s3552_s6 }
 0x940   :  { %v729_v16 = vpop.xlane.xlu2 %728 }
 0x941   :  { %v736_v28 = vsub.f32 %v724_v14, %v729_v16 }
 0x943   :  { %v739_v31 = vmul.f32 1.442695, %v736_v28 }
 0x945   :  { %3300 = vpow2.f32 %v739_v31 }
 0x948   :  { %v732_v32 = vpop.xlane.xlu0 %731  ;;  %v962_v34 = vpop.permute.xlu2 %961 }
 0x949   :  { %v737_v35 = vsub.f32 %v725_v18, %v732_v32  ;;  %2953 = vmatpush.xpose.msk.msrb.mxu1 %vm552_vm0, %v962_v34 }
 0x94b   :  { %v3301_v36 = vpop.eup %3300  ;;  %v741_v37 = vmul.f32 1.442695, %v737_v35 }
 0x94c   :  { %v745_v29 = vsel %vm594_vm1, %v3301_v36, 0.0 }
 0x94d   :  { %3302 = vpow2.f32 %v741_v37  ;;  %746 = vadd.xlane.f32.xlu1 %v745_v29  ;;  %2954 = vmatpush.xpose.msk.msrb.mxu1 %vm552_vm0, %v960_v27 }
 0x950   :  { %v735_v38 = vpop.xlane.xlu1 %734 }
 0x951   :  { %v738_v41 = vsub.f32 %v726_v21, %v735_v38 }
 0x953   :  { %v3303_v42 = vpop.eup %3302  ;;  %v743_v43 = vmul.f32 1.442695, %v738_v41 }
 0x954   :  { %v748_v44 = vsel %vm594_vm1, %v3303_v42, 0.0 }
 0x955   :  { %3304 = vpow2.f32 %v743_v43  ;;  %749 = vadd.xlane.f32.xlu2 %v748_v44 }
 0x95b   :  { %v3305_v45 = vpop.eup %3304  ;;  %v3215_v46 = vpop.permute.xlu0 %3214 }
 0x95c   :  { %v3216_v47 = vunpack.i.l.bf16 %v3215_v46  ;;  %v751_v48 = vsel %vm4743_vm2, %v3305_v45, 0.0  ;;  %v3217_v49 = vunpack.i.h.bf16 %v3215_v46 }
 0x95d   :  { %752 = vadd.xlane.f32.xlu0 %v751_v48 }
 0x95e   :  { %793 = vmatpush.msra.mxu2 %v3216_v47 }
 0x960   :  { %794 = vmatpush.msra.mxu2 %v3217_v49 }
 0x962   :  { %3159 = vmatpush.xpose.msk.msrb.mxu2 %vm552_vm0, %v3848_v56 }
 0x966   :  { %3160 = vmatpush.xpose.msk.msrb.mxu2 %vm552_vm0, %v962_v34  ;;  %955 = vrot.lane.b32.xlu1 %v3876_v23, %s3552_s6 }
 0x968   :  { %v954_v50 = vpop.permute.xlu1 %953 }
 0x969   :  { %2955 = vmatmul.msk.f32.vlgmr.msrb.gmra.mxu1 %vm552_vm0, %v954_v50 }
 0x96a   :  { %3161 = vmatpush.xpose.msk.msrb.mxu2 %vm552_vm0, %v960_v27 }
 0x96d   :  { %828 = vrot.lane.b32.xlu2 %v3838_v33, %s3549_s19 }
 0x96e   :  { %957 = vrot.lane.b32.xlu1 %v3829_v30, %s3552_s6 }
 0x972   :  { %v3923_v8 = vpop.f32.mrf.mxu2 }
 0x976   :  { %832 = vrot.lane.b32.xlu1 %v3829_v30, %s3549_s19 }
 0x97e   :  { %830 = vrot.lane.b32.xlu1 %v3876_v23, %s3549_s19 }
 0x9c0   :  { %v747_v51 = vpop.xlane.xlu1 %746 }
 0x9c1   :  { %3306 = vrcp.f32 %v747_v51 }
 0x9c7   :  { %v3307_v54 = vpop.eup %3306 }
 0x9c8   :  { %v757_v56 = vmul.f32 %v3307_v54, %v3301_v36  ;;  %v750_v57 = vpop.xlane.xlu2 %749 }
 0x9c9   :  { %3308 = vrcp.f32 %v750_v57 }
 0x9ca   :  { %2939 = vmatmul.msk.f32.vlgmr.msra.gmra.mxu2 %vm594_vm1, %v757_v56 }
 0x9cf   :  { %v3309_v58 = vpop.eup %3308 }
 0x9d0   :  { %v753_v59 = vpop.xlane.xlu0 %752  ;;  %v758_v60 = vmul.f32 %v3309_v58, %v3303_v42  ;;  %v829_v6 = vpop.permute.xlu2 %828 }
 0x9d1   :  { %3310 = vrcp.f32 %v753_v59 }
 0x9d2   :  { %2940 = vmatmul.msk.f32.gmra.mxu2 %vm594_vm1, %v758_v60 }
 0x9d7   :  { %v3311_v61 = vpop.eup %3310 }
 0x9d8   :  { %v956_v62 = vpop.permute.xlu1 %955  ;;  %v759_v63 = vmul.f32 %v3311_v61, %v3305_v45 }
 0x9d9   :  { %2956 = vmatmul.msk.f32.gmra.mxu1 %vm552_vm0, %v956_v62 }
 0x9da   :  { %2941 = vmatmul.msk.f32.gmra.mxu2 %vm594_vm1, %v759_v63 }
 0x9e0   :  { %v958_v0 = vpop.permute.xlu1 %957 }
 0x9e2   :  { %2957 = vmatmul.msk.f32.vlgmr.msrb.gmra.mxu2 %vm552_vm0, %v958_v0 }
 0x9e6   :  { %v994_v1 = vpop.f32.mrf.mxu1 }
 0x9e7   :  { %v1003_v2 = vmul.f32 0.25, %v994_v1 }
 0x9e8   :  { %v833_v3 = vpop.permute.xlu1 %832 }
 0x9e9   :  { %2942 = vmatpush.xpose.msk.msrb.mxu0 %vm552_vm0, %v833_v3  ;;  %v1006_v4 = vsel %vm594_vm1, %v1003_v2, -inf }
 0x9ea   :  { %1007 = vmax.xlane.f32.xlu1 %v1006_v4 }
 0x9f0   :  { %v831_v5 = vpop.permute.xlu1 %830 }
 0x9f1   :  { %2943 = vmatpush.xpose.msk.msrb.mxu0 %vm552_vm0, %v831_v5 }
 0x9f5   :  { %2944 = vmatpush.xpose.msk.msrb.mxu0 %vm552_vm0, %v829_v6 }
 0x9f8   :  { %2945 = vmatmul.msk.f32.vlgmr.msrb.gmra.mxu0 %vm552_vm0, %v3838_v33 }
 0xa00   :  { %2946 = vmatmul.msk.f32.gmra.mxu0 %vm552_vm0, %v3876_v23 }
 0xa03   :  { %3219 = vrot.lane.b32.xlu1 %v3218_v7, %s3553_s25 }
 0xa08   :  { %2947 = vmatmul.msk.f32.gmra.mxu0 %vm552_vm0, %v3829_v30 }
 0xa4d   :  { %v796_v9 = vpop.f32.mrf.mxu2 }
 0xa55   :  { %v799_v13 = vpop.f32.mrf.mxu2 }
 0xa56   :  { %v3228_v14 = vpack.i.bf16 %v799_v13, %v796_v9  ;;  %v997_v15 = vpop.f32.mrf.mxu1 }
 0xa57   :  { %v1004_v17 = vmul.f32 0.25, %v997_v15 }
 0xa59   :  { %v1009_v18 = vsel %vm594_vm1, %v1004_v17, -inf }
 0xa5a   :  { %1010 = vmax.xlane.f32.xlu0 %v1009_v18 }
 0xa5d   :  { %v1008_v19 = vpop.xlane.xlu1 %1007  ;;  %v802_v23 = vpop.f32.mrf.mxu2 }
 0xa5e   :  { %v1015_v20 = vsub.f32 %v1003_v2, %v1008_v19 }
 0xa60   :  { %v1018_v21 = vmul.f32 1.442695, %v1015_v20 }
 0xa62   :  { %3312 = vpow2.f32 %v1018_v21 }
 0xa65   :  { %v1000_v31 = vpop.f32.mrf.mxu2 }
 0xa66   :  { %v1005_v32 = vmul.f32 0.25, %v1000_v31 }
 0xa68   :  { %v3313_v25 = vpop.eup %3312  ;;  %v1012_v37 = vsel %vm4743_vm2, %v1005_v32, -inf }
 0xa69   :  { %v1024_v28 = vsel %vm594_vm1, %v3313_v25, 0.0 }
 0xa75   :  { %v863_v22 = vpop.f32.mrf.mxu0  ;;  %v3220_v62 = vpop.permute.xlu1 %3219 }
 0xa76   :  { %v872_v33 = vmul.f32 0.25, %v863_v22  ;;  %v3221_v2 = vunpack.i.l.bf16 %v3220_v62  ;;  %v3222_v4 = vunpack.i.h.bf16 %v3220_v62 }
 0xa78   :  { %v875_v24 = vsel %vm594_vm1, %v872_v33, -inf }
 0xa79   :  { %876 = vmax.xlane.f32.xlu0 %v875_v24 }
 0xa7d   :  { %v866_v26 = vpop.f32.mrf.mxu0 }
 0xa7e   :  { %v873_v27 = vmul.f32 0.25, %v866_v26 }
 0xa80   :  { %v878_v16 = vsel %vm594_vm1, %v873_v27, -inf }
 0xa81   :  { %879 = vmax.xlane.f32.xlu2 %v878_v16  ;;  %1025 = vadd.xlane.f32.xlu0 %v1024_v28 }
 0xa85   :  { %v869_v34 = vpop.f32.mrf.mxu0 }
 0xa86   :  { %v874_v35 = vmul.f32 0.25, %v869_v34 }
 0xa88   :  { %v881_v36 = vsel %vm4743_vm2, %v874_v35, -inf }
 0xa89   :  { %882 = vmax.xlane.f32.xlu2 %v881_v36  ;;  %1013 = vmax.xlane.f32.xlu0 %v1012_v37 }
 0xa9d   :  { %1043 = vrot.lane.b32.xlu0 %v3829_v30, %s3553_s25 }
 0xacd   :  { %v1011_v29 = vpop.xlane.xlu0 %1010 }
 0xace   :  { %v1016_v38 = vsub.f32 %v1004_v17, %v1011_v29 }
 0xad0   :  { %v1020_v41 = vmul.f32 1.442695, %v1016_v38 }
 0xad2   :  { %3314 = vpow2.f32 %v1020_v41 }
 0xad8   :  { %v3315_v42 = vpop.eup %3314 }
 0xad9   :  { %v1027_v43 = vsel %vm594_vm1, %v3315_v42, 0.0 }
 0xada   :  { %1028 = vadd.xlane.f32.xlu0 %v1027_v43  ;;  %v3138_v43 = vld [vmem:[%s4722_s8] sm:$0xff] }
 0xaec   :  { %v877_v44 = vpop.xlane.xlu0 %876 }
 0xaed   :  { %v884_v45 = vsub.f32 %v872_v33, %v877_v44 }
 0xaee   :  { %3224 = vrot.lane.b32.xlu0 %v3218_v7, %s3550_s5 }
 0xaef   :  { %v887_v46 = vmul.f32 1.442695, %v884_v45 }
 0xaf1   :  { %3316 = vpow2.f32 %v887_v46 }
 0xaf4   :  { %v880_v47 = vpop.xlane.xlu2 %879  ;;  %v1026_v48 = vpop.xlane.xlu0 %1025 }
 0xaf5   :  { %v885_v6 = vsub.f32 %v873_v27, %v880_v47  ;;  %v3269_v47 = vld [vmem:[%s4721_s7] ss:$0 sm:$0xff] }
 0xaf6   :  { %3229 = vrot.lane.b32.xlu0 %v3228_v14, %s3554_s26  ;;  %v3136_v14 = vld [vmem:[%s4757_s27] sm:$0xff] }
 0xaf7   :  { %v3317_v49 = vpop.eup %3316  ;;  %v889_v7 = vmul.f32 1.442695, %v885_v6 }
 0xaf8   :  { %v893_v50 = vsel %vm594_vm1, %v3317_v49, 0.0 }
 0xaf9   :  { %894 = vadd.xlane.f32.xlu2 %v893_v50 }
 0xafc   :  { %v1014_v51 = vpop.xlane.xlu0 %1013  ;;  %v883_v54 = vpop.xlane.xlu2 %882 }
 0xafd   :  { %v1017_v56 = vsub.f32 %v1005_v32, %v1014_v51  ;;  %v886_v58 = vsub.f32 %v874_v35, %v883_v54 }
 0xafe   :  { %812 = vrot.lane.b32.xlu0 %v802_v23, %s3554_s26 }
 0xaff   :  { %v1022_v57 = vmul.f32 1.442695, %v1017_v56  ;;  %v891_v59 = vmul.f32 1.442695, %v886_v58 }
 0xb01   :  { %3318 = vpow2.f32 %v1022_v57 }
 0xb02   :  { %3320 = vpow2.f32 %v891_v59 }
 0xb03   :  { %3322 = vrcp.f32 %v1026_v48 }
 0xb04   :  { %3324 = vpow2.f32 %v889_v7 }
 0xb07   :  { %v3319_v60 = vpop.eup %3318 }
 0xb08   :  { %v1030_v61 = vsel %vm4743_vm2, %v3319_v60, 0.0  ;;  %v3321_v63 = vpop.eup %3320 }
 0xb09   :  { %1031 = vadd.xlane.f32.xlu1 %v1030_v61  ;;  %v3323_v1 = vpop.eup %3322  ;;  %v899_v3 = vsel %vm4743_vm2, %v3321_v63, 0.0 }
 0xb0a   :  { %v1036_v5 = vmul.f32 %v3323_v1, %v3313_v25  ;;  %v3325_v9 = vpop.eup %3324 }
 0xb0b   :  { %v896_v13 = vsel %vm594_vm1, %v3325_v9, 0.0 }
 0xb0f   :  { %v1044_v0 = vpop.permute.xlu0 %1043 }
 0xb10   :  { %2958 = vmatpush.msk.msra.mxu2 %vm369_vm10, %v1044_v0 }
 0xb11   :  { %912 = vrot.lane.b32.xlu2 %v3829_v30, %s3550_s5  ;;  %900 = vadd.xlane.f32.xlu1 %v899_v3  ;;  %v3137_v30 = vld [vmem:[%s4757_s27 + $0x8] sm:$0xff] }
 0xb12   :  { %1072 = vmatpush.msra.mxu2 %v3221_v2  ;;  %1149 = vmatpush.bf16.msra.mxu0 %v3137_v30 }
 0xb14   :  { %1073 = vmatpush.msra.mxu2 %v3222_v4 }
 0xb15   :  { %2959 = vmatmul.msk.f32.vlgmr.msra.gmra.mxu2 %vm594_vm1, %v1036_v5 }
 0xb16   :  { %1150 = vmatpush.bf16.msra.mxu0 %v3136_v14 }
 0xb3a   :  { %897 = vadd.xlane.f32.xlu2 %v896_v13 }
 0xb4d   :  { %v1029_v15 = vpop.xlane.xlu0 %1028 }
 0xb4e   :  { %3326 = vrcp.f32 %v1029_v15 }
 0xb54   :  { %v3327_v17 = vpop.eup %3326 }
 0xb55   :  { %v1037_v18 = vmul.f32 %v3327_v17, %v3315_v42  ;;  %v3139_v42 = vld [vmem:[%s4722_s8 + $0x8] sm:$0xff] }
 0xb57   :  { %2960 = vmatmul.msk.f32.gmra.mxu2 %vm594_vm1, %v1037_v18 }
 0xb60   :  { %v3225_v19 = vpop.permute.xlu0 %3224 }
 0xb61   :  { %v3226_v16 = vunpack.i.l.bf16 %v3225_v19  ;;  %v3227_v28 = vunpack.i.h.bf16 %v3225_v19 }
 0xb68   :  { %v3230_v20 = vpop.permute.xlu0 %3229 }
 0xb69   :  { %v3232_v21 = vunpack.i.h.bf16 %v3230_v20  ;;  %v3231_v22 = vunpack.i.l.bf16 %v3230_v20 }
 0xb6b   :  { %v818_v33 = vsel %vm552_vm0, %v3865_v11, %v3232_v21  ;;  %v817_v23 = vsel %vm552_vm0, %v3923_v8, %v3231_v22 }
 0xb6c   :  { %v1111_v24 = vpack.c.bf16 %v818_v33, %v817_v23  ;;  %v895_v25 = vpop.xlane.xlu2 %894 }
 0xb6d   :  { %3328 = vrcp.f32 %v895_v25 }
 0xb6e   :  { %2970 = vmatmul.msk.bf16.vlgmr.msra.gmra.mxu0 %vm286_vm5, %v1111_v24 }
 0xb70   :  { %v813_v62 = vpop.permute.xlu0 %812 }
 0xb71   :  { %v819_v2 = vsel %vm552_vm0, %v3867_v12, %v813_v62 }
 0xb73   :  { %v3329_v27 = vpop.eup %3328 }
 0xb74   :  { %v913_v26 = vpop.permute.xlu2 %912  ;;  %v905_v31 = vmul.f32 %v3329_v27, %v3317_v49  ;;  %v3270_v27 = vld [vmem:[%s4723_s9] ss:$0 sm:$0xff] }
 0xb75   :  { %2948 = vmatpush.msk.msra.mxu3 %vm369_vm10, %v913_v26 }
 0xb77   :  { %941 = vmatpush.msra.mxu3 %v3226_v16 }
 0xb79   :  { %942 = vmatpush.msra.mxu3 %v3227_v28 }
 0xb7a   :  { %2949 = vmatmul.msk.f32.vlgmr.msra.gmra.mxu3 %vm594_vm1, %v905_v31 }
 0xb7b   :  { %1209 = vmatpush.bf16.msrb.mxu3 %v3139_v42 }
 0xb7c   :  { %v1032_v11 = vpop.xlane.xlu1 %1031 }
 0xb7d   :  { %3330 = vrcp.f32 %v1032_v11 }
 0xb7f   :  { %1210 = vmatpush.bf16.msrb.mxu3 %v3138_v43 }
 0xb83   :  { %v3331_v32 = vpop.eup %3330 }
 0xb84   :  { %v1038_v8 = vmul.f32 %v3331_v32, %v3319_v60  ;;  %v901_v35 = vpop.xlane.xlu1 %900 }
 0xb86   :  { %2961 = vmatmul.msk.f32.gmra.mxu2 %vm594_vm1, %v1038_v8 }
 0xb98   :  { %v1075_v41 = vpop.f32.mrf.mxu2 }
 0xbad   :  { %v898_v34 = vpop.xlane.xlu2 %897 }
 0xbae   :  { %3332 = vrcp.f32 %v898_v34 }
 0xbaf   :  { %3334 = vrcp.f32 %v901_v35 }
 0xbb4   :  { %v3333_v36 = vpop.eup %3332 }
 0xbb5   :  { %v906_v37 = vmul.f32 %v3333_v36, %v3325_v9  ;;  %v3335_v29 = vpop.eup %3334 }
 0xbb6   :  { %v907_v38 = vmul.f32 %v3335_v29, %v3321_v63 }
 0xbb7   :  { %2950 = vmatmul.msk.f32.gmra.mxu3 %vm594_vm1, %v906_v37 }
 0xbbf   :  { %2951 = vmatmul.msk.f32.gmra.mxu3 %vm594_vm1, %v907_v38 }
 0xbda   :  { %v1078_v44 = vpop.f32.mrf.mxu2 }
 0xbdb   :  { %v3233_v45 = vpack.i.bf16 %v1078_v44, %v1075_v41 }
 0xbdd   :  { %3234 = vrot.lane.b32.xlu1 %v3233_v45, %s3554_s26 }
 0xbeb   :  { %v1152_v46 = vpop.f32.mrf.mxu0 }
 0xbec   :  { %v1153_v48 = vadd.f32 %v3269_v47, %v1152_v46 }
 0xbee   :  { %v3973_v51 = vadd.f32 %v1153_v48, %v3748_v39 }
 0xbf3   :  { %v1154_v49 = vpop.f32.mrf.mxu0 }
 0xbf4   :  { %v1155_v50 = vadd.f32 %v3269_v47, %v1154_v49 }
 0xbf6   :  { %v3976_v54 = vadd.f32 %v1155_v50, %v3750_v40 }
 0xbf8   :  { %v1171_v56 = vpack.c.bf16 %v3976_v54, %v3973_v51 }
 0xbfa   :  { %2981 = vmatmul.msk.bf16.vlgmr.msrb.gmra.mxu3 %vm286_vm5, %v1171_v56 }
 0xbfd   :  { %v944_v58 = vpop.f32.mrf.mxu3 }
 0xc09   :  { %v1081_v57 = vpop.f32.mrf.mxu2 }
 0xc0a   :  { %1091 = vrot.lane.b32.xlu0 %v1081_v57, %s3554_s26  ;;  %v3555_v57 = vmov 2176.0  }
 0xc0b   :  { %3336 = vrcp.f32 %v3555_v57 }
 0xc3a   :  { %v947_v63 = vpop.f32.mrf.mxu3 }
 0xc42   :  { %v950_v6 = vpop.f32.mrf.mxu3 }
 0xc4f   :  { %v3235_v59 = vpop.permute.xlu1 %3234 }
 0xc50   :  { %v3237_v60 = vunpack.i.h.bf16 %v3235_v59  ;;  %v3236_v61 = vunpack.i.l.bf16 %v3235_v59 }
 0xc52   :  { %v1096_v39 = vsel %vm552_vm0, %v944_v58, %v3236_v61  ;;  %v1097_v0 = vsel %vm552_vm0, %v947_v63, %v3237_v60  ;;  %v3337_v58 = vpop.eup %3336 }
 0xc53   :  { %v1102_v40 = vrot.slane %v1096_v39, 7  ;;  %v1103_v1 = vrot.slane %v1097_v0, 7  ;;  %v1250_v59 = vmul.f32 2176.0, %v3337_v58  ;;  %vm1254_vm7 = vweird.f32 %v3337_v58 }
 0xc55   :  { %v1104_v3 = vsel %vm369_vm10, %v1102_v40, %v1103_v1  ;;  %v1110_v4 = vsel %vm369_vm10, %v819_v2, %v1102_v40  ;;  %v1251_v60 = vsub.f32 1.0, %v1250_v59 }
 0xc56   :  { %v1112_v5 = vpack.c.bf16 %v1104_v3, %v1110_v4 }
 0xc57   :  { %v1252_v61 = vmul.f32 %v3337_v58, %v1251_v60 }
 0xc58   :  { %2971 = vmatmul.msk.bf16.gmra.mxu0 %vm286_vm5, %v1112_v5 }
 0xc59   :  { %v1253_v62 = vadd.f32 %v3337_v58, %v1252_v61 }
 0xc5b   :  { %v4015_v63 = vsel %vm1254_vm7, %v3337_v58, %v1253_v62 }
 0xc7c   :  { %v1092_v7 = vpop.permute.xlu0 %1091 }
 0xc7d   :  { %v1098_v9 = vsel %vm552_vm0, %v950_v6, %v1092_v7  ;;  %v1212_v25 = vpop.f32.mrf.mxu3 }
 0xc7e   :  { %v1105_v13 = vrot.slane %v1098_v9, 7  ;;  %v1213_v31 = vadd.f32 %v3270_v27, %v1212_v25 }
 0xc80   :  { %v1106_v30 = vsel %vm369_vm10, %v1103_v1, %v1105_v13  ;;  %v1229_v8 = vsel %vm1228_vm4, %v1213_v31, 0.0 }
 0xc81   :  { %v1113_v14 = vpack.c.bf16 %v1106_v30, %v1106_v30 }
 0xc83   :  { %2972 = vmatmul.msk.bf16.gmra.mxu0 %vm286_vm5, %v1113_v14 }
 0xc85   :  { %v1214_v26 = vpop.f32.mrf.mxu3 }
 0xc86   :  { %v1215_v16 = vadd.f32 %v3270_v27, %v1214_v26 }
 0xcd5   :  { %v1157_v15 = vpop.f32.mrf.mxu0 }
 0xcd6   :  { %v1158_v17 = vadd.f32 %v3269_v47, %v1157_v15 }
 0xcd8   :  { %v3993_v19 = vadd.f32 %v1158_v17, %v3761_v53 }
 0xcdd   :  { %v1159_v12 = vpop.f32.mrf.mxu0 }
 0xcde   :  { %v1160_v18 = vadd.f32 %v3269_v47, %v1159_v12 }
 0xce0   :  { %v3996_v20 = vadd.f32 %v1160_v18, %v3758_v52 }
 0xce2   :  { %v1172_v21 = vpack.c.bf16 %v3996_v20, %v3993_v19 }
 0xce4   :  { %2982 = vmatmul.msk.bf16.gmra.mxu3 %vm286_vm5, %v1172_v21 }
 0xd00   :  { %v1162_v22 = vpop.f32.mrf.mxu0 }
 0xd01   :  { %v1163_v33 = vadd.f32 %v3269_v47, %v1162_v22 }
 0xd03   :  { %v4002_v23 = vadd.f32 %v1163_v33, %v3766_v55  ;;  %v1230_v55 = vsel %vm1228_vm4, %v1215_v16, 0.0 }
 0xd04   :  { %v1231_v35 = vadd.f32 %v1230_v55, %v1229_v8 }
 0xd05   :  { %v1173_v24 = vpack.c.bf16 %v4002_v23, %v4002_v23 }
 0xd07   :  { %2983 = vmatmul.msk.bf16.gmra.mxu3 %vm286_vm5, %v1173_v24 }
 0xd08   :  { %v1164_v53 = vpop.f32.mrf.mxu0 }
 0xd67   :  { %v1217_v52 = vpop.f32.mrf.mxu3 }
 0xd68   :  { %v1218_v11 = vadd.f32 %v3270_v27, %v1217_v52 }
 0xd6a   :  { %v1232_v34 = vsel %vm1228_vm4, %v1218_v11, 0.0 }
 0xd6b   :  { %v1233_v37 = vadd.f32 %v1232_v34, %v1231_v35  ;;  %v3140_v34 = vld [vmem:[%s4724_s10] sm:$0xff] }
 0xd6f   :  { %v1219_v28 = vpop.f32.mrf.mxu3 }
 0xd70   :  { %v1220_v32 = vadd.f32 %v3270_v27, %v1219_v28  ;;  %v3143_v28 = vld [vmem:[%s4724_s10 + $0x18] sm:$0xff] }
 0xd71   :  { %1567 = vmatpush.bf16.msra.mxu1 %v3143_v28 }
 0xd72   :  { %v1234_v36 = vsel %vm1228_vm4, %v1220_v32, 0.0 }
 0xd73   :  { %v1235_v41 = vadd.f32 %v1234_v36, %v1233_v37 }
 0xd8a   :  { %v1222_v29 = vpop.f32.mrf.mxu3 }
 0xd8b   :  { %v1223_v38 = vadd.f32 %v3270_v27, %v1222_v29 }
 0xd8d   :  { %v1237_v42 = vsel %vm4742_vm6, %v1223_v38, 0.0 }
 0xd8e   :  { %v1238_v43 = vadd.f32 %v1237_v42, %v1235_v41 }
 0xd90   :  { %1239 = vadd.xlane.f32.xlu0 %v1238_v43  ;;  %v1303_v43 = vstv %s1226_s16 }
 0xd92   :  { %v1224_v44 = vpop.f32.mrf.mxu3 }
 0xe03   :  { %v1240_v45 = vpop.xlane.xlu0 %1239 }
 0xe04   :  { %v1241_v46 = vrot.slane %v1240_v45, 4 }
 0xe06   :  { %v1242_v47 = vadd.f32 %v1241_v46, %v1240_v45 }
 0xe08   :  { %v1243_v48 = vrot.slane %v1242_v47, 2 }
 0xe0a   :  { %v1244_v49 = vadd.f32 %v1243_v48, %v1242_v47  ;;  %v1309_v48 = vstv %s1227_s18 }
 0xe0c   :  { %v1245_v50 = vrot.slane %v1244_v49, 1 }
 0xe0e   :  { %v1246_v56 = vadd.f32 %v1245_v50, %v1244_v49 }
 0xe10   :  { %3174 = vpush %v1246_v56 }
 0xe41   :  { %s3175_s1 = spop %3174 }
 0xe42   :  { %v1248_v39 = vstv %s3175_s1 }
 0xe43   :  { %v1256_v0 = vmul.f32 %v4015_v63, %v1248_v39 }
 0xe45   :  { %v1257_v40 = vsub.f32 %v1213_v31, %v1256_v0  ;;  %v1258_v1 = vsub.f32 %v1215_v16, %v1256_v0  ;;  %v1259_v2 = vsub.f32 %v1218_v11, %v1256_v0  ;;  %v1260_v3 = vsub.f32 %v1220_v32, %v1256_v0  ;;  %v3142_v31 = vld [vmem:[%s4724_s10 + $0x10] sm:$0xff]  ;;  %v3141_v11 = vld [vmem:[%s4724_s10 + $0x8] sm:$0xff] }
 0xe46   :  { %v4018_v4 = vsub.f32 %v1223_v38, %v1256_v0  ;;  %1568 = vmatpush.bf16.msra.mxu1 %v3142_v31 }
 0xe47   :  { %v1262_v5 = vmul.f32 %v1257_v40, %v1257_v40  ;;  %v1263_v6 = vmul.f32 %v1258_v1, %v1258_v1  ;;  %v1264_v7 = vmul.f32 %v1259_v2, %v1259_v2  ;;  %v1265_v9 = vmul.f32 %v1260_v3, %v1260_v3 }
 0xe48   :  { %v1266_v15 = vmul.f32 %v4018_v4, %v4018_v4 }
 0xe49   :  { %v1267_v13 = vsel %vm1228_vm4, %v1262_v5, 0.0  ;;  %v1268_v30 = vsel %vm1228_vm4, %v1263_v6, 0.0  ;;  %v1270_v17 = vsel %vm1228_vm4, %v1264_v7, 0.0  ;;  %v1272_v18 = vsel %vm1228_vm4, %v1265_v9, 0.0 }
 0xe4a   :  { %v1269_v14 = vadd.f32 %v1268_v30, %v1267_v13  ;;  %v1274_v22 = vsel %vm4742_vm6, %v1266_v15, 0.0  ;;  %1569 = vmatpush.bf16.msra.mxu1 %v3141_v11 }
 0xe4c   :  { %v1271_v12 = vadd.f32 %v1270_v17, %v1269_v14 }
 0xe4e   :  { %v1273_v21 = vadd.f32 %v1272_v18, %v1271_v12  ;;  %1570 = vmatpush.bf16.msra.mxu1 %v3140_v34 }
 0xe50   :  { %v1275_v33 = vadd.f32 %v1274_v22, %v1273_v21 }
 0xe52   :  { %1276 = vadd.xlane.f32.xlu1 %v1275_v33 }
 0xec5   :  { %v1277_v24 = vpop.xlane.xlu1 %1276 }
 0xec6   :  { %v1278_v53 = vrot.slane %v1277_v24, 4 }
 0xec8   :  { %v1279_v25 = vadd.f32 %v1278_v53, %v1277_v24 }
 0xeca   :  { %v1280_v26 = vrot.slane %v1279_v25, 2 }
 0xecc   :  { %v1281_v52 = vadd.f32 %v1280_v26, %v1279_v25 }
 0xece   :  { %v1282_v27 = vrot.slane %v1281_v52, 1 }
 0xed0   :  { %v1283_v16 = vadd.f32 %v1282_v27, %v1281_v52 }
 0xed2   :  { %3176 = vpush %v1283_v16 }
 0xf03   :  { %s3177_s28 = spop %3176 }
 0xf04   :  { %v1285_v55 = vstv %s3177_s28 }
 0xf05   :  { %v1286_v32 = vmul.f32 %v1285_v55, %v4015_v63 }
 0xf07   :  { %v1287_v8 = vadd.f32 1e-05, %v1286_v32 }
 0xf09   :  { %3338 = vrsqrt.f32 %v1287_v8  ;;  %vm1294_vm9 = vweird.f32 %v1287_v8 }
 0xf0f   :  { %v3339_v35 = vpop.eup %3338 }
 0xf10   :  { %v1289_v36 = vmul.f32 %v3339_v35, %v1287_v8  ;;  %vm1295_vm8 = vweird.f32 %v3339_v35 }
 0xf11   :  { %vm1296_vm12 = vmor %vm1294_vm9, %vm1295_vm8 }
 0xf12   :  { %v1290_v37 = vmul.f32 %v3339_v35, %v1289_v36 }
 0xf14   :  { %v1291_v29 = vmul.f32 0.5, %v1290_v37 }
 0xf16   :  { %v1292_v38 = vsub.f32 1.5, %v1291_v29 }
 0xf18   :  { %v1293_v41 = vmul.f32 %v3339_v35, %v1292_v38 }
 0xf1a   :  { %v1297_v42 = vsel %vm1296_vm12, %v3339_v35, %v1293_v41 }
 0xf1b   :  { %v1298_v44 = vmul.f32 %v1297_v42, %v1257_v40  ;;  %v1299_v45 = vmul.f32 %v1297_v42, %v1258_v1  ;;  %v1300_v46 = vmul.f32 %v1297_v42, %v1259_v2  ;;  %v1301_v47 = vmul.f32 %v1297_v42, %v1260_v3 }
 0xf1c   :  { %v1302_v30 = vmul.f32 %v1297_v42, %v4018_v4 }
 0xf1d   :  { %v1304_v49 = vmul.f32 %v1303_v43, %v1298_v44  ;;  %v1305_v50 = vmul.f32 %v1303_v43, %v1299_v45  ;;  %v1306_v56 = vmul.f32 %v1303_v43, %v1300_v46  ;;  %v1307_v57 = vmul.f32 %v1303_v43, %v1301_v47 }
 0xf1e   :  { %v1308_v17 = vmul.f32 %v1303_v43, %v1302_v30 }
 0xf1f   :  { %v4040_v58 = vadd.f32 %v1309_v48, %v1304_v49  ;;  %v4042_v59 = vadd.f32 %v1309_v48, %v1305_v50  ;;  %v4044_v60 = vadd.f32 %v1309_v48, %v1306_v56  ;;  %v4046_v61 = vadd.f32 %v1309_v48, %v1307_v57 }
 0xf20   :  { %v4076_v24 = vadd.f32 %v1309_v48, %v1308_v17 }
 0xf21   :  { %v4049_v62 = vmul.f32 0.70710677, %v4040_v58  ;;  %v4052_v39 = vmul.f32 0.70710677, %v4042_v59  ;;  %v4055_v0 = vmul.f32 0.70710677, %v4044_v60 }
 0xf22   :  { %v4058_v40 = vmul.f32 0.70710677, %v4046_v61  ;;  %v4082_v34 = vmul.f32 0.70710677, %v4076_v24 }
 0xf23   :  { %v1335_v1 = vand.u32 2147483647, %v4049_v62  ;;  %v1336_v2 = vand.u32 2147483647, %v4052_v39  ;;  %v4063_v6 = vand.u32 2147483647, %v4055_v0 }
 0xf24   :  { %v4066_v7 = vand.u32 2147483647, %v4058_v40  ;;  %v4089_v41 = vand.u32 2147483647, %v4082_v34 }
 0xf25   :  { %v1340_v3 = vmul.f32 0.3275911, %v1335_v1  ;;  %v1341_v5 = vmul.f32 0.3275911, %v1336_v2  ;;  %v1342_v14 = vmul.f32 0.3275911, %v4063_v6 }
 0xf26   :  { %v1343_v15 = vmul.f32 0.3275911, %v4066_v7  ;;  %v1470_v12 = vsub.f32 0.0, %v1335_v1  ;;  %v1471_v21 = vsub.f32 0.0, %v1336_v2  ;;  %v1472_v55 = vsub.f32 0.0, %v4063_v6 }
 0xf27   :  { %v1345_v9 = vadd.f32 1.0, %v1340_v3  ;;  %v1346_v13 = vadd.f32 1.0, %v1341_v5  ;;  %v4071_v18 = vadd.f32 1.0, %v1342_v14  ;;  %v1473_v8 = vsub.f32 0.0, %v4066_v7 }
 0xf28   :  { %v4073_v22 = vadd.f32 1.0, %v1343_v15  ;;  %v1475_v26 = vmul.f32 %v1470_v12, %v1335_v1  ;;  %v1476_v16 = vmul.f32 %v1471_v21, %v1336_v2  ;;  %v1344_v49 = vmul.f32 0.3275911, %v4089_v41 }
 0xf29   :  { %3340 = vrcp.f32 %v1345_v9  ;;  %v1359_v25 = vand.u32 2147483647, %v1345_v9  ;;  %v1361_v52 = vand.u32 2147483648, %v1345_v9  ;;  %v1374_v31 = vand.u32 2147483647, %v1346_v13 }
 0xf2a   :  { %3342 = vrcp.f32 %v1346_v13  ;;  %v1376_v11 = vand.u32 2147483648, %v1346_v13  ;;  %vm1355_vm13 = vweird.f32 %v1345_v9  ;;  %vm1370_vm7 = vweird.f32 %v1346_v13 }
 0xf2b   :  { %3344 = vrcp.f32 %v4071_v18  ;;  %vm4084_vm15 = vcmp.eq.f32.partialorder %v1359_v25, 8.507059e+37  ;;  %v1362_v29 = vor.u32 1.1754944e-38, %v1361_v52  ;;  %vm4091_vm9 = vcmp.eq.f32.partialorder %v1374_v31, 8.507059e+37 }
 0xf2c   :  { %3346 = vrcp.f32 %v4073_v22  ;;  %v1377_v44 = vor.u32 1.1754944e-38, %v1376_v11  ;;  %vm1385_vm6 = vweird.f32 %v4071_v18  ;;  %v1389_v48 = vand.u32 2147483647, %v4071_v18 }
 0xf2d   :  { %v1391_v57 = vand.u32 2147483648, %v4071_v18  ;;  %v4107_v5 = vadd.f32 1.0, %v1344_v49  ;;  %v1404_v17 = vand.u32 2147483647, %v4073_v22  ;;  %v1406_v12 = vand.u32 2147483648, %v4073_v22 }
 0xf2e   :  { %v1480_v25 = vmul.f32 1.442695, %v1475_v26 }
 0xf2f   :  { %v3341_v33 = vpop.eup %3340  ;;  %3348 = vrcp.f32 %v4107_v5  ;;  %v1392_v52 = vor.u32 1.1754944e-38, %v1391_v57  ;;  %v1407_v36 = vor.u32 1.1754944e-38, %v1406_v12 }
 0xf30   :  { %v3343_v53 = vpop.eup %3342  ;;  %v1351_v4 = vmul.f32 %v3341_v33, %v1345_v9  ;;  %vm1356_vm14 = vweird.f32 %v3341_v33  ;;  %3350 = vpow2.f32 %v1480_v25 }
 0xf31   :  { %v1366_v27 = vmul.f32 %v3343_v53, %v1346_v13  ;;  %v3345_v37 = vpop.eup %3344  ;;  %vm1371_vm8 = vweird.f32 %v3343_v53  ;;  %vm1357_vm12 = vmor %vm1355_vm13, %vm1356_vm14 }
 0xf32   :  { %v1352_v28 = vsub.f32 1.0, %v1351_v4  ;;  %v1381_v45 = vmul.f32 %v3345_v37, %v4071_v18  ;;  %v3347_v46 = vpop.eup %3346  ;;  %vm1372_vm2 = vmor %vm1370_vm7, %vm1371_vm8  ;;  %vm1386_vm13 = vweird.f32 %v3345_v37  ;;  %vm1390_vm7 = vcmp.eq.f32.partialorder %v1389_v48, 8.507059e+37 }
 0xf33   :  { %v1367_v32 = vsub.f32 1.0, %v1366_v27  ;;  %v1396_v1 = vmul.f32 %v3347_v46, %v4073_v22  ;;  %vm1387_vm14 = vmor %vm1385_vm6, %vm1386_vm13  ;;  %vm1415_vm13 = vweird.f32 %v4107_v5 }
 0xf34   :  { %v1353_v35 = vmul.f32 %v3341_v33, %v1352_v28  ;;  %v1382_v56 = vsub.f32 1.0, %v1381_v45 }
 0xf35   :  { %v1368_v38 = vmul.f32 %v3343_v53, %v1367_v32  ;;  %v1397_v14 = vsub.f32 1.0, %v1396_v1  ;;  %v1482_v32 = vmul.f32 1.442695, %v1476_v16  ;;  %v1419_v1 = vand.u32 2147483647, %v4107_v5 }
 0xf36   :  { %v1354_v42 = vadd.f32 %v3341_v33, %v1353_v35  ;;  %v1383_v30 = vmul.f32 %v3345_v37, %v1382_v56 }
 0xf37   :  { %v1369_v47 = vadd.f32 %v3343_v53, %v1368_v38  ;;  %v3349_v38 = vpop.eup %3348  ;;  %3352 = vpow2.f32 %v1482_v32 }
 0xf38   :  { %v1358_v50 = vsel %vm1357_vm12, %v3341_v33, %v1354_v42  ;;  %v1384_v33 = vadd.f32 %v3345_v37, %v1383_v30  ;;  %v1411_v16 = vmul.f32 %v3349_v38, %v4107_v5  ;;  %vm1416_vm6 = vweird.f32 %v3349_v38 }
 0xf39   :  { %v4105_v2 = vsel %vm4084_vm15, %v1362_v29, %v1358_v50  ;;  %v1373_v3 = vsel %vm1372_vm2, %v3343_v53, %v1369_v47  ;;  %v1398_v53 = vmul.f32 %v3347_v46, %v1397_v14  ;;  %vm1401_vm2 = vweird.f32 %v3347_v46  ;;  %v3351_v14 = vpop.eup %3350 }
 0xf3a   :  { %v4111_v9 = vsel %vm4091_vm9, %v1377_v44, %v1373_v3  ;;  %v1425_v13 = vmul.f32 1.0614054, %v4105_v2  ;;  %vm1400_vm15 = vweird.f32 %v4073_v22  ;;  %v1388_v28 = vsel %vm1387_vm14, %v3345_v37, %v1384_v33 }
 0xf3b   :  { %v1426_v15 = vmul.f32 1.0614054, %v4111_v9  ;;  %v1399_v31 = vadd.f32 %v3347_v46, %v1398_v53  ;;  %v4124_v35 = vsel %vm1390_vm7, %v1392_v52, %v1388_v28  ;;  %vm1402_vm8 = vmor %vm1400_vm15, %vm1401_vm2  ;;  %vm1405_vm9 = vcmp.eq.f32.partialorder %v1404_v17, 8.507059e+37 }
 0xf3c   :  { %v1430_v21 = vadd.f32 -1.4531521, %v1425_v13  ;;  %v1427_v18 = vmul.f32 1.0614054, %v4124_v35  ;;  %v1478_v47 = vmul.f32 %v1473_v8, %v4066_v7  ;;  %v1412_v56 = vsub.f32 1.0, %v1411_v16  ;;  %vm1417_vm2 = vmor %vm1415_vm13, %vm1416_vm6 }
 0xf3d   :  { %v1431_v4 = vadd.f32 -1.4531521, %v1426_v15  ;;  %v1403_v29 = vsel %vm1402_vm8, %v3347_v46, %v1399_v31  ;;  %v1477_v46 = vmul.f32 %v1472_v55, %v4063_v6  ;;  %v1421_v3 = vand.u32 2147483648, %v4107_v5  ;;  %v3353_v33 = vpop.eup %3352 }
 0xf3e   :  { %v1435_v27 = vmul.f32 %v1430_v21, %v4105_v2  ;;  %v4127_v22 = vsel %vm1405_vm9, %v1407_v36, %v1403_v29  ;;  %v1432_v44 = vadd.f32 -1.4531521, %v1427_v18  ;;  %v1413_v55 = vmul.f32 %v3349_v38, %v1412_v56 }
 0xf3f   :  { %v1436_v11 = vmul.f32 %v1431_v4, %v4111_v9  ;;  %v1428_v43 = vmul.f32 1.0614054, %v4127_v22  ;;  %vm1325_vm12 = vcmp.ge.f32.partialorder %v4049_v62, 0.0  ;;  %v1484_v8 = vmul.f32 1.442695, %v1477_v46 }
 0xf40   :  { %v1440_v26 = vadd.f32 1.4214138, %v1435_v27  ;;  %v1437_v50 = vmul.f32 %v1432_v44, %v4124_v35  ;;  %v1414_v21 = vadd.f32 %v3349_v38, %v1413_v55  ;;  %v1486_v4 = vmul.f32 1.442695, %v1478_v47 }
 0xf41   :  { %v1441_v42 = vadd.f32 1.4214138, %v1436_v11  ;;  %v1433_v49 = vadd.f32 -1.4531521, %v1428_v43  ;;  %vm1420_vm14 = vcmp.eq.f32.partialorder %v1419_v1, 8.507059e+37  ;;  %v1422_v25 = vor.u32 1.1754944e-38, %v1421_v3 }
 0xf42   :  { %v1445_v37 = vmul.f32 %v1440_v26, %v4105_v2  ;;  %v1442_v6 = vadd.f32 1.4214138, %v1437_v50  ;;  %v1418_v31 = vsel %vm1417_vm2, %v3349_v38, %v1414_v21  ;;  %vm1326_vm15 = vcmp.ge.f32.partialorder %v4052_v39, 0.0 }
 0xf43   :  { %v1446_v45 = vmul.f32 %v1441_v42, %v4111_v9  ;;  %v1438_v30 = vmul.f32 %v1433_v49, %v4127_v22  ;;  %3354 = vpow2.f32 %v1484_v8  ;;  %v1423_v11 = vsel %vm1420_vm14, %v1422_v25, %v1418_v31 }
 0xf44   :  { %v1450_v48 = vadd.f32 -0.28449672, %v1445_v37  ;;  %v1447_v12 = vmul.f32 %v1442_v6, %v4124_v35  ;;  %v1429_v29 = vmul.f32 1.0614054, %v1423_v11  ;;  %3356 = vpow2.f32 %v1486_v4 }
 0xf45   :  { %v1451_v57 = vadd.f32 -0.28449672, %v1446_v45  ;;  %v1443_v17 = vadd.f32 1.4214138, %v1438_v30  ;;  %v3556_v44 = vmov -1.0   ;;  %v1474_v45 = vsub.f32 0.0, %v4089_v41 }
 0xf46   :  { %v1455_v13 = vmul.f32 %v1450_v48, %v4105_v2  ;;  %v1452_v28 = vadd.f32 -0.28449672, %v1447_v12  ;;  %v1434_v43 = vadd.f32 -1.4531521, %v1429_v29  ;;  %v1330_v38 = vsel %vm1325_vm12, 1.0, %v3556_v44 }
 0xf47   :  { %v1456_v7 = vmul.f32 %v1451_v57, %v4111_v9  ;;  %v1448_v27 = vmul.f32 %v1443_v17, %v4127_v22  ;;  %v1315_v57 = vmul.f32 0.5, %v4040_v58  ;;  %v1316_v39 = vmul.f32 0.5, %v4042_v59 }
 0xf48   :  { %v1460_v15 = vadd.f32 0.2548296, %v1455_v13  ;;  %v1457_v26 = vmul.f32 %v1452_v28, %v4124_v35  ;;  %v1439_v49 = vmul.f32 %v1434_v43, %v1423_v11  ;;  %v1479_v8 = vmul.f32 %v1474_v45, %v4089_v41 }
 0xf49   :  { %v1461_v53 = vadd.f32 0.2548296, %v1456_v7  ;;  %v1453_v36 = vadd.f32 -0.28449672, %v1448_v27  ;;  %v3355_v50 = vpop.eup %3354  ;;  %vm1327_vm7 = vcmp.ge.f32.partialorder %v4055_v0, 0.0  ;;  %vm1328_vm8 = vcmp.ge.f32.partialorder %v4058_v40, 0.0 }
 0xf4a   :  { %v1465_v52 = vmul.f32 %v1460_v15, %v4105_v2  ;;  %v1462_v37 = vadd.f32 0.2548296, %v1457_v26  ;;  %v1444_v3 = vadd.f32 1.4214138, %v1439_v49  ;;  %v3357_v13 = vpop.eup %3356  ;;  %v1488_v21 = vmul.f32 1.442695, %v1479_v8 }
 0xf4b   :  { %v1466_v5 = vmul.f32 %v1461_v53, %v4111_v9  ;;  %v1458_v2 = vmul.f32 %v1453_v36, %v4127_v22  ;;  %v1331_v9 = vsel %vm1326_vm15, 1.0, %v3556_v44  ;;  %v1332_v59 = vsel %vm1327_vm7, 1.0, %v3556_v44 }
 0xf4c   :  { %v1490_v32 = vmul.f32 %v3351_v14, %v1465_v52  ;;  %v1467_v48 = vmul.f32 %v1462_v37, %v4124_v35  ;;  %v1449_v7 = vmul.f32 %v1444_v3, %v1423_v11  ;;  %3358 = vpow2.f32 %v1488_v21 }
 0xf4d   :  { %v1491_v18 = vmul.f32 %v3353_v33, %v1466_v5  ;;  %v1463_v47 = vadd.f32 0.2548296, %v1458_v2  ;;  %v1333_v33 = vsel %vm1328_vm8, 1.0, %v3556_v44  ;;  %v1317_v27 = vmul.f32 0.5, %v4044_v60 }
 0xf4e   :  { %v1495_v42 = vsub.f32 1.0, %v1490_v32  ;;  %v1492_v6 = vmul.f32 %v3355_v50, %v1467_v48  ;;  %v1454_v15 = vadd.f32 -0.28449672, %v1449_v7  ;;  %v1318_v40 = vmul.f32 0.5, %v4046_v61 }
 0xf4f   :  { %v1496_v16 = vsub.f32 1.0, %v1491_v18  ;;  %v1468_v62 = vmul.f32 %v1463_v47, %v4127_v22  ;;  %vm1329_vm9 = vcmp.ge.f32.partialorder %v4082_v34, 0.0  ;;  %v3271_v34 = vld [vmem:[%s4725_s11] ss:$0 sm:$0xff] }
 0xf50   :  { %v1500_v46 = vmul.f32 %v1495_v42, %v1330_v38  ;;  %v1497_v58 = vsub.f32 1.0, %v1492_v6  ;;  %v1459_v12 = vmul.f32 %v1454_v15, %v1423_v11  ;;  %v1334_v29 = vsel %vm1329_vm9, 1.0, %v3556_v44 }
 0xf51   :  { %v1501_v56 = vmul.f32 %v1496_v16, %v1331_v9  ;;  %v1493_v14 = vmul.f32 %v3357_v13, %v1468_v62 }
 0xf52   :  { %v1505_v1 = vadd.f32 1.0, %v1500_v46  ;;  %v1502_v53 = vmul.f32 %v1497_v58, %v1332_v59  ;;  %v1464_v41 = vadd.f32 0.2548296, %v1459_v12  ;;  %v3359_v28 = vpop.eup %3358 }
 0xf53   :  { %v1506_v30 = vadd.f32 1.0, %v1501_v56  ;;  %v1498_v22 = vsub.f32 1.0, %v1493_v14 }
 0xf54   :  { %v1510_v55 = vmul.f32 %v1505_v1, %v1315_v57  ;;  %v1507_v25 = vadd.f32 1.0, %v1502_v53  ;;  %v1469_v52 = vmul.f32 %v1464_v41, %v1423_v11  ;;  %v1319_v11 = vmul.f32 0.5, %v4076_v24 }
 0xf55   :  { %v1511_v35 = vmul.f32 %v1506_v30, %v1316_v39  ;;  %v1503_v4 = vmul.f32 %v1498_v22, %v1333_v33 }
 0xf56   :  { %v1512_v31 = vmul.f32 %v1507_v25, %v1317_v27  ;;  %v1494_v32 = vmul.f32 %v3359_v28, %v1469_v52 }
 0xf57   :  { %v1515_v17 = vpack.c.bf16 %v1511_v35, %v1510_v55  ;;  %v1508_v0 = vadd.f32 1.0, %v1503_v4 }
 0xf58   :  { %v1499_v26 = vsub.f32 1.0, %v1494_v32 }
 0xf59   :  { %3000 = vmatmul.msk.bf16.vlgmr.msra.gmra.mxu1 %vm1228_vm4, %v1515_v17  ;;  %v1513_v5 = vmul.f32 %v1508_v0, %v1318_v40 }
 0xf5a   :  { %v1504_v18 = vmul.f32 %v1499_v26, %v1334_v29 }
 0xf5b   :  { %v1516_v36 = vpack.c.bf16 %v1513_v5, %v1512_v31 }
 0xf5c   :  { %v1509_v42 = vadd.f32 1.0, %v1504_v18 }
 0xf5e   :  { %v1514_v2 = vmul.f32 %v1509_v42, %v1319_v11 }
 0xf60   :  { %v1517_v60 = vpack.c.bf16 %v1514_v2, %v1514_v2 }
 0xf69   :  { %3001 = vmatmul.msk.bf16.gmra.mxu1 %vm1228_vm4, %v1516_v36 }
 0xf79   :  { %3002 = vmatmul.msk.bf16.gmra.mxu1 %vm1228_vm4, %v1517_v60 }
 0xfd6   :  { %v1572_v61 = vpop.f32.mrf.mxu1 }
 0xfd7   :  { %v1573_v9 = vadd.f32 %v3271_v34, %v1572_v61  ;;  %v3145_v61 = vld [vmem:[%s4756_s14 + $0x18] sm:$0xff] }
 0xfd8   :  { %1706 = vmatpush.bf16.msrb.mxu2 %v3145_v61 }
 0xfd9   :  { %v4186_v24 = vadd.f32 %v1573_v9, %v3973_v51 }
 0xfdb   :  { %v1593_v56 = vsel %vm286_vm5, %v4186_v24, 0.0 }
 0xfde   :  { %v1574_v37 = vpop.f32.mrf.mxu1 }
 0xfdf   :  { %v1575_v38 = vadd.f32 %v3271_v34, %v1574_v37  ;;  %v3144_v37 = vld [vmem:[%s4756_s14 + $0x10] sm:$0xff] }
 0xfe0   :  { %1707 = vmatpush.bf16.msrb.mxu2 %v3144_v37 }
 0xfe1   :  { %v4183_v46 = vadd.f32 %v1575_v38, %v3976_v54 }
 0xfe3   :  { %v1594_v49 = vsel %vm286_vm5, %v4183_v46, 0.0 }
 0xfe4   :  { %v1595_v1 = vadd.f32 %v1594_v49, %v1593_v56 }
 0xfe6   :  { %v1577_v43 = vpop.f32.mrf.mxu1 }
 0xfe7   :  { %v1578_v16 = vadd.f32 %v3271_v34, %v1577_v43 }
 0xfe9   :  { %v4189_v48 = vadd.f32 %v1578_v16, %v3993_v19 }
 0xfeb   :  { %v1596_v54 = vsel %vm286_vm5, %v4189_v48, 0.0 }
 0xfec   :  { %v1597_v19 = vadd.f32 %v1596_v54, %v1595_v1 }
 0xfee   :  { %v1579_v45 = vpop.f32.mrf.mxu1 }
 0xfef   :  { %v1580_v47 = vadd.f32 %v3271_v34, %v1579_v45 }
 0xff1   :  { %v4194_v50 = vadd.f32 %v1580_v47, %v3996_v20 }
 0xff3   :  { %v1598_v51 = vsel %vm286_vm5, %v4194_v50, 0.0 }
 0xff4   :  { %v1599_v13 = vadd.f32 %v1598_v51, %v1597_v19  ;;  %v1665_v51 = vstv %s3004_s4  ;;  %s3093_s4 = sld [smem:[#allocation13 + $0x1]] }
 0xff6   :  { %v1582_v57 = vpop.f32.mrf.mxu1 }
 0xff7   :  { %v1583_v62 = vadd.f32 %v3271_v34, %v1582_v57  ;;  %v1659_v57 = vstv %s3003_s30  ;;  %s3092_s30 = sld [smem:[#allocation12 + $0x1]] }
 0xff9   :  { %v4203_v3 = vadd.f32 %v1583_v62, %v4002_v23 }
 0xffb   :  { %v1600_v20 = vsel %vm413_vm11, %v4203_v3, 0.0 }
 0xffc   :  { %v1601_v39 = vadd.f32 %v1600_v20, %v1599_v13 }
 0xffe   :  { %v1584_v30 = vpop.f32.mrf.mxu1  ;;  %1602 = vadd.xlane.f32.xlu2 %v1601_v39 }
0x1071   :  { %v1603_v6 = vpop.xlane.xlu2 %1602 }
0x1072   :  { %v1604_v55 = vrot.slane %v1603_v6, 4 }
0x1074   :  { %v1605_v14 = vadd.f32 %v1604_v55, %v1603_v6 }
0x1076   :  { %v1606_v7 = vrot.slane %v1605_v14, 2 }
0x1078   :  { %v1607_v8 = vadd.f32 %v1606_v7, %v1605_v14 }
0x107a   :  { %v1608_v35 = vrot.slane %v1607_v8, 1 }
0x107c   :  { %v1609_v15 = vadd.f32 %v1608_v35, %v1607_v8 }
0x107e   :  { %3178 = vpush %v1609_v15 }
0x10af   :  { %s3179_s15 = spop %3178 }
0x10b0   :  { %v1611_v17 = vstv %s3179_s15 }
0x10b1   :  { %v1612_v23 = vmul.f32 %v1611_v17, %v3772_v10 }
0x10b3   :  { %v1613_v58 = vsub.f32 %v4186_v24, %v1612_v23  ;;  %v1614_v22 = vsub.f32 %v4183_v46, %v1612_v23  ;;  %v1615_v12 = vsub.f32 %v4189_v48, %v1612_v23  ;;  %v1616_v21 = vsub.f32 %v4194_v50, %v1612_v23 }
0x10b4   :  { %v4213_v59 = vsub.f32 %v4203_v3, %v1612_v23 }
0x10b5   :  { %v1618_v33 = vmul.f32 %v1613_v58, %v1613_v58  ;;  %v1619_v53 = vmul.f32 %v1614_v22, %v1614_v22  ;;  %v1620_v4 = vmul.f32 %v1615_v12, %v1615_v12  ;;  %v1621_v41 = vmul.f32 %v1616_v21, %v1616_v21 }
0x10b6   :  { %v1622_v27 = vmul.f32 %v4213_v59, %v4213_v59 }
0x10b7   :  { %v1623_v25 = vsel %vm286_vm5, %v1618_v33, 0.0  ;;  %v1624_v0 = vsel %vm286_vm5, %v1619_v53, 0.0  ;;  %v1626_v40 = vsel %vm286_vm5, %v1620_v4, 0.0  ;;  %v1628_v31 = vsel %vm286_vm5, %v1621_v41, 0.0 }
0x10b8   :  { %v1625_v52 = vadd.f32 %v1624_v0, %v1623_v25  ;;  %v1630_v32 = vsel %vm413_vm11, %v1622_v27, 0.0 }
0x10ba   :  { %v1627_v28 = vadd.f32 %v1626_v40, %v1625_v52 }
0x10bc   :  { %v1629_v5 = vadd.f32 %v1628_v31, %v1627_v28 }
0x10be   :  { %v1631_v36 = vadd.f32 %v1630_v32, %v1629_v5 }
0x10c0   :  { %1632 = vadd.xlane.f32.xlu2 %v1631_v36 }
0x1133   :  { %v1633_v26 = vpop.xlane.xlu2 %1632 }
0x1134   :  { %v1634_v29 = vrot.slane %v1633_v26, 4 }
0x1136   :  { %v1635_v18 = vadd.f32 %v1634_v29, %v1633_v26 }
0x1138   :  { %v1636_v42 = vrot.slane %v1635_v18, 2 }
0x113a   :  { %v1637_v11 = vadd.f32 %v1636_v42, %v1635_v18 }
0x113c   :  { %v1638_v2 = vrot.slane %v1637_v11, 1 }
0x113e   :  { %v1639_v60 = vadd.f32 %v1638_v2, %v1637_v11 }
0x1140   :  { %3180 = vpush %v1639_v60 }
0x1171   :  { %s3181_s29 = spop %3180 }
0x1172   :  { %v1641_v43 = vstv %s3181_s29 }
0x1173   :  { %v1642_v34 = vmul.f32 %v1641_v43, %v3772_v10 }
0x1175   :  { %v1643_v38 = vadd.f32 1e-05, %v1642_v34 }
0x1177   :  { %3360 = vrsqrt.f32 %v1643_v38  ;;  %vm1650_vm12 = vweird.f32 %v1643_v38 }
0x117d   :  { %v3361_v9 = vpop.eup %3360 }
0x117e   :  { %v1645_v16 = vmul.f32 %v3361_v9, %v1643_v38  ;;  %vm1651_vm6 = vweird.f32 %v3361_v9 }
0x117f   :  { %vm1652_vm13 = vmor %vm1650_vm12, %vm1651_vm6 }
0x1180   :  { %v1646_v45 = vmul.f32 %v3361_v9, %v1645_v16 }
0x1182   :  { %v1647_v47 = vmul.f32 0.5, %v1646_v45 }
0x1184   :  { %v1648_v49 = vsub.f32 1.5, %v1647_v47 }
0x1186   :  { %v1649_v56 = vmul.f32 %v3361_v9, %v1648_v49 }
0x1188   :  { %v1653_v54 = vsel %vm1652_vm13, %v3361_v9, %v1649_v56 }
0x1189   :  { %v1654_v1 = vmul.f32 %v1653_v54, %v1613_v58  ;;  %v1655_v62 = vmul.f32 %v1653_v54, %v1614_v22  ;;  %v1656_v6 = vmul.f32 %v1653_v54, %v1615_v12  ;;  %v1657_v55 = vmul.f32 %v1653_v54, %v1616_v21 }
0x118a   :  { %v1658_v17 = vmul.f32 %v1653_v54, %v4213_v59 }
0x118b   :  { %v1660_v19 = vmul.f32 %v1659_v57, %v1654_v1  ;;  %v1661_v13 = vmul.f32 %v1659_v57, %v1655_v62  ;;  %v1662_v14 = vmul.f32 %v1659_v57, %v1656_v6  ;;  %v1663_v7 = vmul.f32 %v1659_v57, %v1657_v55 }
0x118c   :  { %v1664_v23 = vmul.f32 %v1659_v57, %v1658_v17 }
0x118d   :  { %v1666_v20 = vadd.f32 %v1665_v51, %v1660_v19  ;;  %v1667_v39 = vadd.f32 %v1665_v51, %v1661_v13  ;;  %v1668_v8 = vadd.f32 %v1665_v51, %v1662_v14  ;;  %v1669_v35 = vadd.f32 %v1665_v51, %v1663_v7 }
0x118e   :  { %v1670_v58 = vadd.f32 %v1665_v51, %v1664_v23 }
0x118f   :  { %v1671_v30 = vpack.c.bf16 %v1667_v39, %v1666_v20  ;;  %v1672_v15 = vpack.c.bf16 %v1669_v35, %v1668_v8 }
0x1190   :  { %v1673_v22 = vpack.c.bf16 %v1670_v58, %v1670_v58 }
0x1191   :  { %3017 = vmatmul.msk.bf16.vlgmr.msrb.gmra.mxu2 %vm286_vm5, %v1671_v30 }
0x11a1   :  { %3018 = vmatmul.msk.bf16.gmra.mxu2 %vm286_vm5, %v1672_v15 }
0x11b1   :  { %3019 = vmatmul.msk.bf16.gmra.mxu2 %vm286_vm5, %v1673_v22 }
0x1214   :  { %v4233_v33 = vpop.f32.mrf.mxu2 }
0x1215   :  { %1851 = vrot.lane.b32.xlu1 %v4233_v33, %s3552_s6  ;;  %1857 = vrot.lane.b32.xlu0 %v4233_v33, %s3551_s24 }
0x121c   :  { %v4239_v12 = vpop.f32.mrf.mxu2 }
0x121d   :  { %v4341_v58 = vpack.i.bf16 %v4233_v33, %v4239_v12 }
0x1224   :  { %v4241_v21 = vpop.f32.mrf.mxu2 }
0x1225   :  { %1855 = vrot.lane.b32.xlu0 %v4241_v21, %s3552_s6  ;;  %1861 = vrot.lane.b32.xlu2 %v4241_v21, %s3551_s24  ;;  %v1999_v53 = vrot.slane %v4241_v21, 1 }
0x122c   :  { %v1716_v59 = vpop.f32.mrf.mxu2 }
0x122d   :  { %v2000_v4 = vrot.slane %v1716_v59, 1  ;;  %1859 = vrot.lane.b32.xlu2 %v4239_v12, %s3551_s24 }
0x122f   :  { %v4251_v41 = vsel %vm822_vm3, %v1999_v53, %v2000_v4 }
0x1230   :  { %2129 = vrot.lane.b32.xlu0 %v4251_v41, %s3552_s6  ;;  %2135 = vrot.lane.b32.xlu1 %v4251_v41, %s3551_s24 }
0x1234   :  { %v1719_v25 = vpop.f32.mrf.mxu2 }
0x1235   :  { %v4257_v0 = vrot.slane %v1719_v25, 1  ;;  %1853 = vrot.lane.b32.xlu2 %v4239_v12, %s3552_s6 }
0x1237   :  { %v4263_v52 = vsel %vm822_vm3, %v2000_v4, %v4257_v0  ;;  %vm4762_vm3 = vcmask 131072  }
0x1238   :  { %1728 = vrot.lane.b32.xlu1 %v4239_v12, %s3549_s19  ;;  %2131 = vrot.lane.b32.xlu0 %v4263_v52, %s3552_s6  ;;  %v4347_v22 = vpack.i.bf16 %v4251_v41, %v4263_v52  ;;  %vm4763_vm2 = vmmov %vm4762_vm3 }
0x1239   :  { %vm4764_vm14 = vmmov %vm4763_vm2 }
0x123a   :  { %vm4765_vm15 = vmmov %vm4763_vm2 }
0x123b   :  { %vm4766_vm7 = vmmov %vm4763_vm2 }
0x123c   :  { %v1721_v27 = vpop.f32.mrf.mxu2  ;;  %vm4767_vm8 = vmmov %vm4763_vm2 }
0x123d   :  { %2139 = vrot.lane.b32.xlu2 %v4257_v0, %s3551_s24  ;;  %vm4768_vm9 = vmmov %vm4763_vm2 }
0x123e   :  { %vm4769_vm6 = vmmov %vm4763_vm2 }
0x1240   :  { %2008 = vrot.lane.b32.xlu1 %v4257_v0, %s3549_s19  ;;  %2006 = vrot.lane.b32.xlu0 %v4263_v52, %s3549_s19 }
0x1245   :  { %2137 = vrot.lane.b32.xlu2 %v4263_v52, %s3551_s24 }
0x1248   :  { %2004 = vrot.lane.b32.xlu1 %v4251_v41, %s3549_s19 }
0x124d   :  { %1730 = vrot.lane.b32.xlu2 %v4241_v21, %s3549_s19 }
0x1255   :  { %1726 = vrot.lane.b32.xlu2 %v4233_v33, %s3549_s19 }
0x125d   :  { %2133 = vrot.lane.b32.xlu2 %v4257_v0, %s3552_s6 }
0x1265   :  { %1941 = vrot.lane.b32.xlu2 %v4241_v21, %s3553_s25 }
0x127f   :  { %v1862_v40 = vpop.permute.xlu2 %1861 }
0x1280   :  { %3030 = vmatpush.xpose.msk.msrb.mxu1 %vm552_vm0, %v1862_v40 }
0x1287   :  { %v1860_v28 = vpop.permute.xlu2 %1859  ;;  %v1858_v31 = vpop.permute.xlu0 %1857 }
0x1288   :  { %3031 = vmatpush.xpose.msk.msrb.mxu1 %vm552_vm0, %v1860_v28  ;;  %v1852_v5 = vpop.permute.xlu1 %1851 }
0x128c   :  { %3032 = vmatpush.xpose.msk.msrb.mxu1 %vm552_vm0, %v1858_v31 }
0x128f   :  { %3033 = vmatmul.msk.f32.vlgmr.msrb.gmra.mxu1 %vm552_vm0, %v1852_v5  ;;  %v1854_v32 = vpop.permute.xlu2 %1853 }
0x1297   :  { %3034 = vmatmul.msk.f32.gmra.mxu1 %vm552_vm0, %v1854_v32  ;;  %v2140_v36 = vpop.permute.xlu2 %2139  ;;  %v1856_v26 = vpop.permute.xlu0 %1855 }
0x1298   :  { %3050 = vmatpush.xpose.msk.msra.mxu1 %vm552_vm0, %v2140_v36 }
0x129f   :  { %3035 = vmatmul.msk.f32.gmra.mxu1 %vm552_vm0, %v1856_v26  ;;  %v2138_v29 = vpop.permute.xlu2 %2137 }
0x12a0   :  { %3051 = vmatpush.xpose.msk.msra.mxu1 %vm552_vm0, %v2138_v29 }
0x12a2   :  { %v2130_v18 = vpop.permute.xlu0 %2129  ;;  %v2136_v42 = vpop.permute.xlu1 %2135 }
0x12a4   :  { %3052 = vmatpush.xpose.msk.msra.mxu1 %vm552_vm0, %v2136_v42 }
0x12a7   :  { %3053 = vmatmul.msk.f32.vlgmr.msra.gmra.mxu1 %vm552_vm0, %v2130_v18  ;;  %v1731_v11 = vpop.permute.xlu2 %1730 }
0x12a8   :  { %3020 = vmatpush.xpose.msk.msrb.mxu0 %vm552_vm0, %v1731_v11 }
0x12aa   :  { %v1729_v2 = vpop.permute.xlu1 %1728  ;;  %v2132_v60 = vpop.permute.xlu0 %2131 }
0x12ac   :  { %3021 = vmatpush.xpose.msk.msrb.mxu0 %vm552_vm0, %v1729_v2 }
0x12af   :  { %3054 = vmatmul.msk.f32.gmra.mxu1 %vm552_vm0, %v2132_v60  ;;  %v1727_v61 = vpop.permute.xlu2 %1726 }
0x12b0   :  { %3022 = vmatpush.xpose.msk.msrb.mxu0 %vm552_vm0, %v1727_v61 }
0x12b2   :  { %v2009_v37 = vpop.permute.xlu1 %2008  ;;  %v2007_v43 = vpop.permute.xlu0 %2006 }
0x12b3   :  { %3023 = vmatmul.msk.f32.vlgmr.msrb.gmra.mxu0 %vm552_vm0, %v4233_v33 }
0x12b4   :  { %3040 = vmatpush.xpose.msk.msra.mxu0 %vm552_vm0, %v2009_v37 }
0x12b7   :  { %v2134_v34 = vpop.permute.xlu2 %2133 }
0x12b8   :  { %3041 = vmatpush.xpose.msk.msra.mxu0 %vm552_vm0, %v2007_v43  ;;  %3055 = vmatmul.msk.f32.gmra.mxu1 %vm552_vm0, %v2134_v34 }
0x12ba   :  { %v2005_v38 = vpop.permute.xlu1 %2004 }
0x12bb   :  { %3024 = vmatmul.msk.f32.gmra.mxu0 %vm552_vm0, %v4239_v12 }
0x12bc   :  { %3042 = vmatpush.xpose.msk.msra.mxu0 %vm552_vm0, %v2005_v38 }
0x12bf   :  { %v1942_v9 = vpop.permute.xlu2 %1941 }
0x12c0   :  { %3036 = vmatpush.msk.msra.mxu2 %vm369_vm10, %v1942_v9 }
0x12c3   :  { %3025 = vmatmul.msk.f32.gmra.mxu0 %vm552_vm0, %v4241_v21 }
0x12cb   :  { %3043 = vmatmul.msk.f32.vlgmr.msra.gmra.mxu0 %vm552_vm0, %v4251_v41 }
0x12d3   :  { %3044 = vmatmul.msk.f32.gmra.mxu0 %vm552_vm0, %v4263_v52 }
0x12db   :  { %3045 = vmatmul.msk.f32.gmra.mxu0 %vm552_vm0, %v4257_v0 }
0x130c   :  { %v1892_v16 = vpop.f32.mrf.mxu1 }
0x130d   :  { %v1901_v45 = vmul.f32 0.25, %v1892_v16 }
0x130f   :  { %v1904_v47 = vsel %vm594_vm1, %v1901_v45, -inf }
0x1310   :  { %1905 = vmax.xlane.f32.xlu0 %v1904_v47 }
0x1314   :  { %v1895_v49 = vpop.f32.mrf.mxu1 }
0x1315   :  { %v1902_v56 = vmul.f32 0.25, %v1895_v49 }
0x1317   :  { %v1907_v54 = vsel %vm594_vm1, %v1902_v56, -inf }
0x1318   :  { %1908 = vmax.xlane.f32.xlu2 %v1907_v54 }
0x131c   :  { %v1898_v57 = vpop.f32.mrf.mxu1 }
0x131d   :  { %v1903_v30 = vmul.f32 0.25, %v1898_v57 }
0x131f   :  { %v1910_v14 = vsel %vm4762_vm3, %v1903_v30, -inf }
0x1324   :  { %v2170_v1 = vpop.f32.mrf.mxu1 }
0x1325   :  { %v4353_v53 = vmul.f32 0.25, %v2170_v1 }
0x1327   :  { %v2182_v12 = vsel %vm594_vm1, %v4353_v53, -inf }
0x132c   :  { %v2173_v62 = vpop.f32.mrf.mxu1 }
0x132d   :  { %v4320_v51 = vmul.f32 0.25, %v2173_v62 }
0x132f   :  { %v2185_v19 = vsel %vm594_vm1, %v4320_v51, -inf }
0x1330   :  { %2186 = vmax.xlane.f32.xlu2 %v2185_v19  ;;  %v1761_v13 = vpop.f32.mrf.mxu0 }
0x1331   :  { %v4324_v20 = vmul.f32 0.25, %v1761_v13 }
0x1333   :  { %v1773_v39 = vsel %vm594_vm1, %v4324_v20, -inf }
0x1334   :  { %1774 = vmax.xlane.f32.xlu1 %v1773_v39 }
0x1335   :  { %v2176_v5 = vpop.f32.mrf.mxu1 }
0x1336   :  { %v4367_v26 = vmul.f32 0.25, %v2176_v5 }
0x1338   :  { %v1764_v6 = vpop.f32.mrf.mxu0  ;;  %v2188_v11 = vsel %vm4765_vm15, %v4367_v26, -inf }
0x1339   :  { %v4328_v55 = vmul.f32 0.25, %v1764_v6 }
0x133b   :  { %v1776_v7 = vsel %vm594_vm1, %v4328_v55, -inf }
0x133c   :  { %1911 = vmax.xlane.f32.xlu1 %v1910_v14  ;;  %1777 = vmax.xlane.f32.xlu0 %v1776_v7 }
0x1340   :  { %v1767_v8 = vpop.f32.mrf.mxu0 }
0x1341   :  { %v4351_v59 = vmul.f32 0.25, %v1767_v8 }
0x1343   :  { %v1779_v4 = vsel %vm4763_vm2, %v4351_v59, -inf }
0x1348   :  { %v2039_v35 = vpop.f32.mrf.mxu0 }
0x1349   :  { %v4361_v27 = vmul.f32 0.25, %v2039_v35 }
0x134b   :  { %v2051_v31 = vsel %vm594_vm1, %v4361_v27, -inf }
0x1350   :  { %2219 = vrot.lane.b32.xlu0 %v4257_v0, %s3553_s25  ;;  %v2042_v15 = vpop.f32.mrf.mxu0 }
0x1351   :  { %v4335_v17 = vmul.f32 0.25, %v2042_v15 }
0x1353   :  { %v2054_v23 = vsel %vm594_vm1, %v4335_v17, -inf }
0x1354   :  { %2055 = vmax.xlane.f32.xlu2 %v2054_v23 }
0x1355   :  { %3239 = vrot.lane.b32.xlu1 %v4341_v58, %s3553_s25 }
0x1358   :  { %3244 = vrot.lane.b32.xlu0 %v4347_v22, %s3553_s25  ;;  %v2045_v33 = vpop.f32.mrf.mxu0 }
0x1359   :  { %v4359_v25 = vmul.f32 0.25, %v2045_v33 }
0x135b   :  { %v2057_v28 = vsel %vm4764_vm14, %v4359_v25, -inf }
0x137f   :  { %1780 = vmax.xlane.f32.xlu1 %v1779_v4 }
0x1382   :  { %2183 = vmax.xlane.f32.xlu0 %v2182_v12 }
0x1383   :  { %v1906_v41 = vpop.xlane.xlu0 %1905 }
0x1384   :  { %v1913_v52 = vsub.f32 %v1901_v45, %v1906_v41 }
0x1386   :  { %v1916_v40 = vmul.f32 1.442695, %v1913_v52 }
0x1387   :  { %2058 = vmax.xlane.f32.xlu1 %v2057_v28 }
0x1388   :  { %3362 = vpow2.f32 %v1916_v40 }
0x138a   :  { %2052 = vmax.xlane.f32.xlu0 %v2051_v31 }
0x138b   :  { %v1909_v32 = vpop.xlane.xlu2 %1908 }
0x138c   :  { %v1914_v36 = vsub.f32 %v1902_v56, %v1909_v32 }
0x138e   :  { %v4369_v29 = vpop.eup %3362  ;;  %v1918_v18 = vmul.f32 1.442695, %v1914_v36 }
0x138f   :  { %v1922_v42 = vsel %vm594_vm1, %v4369_v29, 0.0 }
0x1390   :  { %3364 = vpow2.f32 %v1918_v18  ;;  %1923 = vadd.xlane.f32.xlu2 %v1922_v42 }
0x1392   :  { %2189 = vmax.xlane.f32.xlu0 %v2188_v11 }
0x1396   :  { %v4375_v2 = vpop.eup %3364 }
0x1397   :  { %v1925_v60 = vsel %vm594_vm1, %v4375_v2, 0.0 }
0x139a   :  { %1926 = vadd.xlane.f32.xlu0 %v1925_v60 }
0x13a3   :  { %v2187_v56 = vpop.xlane.xlu2 %2186 }
0x13a4   :  { %v2192_v4 = vsub.f32 %v4320_v51, %v2187_v56 }
0x13a6   :  { %v2196_v40 = vmul.f32 1.442695, %v2192_v4 }
0x13a7   :  { %v1775_v61 = vpop.xlane.xlu1 %1774 }
0x13a8   :  { %1810 = vrot.lane.b32.xlu2 %v4241_v21, %s3550_s5  ;;  %v1782_v45 = vsub.f32 %v4324_v20, %v1775_v61 }
0x13aa   :  { %v1785_v49 = vmul.f32 1.442695, %v1782_v45 }
0x13af   :  { %v1912_v37 = vpop.xlane.xlu1 %1911  ;;  %v1778_v9 = vpop.xlane.xlu0 %1777 }
0x13b0   :  { %v1915_v43 = vsub.f32 %v1903_v30, %v1912_v37  ;;  %v1783_v54 = vsub.f32 %v4328_v55, %v1778_v9 }
0x13b2   :  { %v1920_v34 = vmul.f32 1.442695, %v1915_v43  ;;  %v1787_v19 = vmul.f32 1.442695, %v1783_v54 }
0x13b4   :  { %3366 = vpow2.f32 %v1920_v34 }
0x13b5   :  { %3368 = vpow2.f32 %v1785_v49 }
0x13b6   :  { %3370 = vpow2.f32 %v1787_v19 }
0x13ba   :  { %v4381_v38 = vpop.eup %3366 }
0x13bb   :  { %v1928_v16 = vsel %vm4766_vm7, %v4381_v38, 0.0  ;;  %v4387_v39 = vpop.eup %3368 }
0x13bc   :  { %1929 = vadd.xlane.f32.xlu0 %v1928_v16  ;;  %v1791_v55 = vsel %vm594_vm1, %v4387_v39, 0.0  ;;  %v4393_v7 = vpop.eup %3370 }
0x13bd   :  { %v1794_v8 = vsel %vm594_vm1, %v4393_v7, 0.0 }
0x13c2   :  { %v2220_v47 = vpop.permute.xlu0 %2219 }
0x13c7   :  { %v3240_v21 = vpop.permute.xlu1 %3239  ;;  %v2056_v13 = vpop.xlane.xlu2 %2055 }
0x13c8   :  { %v3241_v57 = vunpack.i.l.bf16 %v3240_v21  ;;  %v3242_v1 = vunpack.i.h.bf16 %v3240_v21  ;;  %v2061_v20 = vsub.f32 %v4335_v17, %v2056_v13 }
0x13ca   :  { %v3245_v62 = vpop.permute.xlu0 %3244  ;;  %1970 = vmatpush.msra.mxu2 %v3241_v57  ;;  %v2065_v14 = vmul.f32 1.442695, %v2061_v20 }
0x13cb   :  { %v3246_v30 = vunpack.i.l.bf16 %v3245_v62  ;;  %v3247_v6 = vunpack.i.h.bf16 %v3245_v62 }
0x13cc   :  { %1971 = vmatpush.msra.mxu2 %v3242_v1  ;;  %3372 = vpow2.f32 %v2065_v14 }
0x13ce   :  { %3056 = vmatpush.msk.msrb.mxu2 %vm369_vm10, %v2220_v47 }
0x13d0   :  { %2248 = vmatpush.msrb.mxu2 %v3246_v30 }
0x13d1   :  { %1792 = vadd.xlane.f32.xlu2 %v1791_v55 }
0x13d2   :  { %2249 = vmatpush.msrb.mxu2 %v3247_v6  ;;  %v4397_v35 = vpop.eup %3372 }
0x13d3   :  { %v2072_v15 = vsel %vm594_vm1, %v4397_v35, 0.0 }
0x13d9   :  { %1795 = vadd.xlane.f32.xlu2 %v1794_v8 }
0x13e1   :  { %2073 = vadd.xlane.f32.xlu2 %v2072_v15 }
0x13f2   :  { %v1781_v17 = vpop.xlane.xlu1 %1780 }
0x13f3   :  { %v1784_v23 = vsub.f32 %v4351_v59, %v1781_v17 }
0x13f5   :  { %v1789_v33 = vmul.f32 1.442695, %v1784_v23  ;;  %v2184_v12 = vpop.xlane.xlu0 %2183 }
0x13f6   :  { %v2191_v41 = vsub.f32 %v4353_v53, %v2184_v12 }
0x13f7   :  { %3374 = vpow2.f32 %v1789_v33 }
0x13f8   :  { %v2194_v52 = vmul.f32 1.442695, %v2191_v41 }
0x13fa   :  { %3376 = vpow2.f32 %v2194_v52 }
0x13fb   :  { %3378 = vpow2.f32 %v2196_v40 }
0x13fd   :  { %v4404_v28 = vpop.eup %3374  ;;  %v2053_v31 = vpop.xlane.xlu0 %2052 }
0x13fe   :  { %v2060_v5 = vsub.f32 %v4361_v27, %v2053_v31  ;;  %v1797_v32 = vsel %vm4767_vm8, %v4404_v28, 0.0 }
0x13ff   :  { %1798 = vadd.xlane.f32.xlu0 %v1797_v32 }
0x1400   :  { %v3377_v59 = vpop.eup %3376  ;;  %v2063_v51 = vmul.f32 1.442695, %v2060_v5 }
0x1401   :  { %v2200_v36 = vsel %vm594_vm1, %v3377_v59, 0.0  ;;  %v3379_v53 = vpop.eup %3378 }
0x1402   :  { %2201 = vadd.xlane.f32.xlu1 %v2200_v36  ;;  %v2203_v11 = vsel %vm594_vm1, %v3379_v53, 0.0 }
0x1403   :  { %v1924_v18 = vpop.xlane.xlu2 %1923 }
0x1404   :  { %3380 = vrcp.f32 %v1924_v18 }
0x1405   :  { %3382 = vpow2.f32 %v2063_v51  ;;  %v2190_v42 = vpop.xlane.xlu0 %2189 }
0x1406   :  { %v2193_v45 = vsub.f32 %v4367_v26, %v2190_v42 }
0x1407   :  { %2204 = vadd.xlane.f32.xlu0 %v2203_v11 }
0x1408   :  { %v2198_v49 = vmul.f32 1.442695, %v2193_v45 }
0x140a   :  { %v3381_v60 = vpop.eup %3380 }
0x140b   :  { %v4411_v61 = vpop.eup %3382  ;;  %v1934_v27 = vmul.f32 %v3381_v60, %v4369_v29  ;;  %v1811_v37 = vpop.permute.xlu2 %1810 }
0x140c   :  { %3026 = vmatpush.msk.msra.mxu3 %vm369_vm10, %v1811_v37  ;;  %v2069_v34 = vsel %vm594_vm1, %v4411_v61, 0.0  ;;  %v3146_v37 = vld [vmem:[%s4757_s27 + $0x10] sm:$0xff] }
0x140d   :  { %v1927_v43 = vpop.xlane.xlu0 %1926  ;;  %3037 = vmatmul.msk.f32.vlgmr.msra.gmra.mxu2 %vm594_vm1, %v1934_v27 }
0x140e   :  { %3384 = vrcp.f32 %v1927_v43 }
0x140f   :  { %2070 = vadd.xlane.f32.xlu0 %v2069_v34 }
0x1414   :  { %v3385_v9 = vpop.eup %3384 }
0x1415   :  { %v1935_v16 = vmul.f32 %v3385_v9, %v4375_v2  ;;  %v2059_v2 = vpop.xlane.xlu1 %2058 }
0x1417   :  { %3038 = vmatmul.msk.f32.gmra.mxu2 %vm594_vm1, %v1935_v16 }
0x141b   :  { %3249 = vrot.lane.b32.xlu1 %v4341_v58, %s3550_s5  ;;  %v2062_v58 = vsub.f32 %v4359_v25, %v2059_v2 }
0x1423   :  { %2088 = vrot.lane.b32.xlu0 %v4257_v0, %s3550_s5 }
0x142b   :  { %3254 = vrot.lane.b32.xlu0 %v4347_v22, %s3550_s5  ;;  %v2067_v22 = vmul.f32 1.442695, %v2062_v58 }
0x142f   :  { %v1930_v29 = vpop.xlane.xlu0 %1929 }
0x1430   :  { %3386 = vrcp.f32 %v1930_v29 }
0x1431   :  { %3388 = vpow2.f32 %v2198_v49 }
0x1432   :  { %3390 = vpow2.f32 %v2067_v22 }
0x1436   :  { %v3387_v47 = vpop.eup %3386 }
0x1437   :  { %v1936_v56 = vmul.f32 %v3387_v47, %v4381_v38  ;;  %v4429_v54 = vpop.eup %3388 }
0x1438   :  { %v2206_v0 = vsel %vm4768_vm9, %v4429_v54, 0.0  ;;  %v3391_v21 = vpop.eup %3390 }
0x1439   :  { %3039 = vmatmul.msk.f32.gmra.mxu2 %vm594_vm1, %v1936_v56  ;;  %v2075_v26 = vsel %vm4769_vm6, %v3391_v21, 0.0 }
0x1444   :  { %v1793_v13 = vpop.xlane.xlu2 %1792 }
0x1445   :  { %2207 = vadd.xlane.f32.xlu1 %v2206_v0 }
0x144c   :  { %v1796_v20 = vpop.xlane.xlu2 %1795 }
0x1455   :  { %2076 = vadd.xlane.f32.xlu0 %v2075_v26 }
0x1472   :  { %v1799_v57 = vpop.xlane.xlu0 %1798 }
0x1475   :  { %v2202_v38 = vpop.xlane.xlu1 %2201 }
0x1476   :  { %3392 = vrcp.f32 %v2202_v38 }
0x147a   :  { %v2205_v1 = vpop.xlane.xlu0 %2204 }
0x147b   :  { %3394 = vrcp.f32 %v2205_v1 }
0x147c   :  { %v3393_v62 = vpop.eup %3392  ;;  %3396 = vrcp.f32 %v1793_v13 }
0x147d   :  { %v2212_v19 = vmul.f32 %v3393_v62, %v3377_v59  ;;  %3398 = vrcp.f32 %v1796_v20  ;;  %v2074_v59 = vpop.xlane.xlu2 %2073 }
0x147e   :  { %3400 = vrcp.f32 %v1799_v57 }
0x147f   :  { %3057 = vmatmul.msk.f32.vlgmr.msrb.gmra.mxu2 %vm594_vm1, %v2212_v19 }
0x1481   :  { %v3395_v25 = vpop.eup %3394 }
0x1482   :  { %v2213_v30 = vmul.f32 %v3395_v25, %v3379_v53  ;;  %v2071_v6 = vpop.xlane.xlu0 %2070  ;;  %v3397_v14 = vpop.eup %3396 }
0x1483   :  { %v1803_v17 = vmul.f32 %v3397_v14, %v4387_v39  ;;  %v3399_v33 = vpop.eup %3398  ;;  %3402 = vrcp.f32 %v2071_v6  ;;  %v3149_v14 = vld [vmem:[%s4722_s8 + $0x18] sm:$0xff] }
0x1484   :  { %v1804_v12 = vmul.f32 %v3399_v33, %v4393_v7  ;;  %v3401_v31 = vpop.eup %3400  ;;  %3404 = vrcp.f32 %v2074_v59 }
0x1485   :  { %v1805_v32 = vmul.f32 %v3401_v31, %v4404_v28 }
0x1487   :  { %3058 = vmatmul.msk.f32.gmra.mxu2 %vm594_vm1, %v2213_v30 }
0x1489   :  { %v3403_v51 = vpop.eup %3402 }
0x148a   :  { %v2081_v7 = vmul.f32 %v3403_v51, %v4411_v61  ;;  %v3405_v36 = vpop.eup %3404  ;;  %v3147_v61 = vld [vmem:[%s4757_s27 + $0x18] sm:$0xff] }
0x148b   :  { %v2082_v53 = vmul.f32 %v3405_v36, %v4397_v35  ;;  %2327 = vmatpush.bf16.msrb.mxu0 %v3147_v61 }
0x148d   :  { %v3250_v55 = vpop.permute.xlu1 %3249 }
0x148e   :  { %v3251_v8 = vunpack.i.l.bf16 %v3250_v55  ;;  %v3252_v15 = vunpack.i.h.bf16 %v3250_v55 }
0x148f   :  { %2328 = vmatpush.bf16.msrb.mxu0 %v3146_v37 }
0x1490   :  { %1839 = vmatpush.msra.mxu3 %v3251_v8  ;;  %v1973_v23 = vpop.f32.mrf.mxu2  ;;  %v3148_v8 = vld [vmem:[%s4722_s8 + $0x10] sm:$0xff] }
0x1492   :  { %1840 = vmatpush.msra.mxu3 %v3252_v15 }
0x1493   :  { %3027 = vmatmul.msk.f32.vlgmr.msra.gmra.mxu3 %vm594_vm1, %v1803_v17  ;;  %v3272_v17 = vld [vmem:[%s4721_s7 + $0x1] ss:$0 sm:$0xff] }
0x1495   :  { %v2089_v4 = vpop.permute.xlu0 %2088 }
0x1496   :  { %3046 = vmatpush.msk.msrb.mxu3 %vm369_vm10, %v2089_v4 }
0x149a   :  { %v1976_v41 = vpop.f32.mrf.mxu2 }
0x149b   :  { %v3258_v52 = vpack.i.bf16 %v1976_v41, %v1973_v23  ;;  %3028 = vmatmul.msk.f32.gmra.mxu3 %vm594_vm1, %v1804_v12 }
0x149d   :  { %v3255_v40 = vpop.permute.xlu0 %3254  ;;  %3259 = vrot.lane.b32.xlu1 %v3258_v52, %s3554_s26 }
0x149e   :  { %v3256_v39 = vunpack.i.l.bf16 %v3255_v40  ;;  %v3257_v5 = vunpack.i.h.bf16 %v3255_v40 }
0x14a0   :  { %2117 = vmatpush.msrb.mxu3 %v3256_v39 }
0x14a2   :  { %2118 = vmatpush.msrb.mxu3 %v3257_v5 }
0x14a3   :  { %3029 = vmatmul.msk.f32.gmra.mxu3 %vm594_vm1, %v1805_v32 }
0x14a4   :  { %2389 = vmatpush.bf16.msra.mxu3 %v3149_v14 }
0x14a8   :  { %2390 = vmatpush.bf16.msra.mxu3 %v3148_v8 }
0x14ab   :  { %3047 = vmatmul.msk.f32.vlgmr.msrb.gmra.mxu3 %vm594_vm1, %v2081_v7 }
0x14b3   :  { %3048 = vmatmul.msk.f32.gmra.mxu3 %vm594_vm1, %v2082_v53 }
0x14b8   :  { %v2208_v18 = vpop.xlane.xlu1 %2207 }
0x14b9   :  { %3406 = vrcp.f32 %v2208_v18 }
0x14bc   :  { %v1979_v35 = vpop.f32.mrf.mxu2 }
0x14bf   :  { %v3407_v42 = vpop.eup %3406 }
0x14c0   :  { %v2214_v28 = vmul.f32 %v3407_v42, %v4429_v54 }
0x14c2   :  { %3059 = vmatmul.msk.f32.gmra.mxu2 %vm594_vm1, %v2214_v28 }
0x14c8   :  { %v2077_v11 = vpop.xlane.xlu0 %2076 }
0x14c9   :  { %3408 = vrcp.f32 %v2077_v11 }
0x14cf   :  { %v3409_v60 = vpop.eup %3408 }
0x14d0   :  { %v2083_v27 = vmul.f32 %v3409_v60, %v3391_v21 }
0x14d2   :  { %3049 = vmatmul.msk.f32.gmra.mxu3 %vm594_vm1, %v2083_v27 }
0x1502   :  { %v2251_v43 = vpop.f32.mrf.mxu2 }
0x150a   :  { %v2254_v34 = vpop.f32.mrf.mxu2 }
0x150b   :  { %v3263_v9 = vpack.i.bf16 %v2254_v34, %v2251_v43 }
0x150d   :  { %3264 = vrot.lane.b32.xlu2 %v3263_v9, %s3554_s26 }
0x150f   :  { %v3260_v29 = vpop.permute.xlu1 %3259 }
0x1510   :  { %v3262_v45 = vunpack.i.h.bf16 %v3260_v29  ;;  %v3261_v47 = vunpack.i.l.bf16 %v3260_v29 }
0x1515   :  { %1989 = vrot.lane.b32.xlu2 %v1979_v35, %s3554_s26  ;;  %v3273_v35 = vld [vmem:[%s4723_s9 + $0x1] ss:$0 sm:$0xff] }
0x1516   :  { %v1842_v16 = vpop.f32.mrf.mxu3 }
0x1517   :  { %v1994_v56 = vsel %vm552_vm0, %v1842_v16, %v3261_v47 }
0x151e   :  { %v1845_v49 = vpop.f32.mrf.mxu3 }
0x151f   :  { %v1995_v2 = vsel %vm552_vm0, %v1845_v49, %v3262_v45 }
0x1520   :  { %v2287_v54 = vpack.c.bf16 %v1995_v2, %v1994_v56 }
0x1522   :  { %3073 = vmatmul.msk.bf16.vlgmr.msrb.gmra.mxu0 %vm286_vm5, %v2287_v54 }
0x1526   :  { %v1848_v0 = vpop.f32.mrf.mxu3 }
0x152e   :  { %v2120_v22 = vpop.f32.mrf.mxu3 }
0x1536   :  { %v2123_v38 = vpop.f32.mrf.mxu3 }
0x1545   :  { %v2257_v58 = vpop.f32.mrf.mxu2 }
0x1546   :  { %2267 = vrot.lane.b32.xlu1 %v2257_v58, %s3554_s26 }
0x1555   :  { %v2126_v40 = vpop.f32.mrf.mxu3 }
0x1567   :  { %v3265_v21 = vpop.permute.xlu2 %3264 }
0x1568   :  { %v3267_v26 = vunpack.i.h.bf16 %v3265_v21  ;;  %v3266_v57 = vunpack.i.l.bf16 %v3265_v21 }
0x156a   :  { %v2273_v1 = vsel %vm552_vm0, %v2123_v38, %v3267_v26  ;;  %v2272_v62 = vsel %vm552_vm0, %v2120_v22, %v3266_v57 }
0x156b   :  { %v2279_v19 = vrot.slane %v2273_v1, 7  ;;  %v2278_v25 = vrot.slane %v2272_v62, 7 }
0x156d   :  { %v2280_v6 = vsel %vm369_vm10, %v2278_v25, %v2279_v19 }
0x156f   :  { %v1990_v13 = vpop.permute.xlu2 %1989 }
0x1570   :  { %v1996_v30 = vsel %vm552_vm0, %v1848_v0, %v1990_v13 }
0x1571   :  { %v2286_v20 = vsel %vm369_vm10, %v1996_v30, %v2278_v25 }
0x1572   :  { %v2288_v55 = vpack.c.bf16 %v2280_v6, %v2286_v20 }
0x1574   :  { %3074 = vmatmul.msk.bf16.gmra.mxu0 %vm286_vm5, %v2288_v55 }
0x159f   :  { %v2330_v15 = vpop.f32.mrf.mxu0 }
0x15a0   :  { %v2331_v23 = vadd.f32 %v3272_v17, %v2330_v15 }
0x15a2   :  { %v4480_v12 = vadd.f32 %v2331_v23, %v4186_v24 }
0x15a7   :  { %v2332_v4 = vpop.f32.mrf.mxu0 }
0x15a8   :  { %v2333_v33 = vadd.f32 %v3272_v17, %v2332_v4 }
0x15aa   :  { %v4483_v41 = vadd.f32 %v2333_v33, %v4183_v46 }
0x15ac   :  { %v2349_v52 = vpack.c.bf16 %v4483_v41, %v4480_v12 }
0x15ae   :  { %3089 = vmatmul.msk.bf16.vlgmr.msra.gmra.mxu3 %vm286_vm5, %v2349_v52 }
0x15b8   :  { %v2268_v31 = vpop.permute.xlu1 %2267 }
0x15b9   :  { %v2274_v39 = vsel %vm552_vm0, %v2126_v40, %v2268_v31  ;;  %vm4770_vm0 = vcmask 517120  }
0x15ba   :  { %v2281_v5 = vrot.slane %v2274_v39, 7  ;;  %vm4771_vm1 = vmmov %vm4770_vm0 }
0x15bc   :  { %v2282_v32 = vsel %vm369_vm10, %v2279_v19, %v2281_v5 }
0x15bd   :  { %v2289_v59 = vpack.c.bf16 %v2282_v32, %v2282_v32 }
0x15bf   :  { %3075 = vmatmul.msk.bf16.gmra.mxu0 %vm286_vm5, %v2289_v59 }
0x15f1   :  { %v2335_v24 = vpop.f32.mrf.mxu0 }
0x15f2   :  { %v2336_v51 = vadd.f32 %v3272_v17, %v2335_v24 }
0x15f4   :  { %v4492_v36 = vadd.f32 %v2336_v51, %v4189_v48 }
0x15f9   :  { %v2337_v7 = vpop.f32.mrf.mxu0 }
0x15fa   :  { %v2338_v46 = vadd.f32 %v3272_v17, %v2337_v7 }
0x15fc   :  { %v4495_v53 = vadd.f32 %v2338_v46, %v4194_v50 }
0x15fe   :  { %v2350_v18 = vpack.c.bf16 %v4495_v53, %v4492_v36 }
0x1600   :  { %3090 = vmatmul.msk.bf16.gmra.mxu3 %vm286_vm5, %v2350_v18 }
0x1631   :  { %v2392_v27 = vpop.f32.mrf.mxu3 }
0x1632   :  { %v2393_v34 = vadd.f32 %v3273_v35, %v2392_v27  ;;  %v3153_v27 = vld [vmem:[%s4724_s10 + $0x38] sm:$0xff] }
0x1633   :  { %2740 = vmatpush.bf16.msrb.mxu1 %v3153_v27 }
0x1634   :  { %v2408_v29 = vsel %vm1228_vm4, %v2393_v34, 0.0 }
0x1639   :  { %v2394_v61 = vpop.f32.mrf.mxu3 }
0x163a   :  { %v2395_v37 = vadd.f32 %v3273_v35, %v2394_v61  ;;  %v3152_v61 = vld [vmem:[%s4724_s10 + $0x30] sm:$0xff] }
0x163b   :  { %2741 = vmatpush.bf16.msrb.mxu1 %v3152_v61 }
0x163c   :  { %v2340_v42 = vpop.f32.mrf.mxu0 }
0x163d   :  { %v2341_v28 = vadd.f32 %v3272_v17, %v2340_v42 }
0x163f   :  { %v4501_v11 = vadd.f32 %v2341_v28, %v4203_v3  ;;  %v2409_v3 = vsel %vm1228_vm4, %v2395_v37, 0.0 }
0x1640   :  { %v2410_v47 = vadd.f32 %v2409_v3, %v2408_v29 }
0x1641   :  { %v2351_v60 = vpack.c.bf16 %v4501_v11, %v4501_v11 }
0x1643   :  { %3091 = vmatmul.msk.bf16.gmra.mxu3 %vm286_vm5, %v2351_v60 }
0x1644   :  { %v2342_v48 = vpop.f32.mrf.mxu0 }
0x1683   :  { %v2397_v50 = vpop.f32.mrf.mxu3 }
0x1684   :  { %v2398_v9 = vadd.f32 %v3273_v35, %v2397_v50  ;;  %v3151_v50 = vld [vmem:[%s4724_s10 + $0x28] sm:$0xff] }
0x1685   :  { %2742 = vmatpush.bf16.msrb.mxu1 %v3151_v50 }
0x1686   :  { %v2411_v45 = vsel %vm1228_vm4, %v2398_v9, 0.0 }
0x1687   :  { %v2412_v56 = vadd.f32 %v2411_v45, %v2410_v47 }
0x168b   :  { %v2399_v43 = vpop.f32.mrf.mxu3 }
0x168c   :  { %v2400_v16 = vadd.f32 %v3273_v35, %v2399_v43 }
0x168e   :  { %v2413_v49 = vsel %vm1228_vm4, %v2400_v16, 0.0 }
0x168f   :  { %v2414_v58 = vadd.f32 %v2413_v49, %v2412_v56  ;;  %v2474_v49 = vstv %s3092_s30 }
0x16c6   :  { %v2402_v2 = vpop.f32.mrf.mxu3 }
0x16c7   :  { %v2403_v54 = vadd.f32 %v3273_v35, %v2402_v2 }
0x16c9   :  { %v2415_v0 = vsel %vm4770_vm0, %v2403_v54, 0.0 }
0x16ca   :  { %v2416_v22 = vadd.f32 %v2415_v0, %v2414_v58  ;;  %v2480_v0 = vstv %s3093_s4 }
0x16cc   :  { %2417 = vadd.xlane.f32.xlu2 %v2416_v22 }
0x16ce   :  { %v2404_v21 = vpop.f32.mrf.mxu3 }
0x173f   :  { %v2418_v26 = vpop.xlane.xlu2 %2417 }
0x1740   :  { %v2419_v57 = vrot.slane %v2418_v26, 4 }
0x1742   :  { %v2420_v38 = vadd.f32 %v2419_v57, %v2418_v26 }
0x1744   :  { %v2421_v1 = vrot.slane %v2420_v38, 2 }
0x1746   :  { %v2422_v62 = vadd.f32 %v2421_v1, %v2420_v38 }
0x1748   :  { %v2423_v19 = vrot.slane %v2422_v62, 1 }
0x174a   :  { %v2424_v25 = vadd.f32 %v2423_v19, %v2422_v62 }
0x174c   :  { %3182 = vpush %v2424_v25 }
0x177d   :  { %s3183_s9 = spop %3182 }
0x177e   :  { %v2426_v13 = vstv %s3183_s9 }
0x177f   :  { %v2427_v30 = vmul.f32 %v2426_v13, %v4015_v63 }
0x1781   :  { %v2428_v20 = vsub.f32 %v2393_v34, %v2427_v30  ;;  %v2429_v6 = vsub.f32 %v2395_v37, %v2427_v30  ;;  %v2430_v55 = vsub.f32 %v2398_v9, %v2427_v30  ;;  %v2431_v14 = vsub.f32 %v2400_v16, %v2427_v30  ;;  %v3150_v34 = vld [vmem:[%s4724_s10 + $0x20] sm:$0xff] }
0x1782   :  { %v4515_v8 = vsub.f32 %v2403_v54, %v2427_v30  ;;  %2743 = vmatpush.bf16.msrb.mxu1 %v3150_v34 }
0x1783   :  { %v2433_v15 = vmul.f32 %v2428_v20, %v2428_v20  ;;  %v2434_v17 = vmul.f32 %v2429_v6, %v2429_v6  ;;  %v2435_v23 = vmul.f32 %v2430_v55, %v2430_v55  ;;  %v2436_v4 = vmul.f32 %v2431_v14, %v2431_v14 }
0x1784   :  { %v2437_v31 = vmul.f32 %v4515_v8, %v4515_v8 }
0x1785   :  { %v2438_v33 = vsel %vm1228_vm4, %v2433_v15, 0.0  ;;  %v2439_v52 = vsel %vm1228_vm4, %v2434_v17, 0.0  ;;  %v2441_v39 = vsel %vm1228_vm4, %v2435_v23, 0.0  ;;  %v2443_v32 = vsel %vm1228_vm4, %v2436_v4, 0.0 }
0x1786   :  { %v2440_v40 = vadd.f32 %v2439_v52, %v2438_v33  ;;  %v2445_v24 = vsel %vm4771_vm1, %v2437_v31, 0.0 }
0x1788   :  { %v2442_v5 = vadd.f32 %v2441_v39, %v2440_v40 }
0x178a   :  { %v2444_v59 = vadd.f32 %v2443_v32, %v2442_v5 }
0x178c   :  { %v2446_v51 = vadd.f32 %v2445_v24, %v2444_v59 }
0x178e   :  { %2447 = vadd.xlane.f32.xlu1 %v2446_v51 }
0x1801   :  { %v2448_v7 = vpop.xlane.xlu1 %2447 }
0x1802   :  { %v2449_v46 = vrot.slane %v2448_v7, 4 }
0x1804   :  { %v2450_v18 = vadd.f32 %v2449_v46, %v2448_v7 }
0x1806   :  { %v2451_v42 = vrot.slane %v2450_v18, 2 }
0x1808   :  { %v2452_v28 = vadd.f32 %v2451_v42, %v2450_v18 }
0x180a   :  { %v2453_v60 = vrot.slane %v2452_v28, 1 }
0x180c   :  { %v2454_v48 = vadd.f32 %v2453_v60, %v2452_v28 }
0x180e   :  { %3184 = vpush %v2454_v48 }
0x183f   :  { %s3185_s2 = spop %3184 }
0x1840   :  { %v2456_v35 = vstv %s3185_s2 }
0x1841   :  { %v2457_v37 = vmul.f32 %v2456_v35, %v4015_v63 }
0x1843   :  { %v2458_v43 = vadd.f32 1e-05, %v2457_v37 }
0x1845   :  { %3410 = vrsqrt.f32 %v2458_v43  ;;  %vm2465_vm13 = vweird.f32 %v2458_v43 }
0x184b   :  { %v3411_v9 = vpop.eup %3410 }
0x184c   :  { %v2460_v3 = vmul.f32 %v3411_v9, %v2458_v43  ;;  %vm2466_vm12 = vweird.f32 %v3411_v9 }
0x184d   :  { %vm2467_vm3 = vmor %vm2465_vm13, %vm2466_vm12 }
0x184e   :  { %v2461_v16 = vmul.f32 %v3411_v9, %v2460_v3 }
0x1850   :  { %v2462_v29 = vmul.f32 0.5, %v2461_v16 }
0x1852   :  { %v2463_v45 = vsub.f32 1.5, %v2462_v29 }
0x1854   :  { %v2464_v47 = vmul.f32 %v3411_v9, %v2463_v45 }
0x1856   :  { %v2468_v63 = vsel %vm2467_vm3, %v3411_v9, %v2464_v47 }
0x1857   :  { %v2469_v56 = vmul.f32 %v2468_v63, %v2428_v20  ;;  %v2470_v2 = vmul.f32 %v2468_v63, %v2429_v6  ;;  %v2471_v54 = vmul.f32 %v2468_v63, %v2430_v55  ;;  %v2472_v58 = vmul.f32 %v2468_v63, %v2431_v14 }
0x1858   :  { %v2473_v52 = vmul.f32 %v2468_v63, %v4515_v8 }
0x1859   :  { %v2475_v22 = vmul.f32 %v2474_v49, %v2469_v56  ;;  %v2476_v21 = vmul.f32 %v2474_v49, %v2470_v2  ;;  %v2477_v26 = vmul.f32 %v2474_v49, %v2471_v54  ;;  %v2478_v57 = vmul.f32 %v2474_v49, %v2472_v58 }
0x185a   :  { %v2479_v39 = vmul.f32 %v2474_v49, %v2473_v52 }
0x185b   :  { %v4537_v38 = vadd.f32 %v2480_v0, %v2475_v22  ;;  %v4539_v1 = vadd.f32 %v2480_v0, %v2476_v21  ;;  %v4541_v62 = vadd.f32 %v2480_v0, %v2477_v26  ;;  %v4543_v19 = vadd.f32 %v2480_v0, %v2478_v57 }
0x185c   :  { %v4573_v7 = vadd.f32 %v2480_v0, %v2479_v39 }
0x185d   :  { %v4546_v25 = vmul.f32 0.70710677, %v4537_v38  ;;  %v4549_v13 = vmul.f32 0.70710677, %v4539_v1  ;;  %v4552_v30 = vmul.f32 0.70710677, %v4541_v62 }
0x185e   :  { %v4555_v20 = vmul.f32 0.70710677, %v4543_v19  ;;  %v4579_v34 = vmul.f32 0.70710677, %v4573_v7 }
0x185f   :  { %v2506_v6 = vand.u32 2147483647, %v4546_v25  ;;  %v2507_v55 = vand.u32 2147483647, %v4549_v13  ;;  %v4560_v17 = vand.u32 2147483647, %v4552_v30 }
0x1860   :  { %v4563_v23 = vand.u32 2147483647, %v4555_v20  ;;  %v4586_v47 = vand.u32 2147483647, %v4579_v34 }
0x1861   :  { %v2511_v14 = vmul.f32 0.3275911, %v2506_v6  ;;  %v2512_v15 = vmul.f32 0.3275911, %v2507_v55  ;;  %v2513_v40 = vmul.f32 0.3275911, %v4560_v17 }
0x1862   :  { %v2514_v31 = vmul.f32 0.3275911, %v4563_v23  ;;  %v2641_v5 = vsub.f32 0.0, %v2506_v6  ;;  %v2642_v59 = vsub.f32 0.0, %v2507_v55  ;;  %v2643_v35 = vsub.f32 0.0, %v4560_v17 }
0x1863   :  { %v2516_v4 = vadd.f32 1.0, %v2511_v14  ;;  %v2517_v33 = vadd.f32 1.0, %v2512_v15  ;;  %v4568_v32 = vadd.f32 1.0, %v2513_v40  ;;  %v2644_v43 = vsub.f32 0.0, %v4563_v23 }
0x1864   :  { %v4570_v24 = vadd.f32 1.0, %v2514_v31  ;;  %v2646_v42 = vmul.f32 %v2641_v5, %v2506_v6  ;;  %v2647_v48 = vmul.f32 %v2642_v59, %v2507_v55  ;;  %v2515_v22 = vmul.f32 0.3275911, %v4586_v47 }
0x1865   :  { %3412 = vrcp.f32 %v2516_v4  ;;  %v2530_v18 = vand.u32 2147483647, %v2516_v4  ;;  %v2532_v28 = vand.u32 2147483648, %v2516_v4  ;;  %v2545_v61 = vand.u32 2147483647, %v2517_v33 }
0x1866   :  { %3414 = vrcp.f32 %v2517_v33  ;;  %v2547_v50 = vand.u32 2147483648, %v2517_v33  ;;  %vm2526_vm2 = vweird.f32 %v2516_v4  ;;  %vm2541_vm7 = vweird.f32 %v2517_v33 }
0x1867   :  { %3416 = vrcp.f32 %v4568_v32  ;;  %vm4581_vm15 = vcmp.eq.f32.partialorder %v2530_v18, 8.507059e+37  ;;  %v2533_v29 = vor.u32 1.1754944e-38, %v2532_v28  ;;  %vm4588_vm9 = vcmp.eq.f32.partialorder %v2545_v61, 8.507059e+37 }
0x1868   :  { %3418 = vrcp.f32 %v4570_v24  ;;  %v2548_v56 = vor.u32 1.1754944e-38, %v2547_v50  ;;  %vm2556_vm0 = vweird.f32 %v4568_v32  ;;  %v2560_v0 = vand.u32 2147483647, %v4568_v32 }
0x1869   :  { %v2562_v57 = vand.u32 2147483648, %v4568_v32  ;;  %v4604_v15 = vadd.f32 1.0, %v2515_v22  ;;  %v2575_v39 = vand.u32 2147483647, %v4570_v24  ;;  %v2577_v5 = vand.u32 2147483648, %v4570_v24 }
0x186a   :  { %v2651_v18 = vmul.f32 1.442695, %v2646_v42 }
0x186b   :  { %v3413_v51 = vpop.eup %3412  ;;  %3420 = vrcp.f32 %v4604_v15  ;;  %v2563_v28 = vor.u32 1.1754944e-38, %v2562_v57  ;;  %v2578_v3 = vor.u32 1.1754944e-38, %v2577_v5 }
0x186c   :  { %v3415_v46 = vpop.eup %3414  ;;  %v2522_v8 = vmul.f32 %v3413_v51, %v2516_v4  ;;  %vm2527_vm14 = vweird.f32 %v3413_v51  ;;  %3422 = vpow2.f32 %v2651_v18 }
0x186d   :  { %v2537_v60 = vmul.f32 %v3415_v46, %v2517_v33  ;;  %v3417_v16 = vpop.eup %3416  ;;  %vm2542_vm8 = vweird.f32 %v3415_v46  ;;  %vm2528_vm6 = vmor %vm2526_vm2, %vm2527_vm14  ;;  %vm2571_vm2 = vweird.f32 %v4570_v24  ;;  %vm2561_vm14 = vcmp.eq.f32.partialorder %v2560_v0, 8.507059e+37 }
0x186e   :  { %v2523_v27 = vsub.f32 1.0, %v2522_v8  ;;  %v2552_v2 = vmul.f32 %v3417_v16, %v4568_v32  ;;  %v3419_v54 = vpop.eup %3418  ;;  %vm2543_vm1 = vmor %vm2541_vm7, %vm2542_vm8  ;;  %vm2557_vm12 = vweird.f32 %v3417_v16  ;;  %vm2576_vm7 = vcmp.eq.f32.partialorder %v2575_v39, 8.507059e+37 }
0x186f   :  { %v2538_v37 = vsub.f32 1.0, %v2537_v60  ;;  %v2567_v6 = vmul.f32 %v3419_v54, %v4570_v24  ;;  %vm2572_vm13 = vweird.f32 %v3419_v54  ;;  %vm2558_vm3 = vmor %vm2556_vm0, %vm2557_vm12  ;;  %vm2497_vm12 = vcmp.ge.f32.partialorder %v4549_v13, 0.0 }
0x1870   :  { %v2524_v9 = vmul.f32 %v3413_v51, %v2523_v27  ;;  %v2553_v26 = vsub.f32 1.0, %v2552_v2 }
0x1871   :  { %v2539_v45 = vmul.f32 %v3415_v46, %v2538_v37  ;;  %v2568_v40 = vsub.f32 1.0, %v2567_v6  ;;  %v2653_v37 = vmul.f32 1.442695, %v2647_v48  ;;  %v2590_v6 = vand.u32 2147483647, %v4604_v15 }
0x1872   :  { %v2525_v63 = vadd.f32 %v3413_v51, %v2524_v9  ;;  %v2554_v52 = vmul.f32 %v3417_v16, %v2553_v26 }
0x1873   :  { %v2540_v58 = vadd.f32 %v3415_v46, %v2539_v45  ;;  %v3421_v45 = vpop.eup %3420  ;;  %3424 = vpow2.f32 %v2653_v37 }
0x1874   :  { %v2529_v21 = vsel %vm2528_vm6, %v3413_v51, %v2525_v63  ;;  %v2555_v51 = vadd.f32 %v3417_v16, %v2554_v52  ;;  %v2582_v48 = vmul.f32 %v3421_v45, %v4604_v15  ;;  %vm2587_vm8 = vweird.f32 %v3421_v45 }
0x1875   :  { %v4602_v55 = vsel %vm4581_vm15, %v2533_v29, %v2529_v21  ;;  %v2544_v14 = vsel %vm2543_vm1, %v3415_v46, %v2540_v58  ;;  %v2569_v46 = vmul.f32 %v3419_v54, %v2568_v40  ;;  %vm2573_vm15 = vmor %vm2571_vm2, %vm2572_vm13  ;;  %v2649_v58 = vmul.f32 %v2644_v43, %v4563_v23  ;;  %v3423_v40 = vpop.eup %3422 }
0x1876   :  { %v4608_v4 = vsel %vm4588_vm9, %v2548_v56, %v2544_v14  ;;  %v2596_v33 = vmul.f32 1.0614054, %v4602_v55  ;;  %v2559_v27 = vsel %vm2558_vm3, %v3417_v16, %v2555_v51  ;;  %v2583_v26 = vsub.f32 1.0, %v2582_v48 }
0x1877   :  { %v2597_v31 = vmul.f32 1.0614054, %v4608_v4  ;;  %v2570_v61 = vadd.f32 %v3419_v54, %v2569_v46  ;;  %v4621_v9 = vsel %vm2561_vm14, %v2563_v28, %v2559_v27  ;;  %v2592_v14 = vand.u32 2147483648, %v4604_v15 }
0x1878   :  { %v2601_v59 = vadd.f32 -1.4531521, %v2596_v33  ;;  %v2598_v32 = vmul.f32 1.0614054, %v4621_v9  ;;  %vm2496_vm9 = vcmp.ge.f32.partialorder %v4546_v25, 0.0  ;;  %vm2586_vm6 = vweird.f32 %v4604_v15 }
0x1879   :  { %v2602_v8 = vadd.f32 -1.4531521, %v2597_v31  ;;  %v2574_v29 = vsel %vm2573_vm15, %v3419_v54, %v2570_v61  ;;  %v2648_v54 = vmul.f32 %v2643_v35, %v4560_v17  ;;  %v2584_v35 = vmul.f32 %v3421_v45, %v2583_v26  ;;  %v3425_v51 = vpop.eup %3424  ;;  %vm2588_vm0 = vmor %vm2586_vm6, %vm2587_vm8 }
0x187a   :  { %v2606_v60 = vmul.f32 %v2601_v59, %v4602_v55  ;;  %v4624_v24 = vsel %vm2576_vm7, %v2578_v3, %v2574_v29  ;;  %v2603_v56 = vadd.f32 -1.4531521, %v2598_v32  ;;  %vm2591_vm1 = vcmp.eq.f32.partialorder %v2590_v6, 8.507059e+37 }
0x187b   :  { %v2607_v50 = vmul.f32 %v2602_v8, %v4608_v4  ;;  %v2599_v49 = vmul.f32 1.0614054, %v4624_v24  ;;  %v2655_v43 = vmul.f32 1.442695, %v2648_v54  ;;  %v2585_v59 = vadd.f32 %v3421_v45, %v2584_v35 }
0x187c   :  { %v2611_v42 = vadd.f32 1.4214138, %v2606_v60  ;;  %v2608_v21 = vmul.f32 %v2603_v56, %v4621_v9  ;;  %v2657_v8 = vmul.f32 1.442695, %v2649_v58  ;;  %v2593_v18 = vor.u32 1.1754944e-38, %v2592_v14 }
0x187d   :  { %v2612_v63 = vadd.f32 1.4214138, %v2607_v50  ;;  %v2604_v22 = vadd.f32 -1.4531521, %v2599_v49  ;;  %v2589_v61 = vsel %vm2588_vm0, %v3421_v45, %v2585_v59  ;;  %3426 = vpow2.f32 %v2655_v43 }
0x187e   :  { %v2616_v16 = vmul.f32 %v2611_v42, %v4602_v55  ;;  %v2613_v17 = vadd.f32 1.4214138, %v2608_v21  ;;  %v2594_v50 = vsel %vm2591_vm1, %v2593_v18, %v2589_v61  ;;  %3428 = vpow2.f32 %v2657_v8 }
0x187f   :  { %v2617_v2 = vmul.f32 %v2612_v63, %v4608_v4  ;;  %v2609_v52 = vmul.f32 %v2604_v22, %v4624_v24  ;;  %v2600_v29 = vmul.f32 1.0614054, %v2594_v50  ;;  %v2501_v13 = vsel %vm2496_vm9, 1.0, %v3556_v44 }
0x1880   :  { %v2621_v0 = vadd.f32 -0.28449672, %v2616_v16  ;;  %v2618_v5 = vmul.f32 %v2613_v17, %v4621_v9  ;;  %v2645_v56 = vsub.f32 0.0, %v4586_v47  ;;  %v2486_v21 = vmul.f32 0.5, %v4537_v38 }
0x1881   :  { %v2622_v57 = vadd.f32 -0.28449672, %v2617_v2  ;;  %v2614_v39 = vadd.f32 1.4214138, %v2609_v52  ;;  %v2605_v49 = vadd.f32 -1.4531521, %v2600_v29 }
0x1882   :  { %v2626_v33 = vmul.f32 %v2621_v0, %v4602_v55  ;;  %v2623_v27 = vadd.f32 -0.28449672, %v2618_v5  ;;  %v2487_v14 = vmul.f32 0.5, %v4539_v1  ;;  %vm2498_vm13 = vcmp.ge.f32.partialorder %v4552_v30, 0.0 }
0x1883   :  { %v2627_v23 = vmul.f32 %v2622_v57, %v4608_v4  ;;  %v2619_v60 = vmul.f32 %v2614_v39, %v4624_v24  ;;  %v2610_v58 = vmul.f32 %v2605_v49, %v2594_v50  ;;  %v3427_v0 = vpop.eup %3426  ;;  %vm2499_vm3 = vcmp.ge.f32.partialorder %v4555_v20, 0.0 }
0x1884   :  { %v2631_v31 = vadd.f32 0.2548296, %v2626_v33  ;;  %v2628_v42 = vmul.f32 %v2623_v27, %v4621_v9  ;;  %v3429_v25 = vpop.eup %3428  ;;  %v2503_v1 = vsel %vm2498_vm13, 1.0, %v3556_v44  ;;  %v2504_v59 = vsel %vm2499_vm3, 1.0, %v3556_v44 }
0x1885   :  { %v2632_v46 = vadd.f32 0.2548296, %v2627_v23  ;;  %v2624_v3 = vadd.f32 -0.28449672, %v2619_v60  ;;  %v2615_v6 = vadd.f32 1.4214138, %v2610_v58  ;;  %v2650_v23 = vmul.f32 %v2645_v56, %v4586_v47 }
0x1886   :  { %v2636_v28 = vmul.f32 %v2631_v31, %v4602_v55  ;;  %v2633_v16 = vadd.f32 0.2548296, %v2628_v42  ;;  %v2489_v20 = vmul.f32 0.5, %v4543_v19  ;;  %vm2500_vm2 = vcmp.ge.f32.partialorder %v4579_v34, 0.0  ;;  %v3274_v34 = vld [vmem:[%s4725_s11 + $0x1] ss:$0 sm:$0xff] }
0x1887   :  { %v2637_v15 = vmul.f32 %v2632_v46, %v4608_v4  ;;  %v2629_v55 = vmul.f32 %v2624_v3, %v4624_v24  ;;  %v2502_v4 = vsel %vm2497_vm12, 1.0, %v3556_v44  ;;  %v2659_v5 = vmul.f32 1.442695, %v2650_v23 }
0x1888   :  { %v2661_v37 = vmul.f32 %v3423_v40, %v2636_v28  ;;  %v2638_v54 = vmul.f32 %v2633_v16, %v4621_v9  ;;  %v2620_v40 = vmul.f32 %v2615_v6, %v2594_v50  ;;  %v2488_v28 = vmul.f32 0.5, %v4541_v62 }
0x1889   :  { %v2662_v32 = vmul.f32 %v3425_v51, %v2637_v15  ;;  %v2634_v2 = vadd.f32 0.2548296, %v2629_v55  ;;  %3430 = vpow2.f32 %v2659_v5  ;;  %v2505_v42 = vsel %vm2500_vm2, 1.0, %v3556_v44 }
0x188a   :  { %v2666_v63 = vsub.f32 1.0, %v2661_v37  ;;  %v2663_v52 = vmul.f32 %v3427_v0, %v2638_v54  ;;  %v2625_v43 = vadd.f32 -0.28449672, %v2620_v40  ;;  %vm2873_vm15 = vcmask 74752  }
0x188b   :  { %v2667_v45 = vsub.f32 1.0, %v2662_v32  ;;  %v2639_v57 = vmul.f32 %v2634_v2, %v4624_v24 }
0x188c   :  { %v2671_v48 = vmul.f32 %v2666_v63, %v2501_v13  ;;  %v2668_v38 = vsub.f32 1.0, %v2663_v52  ;;  %v2630_v39 = vmul.f32 %v2625_v43, %v2594_v50 }
0x188d   :  { %v2672_v22 = vmul.f32 %v2667_v45, %v2502_v4  ;;  %v2664_v35 = vmul.f32 %v3429_v25, %v2639_v57 }
0x188e   :  { %v2676_v26 = vadd.f32 1.0, %v2671_v48  ;;  %v2673_v51 = vmul.f32 %v2668_v38, %v2503_v1  ;;  %v2635_v47 = vadd.f32 0.2548296, %v2630_v39 }
0x188f   :  { %v2677_v33 = vadd.f32 1.0, %v2672_v22  ;;  %v2669_v24 = vsub.f32 1.0, %v2664_v35  ;;  %v3431_v60 = vpop.eup %3430 }
0x1890   :  { %v2681_v17 = vmul.f32 %v2676_v26, %v2486_v21  ;;  %v2678_v8 = vadd.f32 1.0, %v2673_v51  ;;  %v2640_v18 = vmul.f32 %v2635_v47, %v2594_v50  ;;  %v2490_v50 = vmul.f32 0.5, %v4573_v7 }
0x1891   :  { %v2682_v9 = vmul.f32 %v2677_v33, %v2487_v14  ;;  %v2674_v46 = vmul.f32 %v2669_v24, %v2504_v59 }
0x1892   :  { %v2683_v27 = vmul.f32 %v2678_v8, %v2488_v28  ;;  %v2665_v15 = vmul.f32 %v3431_v60, %v2640_v18 }
0x1893   :  { %v2686_v31 = vpack.c.bf16 %v2682_v9, %v2681_v17  ;;  %v2679_v30 = vadd.f32 1.0, %v2674_v46 }
0x1894   :  { %v2670_v3 = vsub.f32 1.0, %v2665_v15 }
0x1895   :  { %3119 = vmatmul.msk.bf16.vlgmr.msrb.gmra.mxu1 %vm1228_vm4, %v2686_v31  ;;  %v2684_v61 = vmul.f32 %v2679_v30, %v2489_v20 }
0x1896   :  { %v2675_v29 = vmul.f32 %v2670_v3, %v2505_v42 }
0x1897   :  { %v2687_v37 = vpack.c.bf16 %v2684_v61, %v2683_v27 }
0x1898   :  { %v2680_v32 = vadd.f32 1.0, %v2675_v29 }
0x189a   :  { %v2685_v63 = vmul.f32 %v2680_v32, %v2490_v50 }
0x189c   :  { %v2688_v62 = vpack.c.bf16 %v2685_v63, %v2685_v63  ;;  %v3155_v63 = vld [vmem:[%s4726_s12 + $0x8] sm:$0xff] }
0x189d   :  { %2866 = vmatpush.bf16.msra.mxu2 %v3155_v63 }
0x18a5   :  { %3120 = vmatmul.msk.bf16.gmra.mxu1 %vm1228_vm4, %v2687_v37 }
0x18b5   :  { %3121 = vmatmul.msk.bf16.gmra.mxu1 %vm1228_vm4, %v2688_v62  ;;  %v3154_v62 = vld [vmem:[%s4726_s12] sm:$0xff] }
0x18b6   :  { %2867 = vmatpush.bf16.msra.mxu2 %v3154_v62 }
0x1912   :  { %v2745_v19 = vpop.f32.mrf.mxu1 }
0x1913   :  { %v2746_v13 = vadd.f32 %v3274_v34, %v2745_v19 }
0x1915   :  { %v2759_v7 = vadd.f32 %v2746_v13, %v4480_v12 }
0x1917   :  { %v2766_v58 = vsel %vm286_vm5, %v2759_v7, 0.0 }
0x191a   :  { %v2747_v55 = vpop.f32.mrf.mxu1 }
0x191b   :  { %v2748_v49 = vadd.f32 %v3274_v34, %v2747_v55 }
0x191d   :  { %v2760_v44 = vadd.f32 %v2748_v49, %v4483_v41 }
0x191f   :  { %v2767_v2 = vsel %vm286_vm5, %v2760_v44, 0.0 }
0x1920   :  { %v2768_v22 = vadd.f32 %v2767_v2, %v2766_v58 }
0x1922   :  { %v2750_v16 = vpop.f32.mrf.mxu1 }
0x1923   :  { %v2751_v4 = vadd.f32 %v3274_v34, %v2750_v16 }
0x1925   :  { %v2761_v48 = vadd.f32 %v2751_v4, %v4492_v36 }
0x1927   :  { %v2769_v0 = vsel %vm286_vm5, %v2761_v48, 0.0 }
0x1928   :  { %v2770_v6 = vadd.f32 %v2769_v0, %v2768_v22 }
0x192a   :  { %v2752_v45 = vpop.f32.mrf.mxu1 }
0x192b   :  { %v2753_v56 = vadd.f32 %v3274_v34, %v2752_v45 }
0x192d   :  { %v2762_v54 = vadd.f32 %v2753_v56, %v4495_v53 }
0x192f   :  { %v2771_v57 = vsel %vm286_vm5, %v2762_v54, 0.0 }
0x1930   :  { %v2772_v25 = vadd.f32 %v2771_v57, %v2770_v6  ;;  %v3275_v57 = vld [vmem:[%s4727_s13] ss:$0 sm:$0xff] }
0x1932   :  { %v2755_v21 = vpop.f32.mrf.mxu1 }
0x1933   :  { %v2756_v26 = vadd.f32 %v3274_v34, %v2755_v21 }
0x1935   :  { %v2763_v41 = vadd.f32 %v2756_v26, %v4501_v11 }
0x1937   :  { %v2773_v12 = vsel %vm413_vm11, %v2763_v41, 0.0 }
0x1938   :  { %v2774_v36 = vadd.f32 %v2773_v12, %v2772_v25 }
0x193a   :  { %v2757_v14 = vpop.f32.mrf.mxu1  ;;  %2775 = vadd.xlane.f32.xlu0 %v2774_v36 }
0x19ad   :  { %v2776_v33 = vpop.xlane.xlu0 %2775 }
0x19ae   :  { %v2777_v53 = vrot.slane %v2776_v33, 4 }
0x19b0   :  { %v2778_v52 = vadd.f32 %v2777_v53, %v2776_v33 }
0x19b2   :  { %v2779_v17 = vrot.slane %v2778_v52, 2 }
0x19b4   :  { %v2780_v35 = vadd.f32 %v2779_v17, %v2778_v52 }
0x19b6   :  { %v2781_v40 = vrot.slane %v2780_v35, 1 }
0x19b8   :  { %v2782_v23 = vadd.f32 %v2781_v40, %v2780_v35 }
0x19ba   :  { %3186 = vpush %v2782_v23 }
0x19eb   :  { %s3187_s11 = spop %3186 }
0x19ec   :  { %v2784_v9 = vstv %s3187_s11 }
0x19ed   :  { %v2785_v43 = vmul.f32 %v2784_v9, %v3772_v10 }
0x19ef   :  { %v2786_v31 = vsub.f32 %v2759_v7, %v2785_v43  ;;  %v2787_v11 = vsub.f32 %v2760_v44, %v2785_v43  ;;  %v2788_v38 = vsub.f32 %v2761_v48, %v2785_v43  ;;  %v2789_v24 = vsub.f32 %v2762_v54, %v2785_v43 }
0x19f0   :  { %v2790_v39 = vsub.f32 %v2763_v41, %v2785_v43  ;;  %v2829_v7 = vstv %s4734_s20  ;;  %s3557_s20 = smov [#allocation15]  }
0x19f1   :  { %v2791_v5 = vmul.f32 %v2786_v31, %v2786_v31  ;;  %v2792_v1 = vmul.f32 %v2787_v11, %v2787_v11  ;;  %v2793_v59 = vmul.f32 %v2788_v38, %v2788_v38  ;;  %v2794_v51 = vmul.f32 %v2789_v24, %v2789_v24  ;;  %s2880_s8 = sshll.u32 %s3557_s20, 4  ;;  %s2881_s8 = int_to_ptr.vmem [resolvable:$true] %s2880_s8 }
0x19f2   :  { %v2795_v30 = vmul.f32 %v2790_v39, %v2790_v39 }
0x19f3   :  { %v2796_v46 = vsel %vm286_vm5, %v2791_v5, 0.0  ;;  %v2797_v47 = vsel %vm286_vm5, %v2792_v1, 0.0  ;;  %v2799_v18 = vsel %vm286_vm5, %v2793_v59, 0.0  ;;  %v2801_v20 = vsel %vm286_vm5, %v2794_v51, 0.0 }
0x19f4   :  { %v2798_v8 = vadd.f32 %v2797_v47, %v2796_v46  ;;  %v2803_v27 = vsel %vm413_vm11, %v2795_v30, 0.0 }
0x19f6   :  { %v2800_v28 = vadd.f32 %v2799_v18, %v2798_v8 }
0x19f8   :  { %v2802_v60 = vadd.f32 %v2801_v20, %v2800_v28 }
0x19fa   :  { %v2804_v61 = vadd.f32 %v2803_v27, %v2802_v60 }
0x19fc   :  { %2805 = vadd.xlane.f32.xlu0 %v2804_v61 }
0x1a6f   :  { %v2806_v15 = vpop.xlane.xlu0 %2805 }
0x1a70   :  { %v2807_v37 = vrot.slane %v2806_v15, 4 }
0x1a72   :  { %v2808_v3 = vadd.f32 %v2807_v37, %v2806_v15 }
0x1a74   :  { %v2809_v42 = vrot.slane %v2808_v3, 2 }
0x1a76   :  { %v2810_v29 = vadd.f32 %v2809_v42, %v2808_v3 }
0x1a78   :  { %v2811_v32 = vrot.slane %v2810_v29, 1 }
0x1a7a   :  { %v2812_v50 = vadd.f32 %v2811_v32, %v2810_v29 }
0x1a7c   :  { %3188 = vpush %v2812_v50 }
0x1aad   :  { %s3189_s25 = spop %3188 }
0x1aae   :  { %v2814_v19 = vstv %s3189_s25 }
0x1aaf   :  { %v2815_v55 = vmul.f32 %v2814_v19, %v3772_v10  ;;  %v2832_v10 = vstv %s4735_s21 }
0x1ab1   :  { %v2816_v16 = vadd.f32 1e-05, %v2815_v55 }
0x1ab3   :  { %3432 = vrsqrt.f32 %v2816_v16  ;;  %vm2823_vm4 = vweird.f32 %v2816_v16 }
0x1ab9   :  { %v3433_v34 = vpop.eup %3432 }
0x1aba   :  { %v2818_v49 = vmul.f32 %v3433_v34, %v2816_v16  ;;  %vm2824_vm11 = vweird.f32 %v3433_v34 }
0x1abb   :  { %vm2825_vm14 = vmor %vm2823_vm4, %vm2824_vm11 }
0x1abc   :  { %v2819_v13 = vmul.f32 %v3433_v34, %v2818_v49 }
0x1abe   :  { %v2820_v4 = vmul.f32 0.5, %v2819_v13 }
0x1ac0   :  { %v2821_v45 = vsub.f32 1.5, %v2820_v4 }
0x1ac2   :  { %v2822_v44 = vmul.f32 %v3433_v34, %v2821_v45 }
0x1ac4   :  { %v2826_v56 = vsel %vm2825_vm14, %v3433_v34, %v2822_v44 }
0x1ac5   :  { %v2827_v48 = vmul.f32 %v2826_v56, %v2786_v31  ;;  %v2828_v2 = vmul.f32 %v2826_v56, %v2788_v38 }
0x1ac7   :  { %v2830_v54 = vmul.f32 %v2829_v7, %v2827_v48  ;;  %v2831_v58 = vmul.f32 %v2829_v7, %v2828_v2 }
0x1ac9   :  { %v2833_v0 = vadd.f32 %v2832_v10, %v2830_v54  ;;  %v2834_v22 = vadd.f32 %v2832_v10, %v2831_v58 }
0x1acb   :  { %v2835_v21 = vsel %vm369_vm10, %v2833_v0, %v2834_v22 }
0x1acc   :  { %v2836_v26 = vpack.c.bf16 %v2835_v21, %v2835_v21 }
0x1ace   :  { %3130 = vmatmul.msk.bf16.vlgmr.msra.gmra.mxu2 %vm286_vm5, %v2836_v26 }
0x1b51   :  { %v2869_v6 = vpop.f32.mrf.mxu2 }
0x1b52   :  { %v2870_v41 = vadd.f32 %v3275_v57, %v2869_v6 }
0x1b54   :  { %2874 = vst.msk [vmem:[#allocation15] sm:$0x3] %vm2873_vm15, %v2870_v41 }
0x1b55   :  { %2885 = dma.vmem_to_hbm [thread:$0]  %s2881_s8, 32, %s2883_s23, [#allocation5]  }
0x1b59   :  { %v2871_v25 = vpop.f32.mrf.mxu2 }
0x1b5a   :  { %3538 = dma.done.wait [#allocation5], 32  }
0x1b5b   :  { %3539 = vsyncadd [#allocation5], 4294967264 }
0x1b5c   :  { %2890 = vsyncpa [#allocation5], 1 }
0x1b5d   :  { %2891 = vsyncpa [#allocation6], 1 }
0x1b5e   :  { %2892 = vsyncpa [#allocation8], 1 }
0x1b5f   :  { %2893 = vsyncpa [#allocation11], 1 }
0x1b60   :  { %2894 = vsyncpa [#allocation14], 1 }

</bundles_post_ra>
